<compile_context>
chip_gen: v7x
topology: tpu7x:2x2x1
jax: 0.10.0
libtpu: 0.0.40
codegen_flags: <defaults>
</compile_context>

<pallas_src>
import jax
import jax.numpy as jnp
from jax.experimental import pallas as pl
from jax.experimental.pallas import tpu as pltpu

# ---- synthetic config (mtgnnConfig) -----------------------------------------------
N_HEADS = 2
HIDDEN = 32
FEAT_DIM = 16      # module applies query_input(in_dim -> ...) to x, so in_dim == feat_dim
IN_DIM = 16
NUM_CLASSES = 4

HD = N_HEADS * HIDDEN                        # 64
PROJ = HD + N_HEADS * NUM_CLASSES            # 72 lanes: [ v | per-head scores ]


def _pick_tile_n(n):
    # Biggest tile that still leaves >= 2 grid steps: amortizes the ~0.35 us
    # per-grid-step overhead while keeping the "parallel" N axis shardable
    # across the 2 TensorCores on v7x.  512 keeps all intermediates comfortably
    # inside a 32 MiB scoped-VMEM budget on every chip (sweep 1024 on v6e/v7x
    # with a raised vmem limit).
    for t in (512, 256, 128):
        if -(-n // t) >= 2:
            return t
    return 128


def tree_track_kernel(x_ref, mid_ref, w_ref, b_ref, hexp_ref, track_ref, attn_ref):
    tn = x_ref.shape[0]
    H, C, hid = N_HEADS, NUM_CLASSES, HIDDEN

    x = x_ref[...]                                     # (tn, F)
    mid = mid_ref[...]                                 # (tn, 1) int32

    # One fused MXU matmul: lanes [0:HD) = v, lanes [HD:HD+H*C) = per-head scores
    # (q @ k^T folded into the weights in the wrapper).
    proj = jnp.dot(x, w_ref[...], preferred_element_type=jnp.float32) + b_ref[...]
    v = proj[:, :HD]                                   # (tn, HD)

    # Per-head scores stacked along sublanes -> one softmax / entropy pass.
    s = jnp.concatenate(
        [proj[:, HD + h * C: HD + (h + 1) * C] for h in range(H)], axis=0)   # (H*tn, C)

    m = jnp.max(s, axis=-1, keepdims=True)
    p = jnp.exp(s - m)
    denom = jnp.sum(p, axis=-1, keepdims=True)
    alpha = p * pl.reciprocal(denom, approx=True)      # EUP reciprocal (free slot)

    mid_h = jnp.concatenate([mid] * H, axis=0)         # (H*tn, 1)
    alpha = jnp.where(mid_h > 0, 1.0 / C, alpha)       # mid rows -> uniform 1/C

    # attn = mean over heads (multiply by compile-time 1/H, no divide).
    attn = alpha[:tn]
    for h in range(1, H):
        attn = attn + alpha[h * tn:(h + 1) * tn]
    attn_ref[...] = (attn * (1.0 / H)).astype(attn_ref.dtype)

    # sharp = exp(-entropy); fold it into alpha before the lane expansion.
    sharp = jnp.exp(jnp.sum(alpha * jnp.log(alpha + 1e-6), axis=-1, keepdims=True))
    alpha_s = alpha * sharp                            # (H*tn, C)

    # Per-class output, written directly in the module's (C, N, HD) layout.
    # For class c: gather alpha_s[:, c] per head onto lanes (tn, H) and broadcast
    # to (tn, HD) with one tiny MXU matmul against the hoisted 0/1 head-expansion
    # matrix, then scale v and store (64-lane store, no wrapper transpose).
    hexp = hexp_ref[...]                               # (H, HD)
    for c in range(C):
        a_c = jnp.concatenate(
            [alpha_s[h * tn:(h + 1) * tn, c:c + 1] for h in range(H)], axis=1)  # (tn, H)
        a_hd = jnp.dot(a_c, hexp, preferred_element_type=jnp.float32)           # (tn, HD)
        track_ref[c] = (v * a_hd).astype(track_ref.dtype)


@jax.jit
def tree_track_builder(x, prototype, mid_mask, wv, bv, wq, bq, wk, bk):
    n, f = x.shape
    C, H, hid = NUM_CLASSES, N_HEADS, HIDDEN

    # ---- parameter prep (runs once; outside the kernel) ----------------------------
    # k = Linear_k(prototype); fold q @ k^T into the input projection:
    #   s_h = (x @ wq_h + bq_h) @ k_h^T == x @ (wq_h @ k_h^T) + (bq_h @ k_h^T)
    k_proj = (prototype @ wk + bk).astype(jnp.float32)                       # (C, HD)
    ws = jnp.concatenate(
        [wq[:, h * hid:(h + 1) * hid] @ k_proj[:, h * hid:(h + 1) * hid].T
         for h in range(H)], axis=1)                                         # (F, H*C)
    bs = jnp.concatenate(
        [bq[h * hid:(h + 1) * hid] @ k_proj[:, h * hid:(h + 1) * hid].T
         for h in range(H)])                                                 # (H*C,)
    w_all = jnp.concatenate([wv, ws], axis=1).astype(jnp.float32)            # (F, PROJ)
    b_all = jnp.concatenate([bv, bs])[None, :].astype(jnp.float32)           # (1, PROJ)

    # 0/1 head-expansion matrix (hoisted out of the kernel): (H, HD),
    # hexp[h, h*hid + d] = 1.
    head_expand = jnp.repeat(jnp.eye(H, dtype=jnp.float32), hid, axis=1)

    # Pad N up to a multiple of the tile; padded rows are harmless (finite) and
    # only sliced off when N is not already aligned.
    tile_n = _pick_tile_n(n)
    n_pad = -(-n // tile_n) * tile_n
    x_p = jnp.zeros((n_pad, f), jnp.float32).at[:n].set(x)
    mid_p = jnp.zeros((n_pad, 1), jnp.int32).at[:n, 0].set(mid_mask.astype(jnp.int32))

    grid = (n_pad // tile_n,)
    out_shapes = (
        jax.ShapeDtypeStruct((C, n_pad, HD), jnp.float32),   # track, module layout
        jax.ShapeDtypeStruct((n_pad, C), jnp.float32),       # attn
    )

    def param_spec(arr):
        return pl.BlockSpec(arr.shape, lambda i: (0, 0))

    track, attn = pl.pallas_call(
        tree_track_kernel,
        out_shape=out_shapes,
        grid=grid,
        in_specs=[
            pl.BlockSpec((tile_n, f), lambda i: (i, 0)),     # x tile
            pl.BlockSpec((tile_n, 1), lambda i: (i, 0)),     # mid column
            param_spec(w_all),
            param_spec(b_all),
            param_spec(head_expand),
        ],
        out_specs=(
            pl.BlockSpec((C, tile_n, HD), lambda i: (0, i, 0)),
            pl.BlockSpec((tile_n, C), lambda i: (i, 0)),
        ),
        compiler_params=pltpu.CompilerParams(
            dimension_semantics=("parallel",),
            vmem_limit_bytes=32 * 1024 * 1024),
    )(x_p, mid_p, w_all, b_all, head_expand)

    if n_pad != n:
        track = track[:, :n, :]
        attn = attn[:n]
    return track, attn


def reference(x, prototype, mid_mask, wv, bv, wq, bq, wk, bk):
    """Pure-JAX re-implementation of TreeTrackBuilder.forward for checking."""
    v = x @ wv + bv
    q = x @ wq + bq
    k = prototype @ wk + bk
    H, hid, C = N_HEADS, HIDDEN, NUM_CLASSES
    vh = jnp.stack([v[:, i * hid:(i + 1) * hid] for i in range(H)])   # (H,N,hid)
    qh = jnp.stack([q[:, i * hid:(i + 1) * hid] for i in range(H)])
    kh = jnp.stack([k[:, i * hid:(i + 1) * hid] for i in range(H)])
    s = jnp.einsum('hnd,hcd->hnc', qh, kh)
    alpha = jax.nn.softmax(s, axis=-1)
    alpha = jnp.where(mid_mask[None, :, None], 1.0 / C, alpha)
    attn = jnp.mean(alpha, axis=0)
    sharp = jnp.exp(jnp.sum(alpha * jnp.log(alpha + 1e-6), axis=-1))  # (H,N)
    track = vh[:, :, None, :] * alpha[:, :, :, None] * sharp[:, :, None, None]
    track = jnp.concatenate([track[i] for i in range(H)], axis=-1)    # (N,C,H*hid)
    return jnp.transpose(track, (1, 0, 2)), attn


if __name__ == "__main__":
    key = jax.random.PRNGKey(0)
    ks = jax.random.split(key, 10)

    N_NODES = 200   # not a multiple of the tile: exercises padding + 2-step grid
    x = jax.random.normal(ks[0], (N_NODES, FEAT_DIM), jnp.float32)
    prototype = jax.random.normal(ks[1], (NUM_CLASSES, IN_DIM), jnp.float32)
    mid_mask = jax.random.bernoulli(ks[8], 0.3, (N_NODES,))

    scale = 0.1
    wv = scale * jax.random.normal(ks[2], (FEAT_DIM, HD), jnp.float32)
    bv = scale * jax.random.normal(ks[3], (HD,), jnp.float32)
    wq = scale * jax.random.normal(ks[4], (IN_DIM, HD), jnp.float32)
    bq = scale * jax.random.normal(ks[5], (HD,), jnp.float32)
    wk = scale * jax.random.normal(ks[6], (IN_DIM, HD), jnp.float32)
    bk = scale * jax.random.normal(ks[7], (HD,), jnp.float32)

    track_h, attn = tree_track_builder(x, prototype, mid_mask,
                                       wv, bv, wq, bq, wk, bk)
    jax.block_until_ready((track_h, attn))

    ref_track, ref_attn = reference(x, prototype, mid_mask,
                                    wv, bv, wq, bq, wk, bk)
    assert track_h.shape == (NUM_CLASSES, N_NODES, HD)
    assert attn.shape == (N_NODES, NUM_CLASSES)
    # Tolerances account for the approximate EUP reciprocal in the softmax denom
    # and the folded (wq @ k^T) association order.
    assert jnp.allclose(attn, ref_attn, atol=2e-3, rtol=1e-2)
    assert jnp.allclose(track_h, ref_track, atol=2e-3, rtol=2e-2)

    print("KERNEL_OK")
</pallas_src>

<mosaic_0001>
module attributes {stable_mosaic.version = 11 : i64} {
  func.func @tree_track_kernel(%arg0: i32, %arg1: memref<128x16xf32, #tpu.memory_space<vmem>>, %arg2: memref<128x1xi32, #tpu.memory_space<vmem>>, %arg3: memref<16x72xf32, #tpu.memory_space<vmem>>, %arg4: memref<1x72xf32, #tpu.memory_space<vmem>>, %arg5: memref<2x64xf32, #tpu.memory_space<vmem>>, %arg6: memref<4x128x64xf32, #tpu.memory_space<vmem>>, %arg7: memref<128x4xf32, #tpu.memory_space<vmem>>) attributes {dimension_semantics = [#tpu.dimension_semantics<parallel>], iteration_bounds = array<i64: 2>, scalar_prefetch = 0 : i64, scratch_operands = 0 : i64, tpu.core_type = #tpu.core_type<tc>, window_params = [{transform_indices = @transform_0, window_bounds = array<i64: 128, 16>}, {transform_indices = @transform_1, window_bounds = array<i64: 128, 1>}, {pipeline_mode = #tpu.pipeline_mode<synchronous>, transform_indices = @transform_2, window_bounds = array<i64: 16, 72>}, {pipeline_mode = #tpu.pipeline_mode<synchronous>, transform_indices = @transform_3, window_bounds = array<i64: 1, 72>}, {pipeline_mode = #tpu.pipeline_mode<synchronous>, transform_indices = @transform_4, window_bounds = array<i64: 2, 64>}, {transform_indices = @transform_5, window_bounds = array<i64: 4, 128, 64>}, {transform_indices = @transform_6, window_bounds = array<i64: 128, 4>}]} {
    %c0 = arith.constant 0 : index
    %c0_0 = arith.constant 0 : index
    %0 = vector.load %arg1[%c0, %c0_0] : memref<128x16xf32, #tpu.memory_space<vmem>>, vector<128x16xf32>
    %c0_1 = arith.constant 0 : index
    %c0_2 = arith.constant 0 : index
    %1 = vector.load %arg2[%c0_1, %c0_2] : memref<128x1xi32, #tpu.memory_space<vmem>>, vector<128x1xi32>
    %c0_3 = arith.constant 0 : index
    %c0_4 = arith.constant 0 : index
    %2 = vector.load %arg3[%c0_3, %c0_4] : memref<16x72xf32, #tpu.memory_space<vmem>>, vector<16x72xf32>
    %cst = arith.constant dense<0.000000e+00> : vector<128x72xf32>
    %3 = tpu.matmul %0, %2, %cst {dimension_numbers = #tpu.dot_dimension_numbers<[1], [0], [0], [1], [0, 0, 1, 1], [], []>} : vector<128x16xf32>, vector<16x72xf32>, vector<128x72xf32> -> vector<128x72xf32>
    %c0_5 = arith.constant 0 : index
    %c0_6 = arith.constant 0 : index
    %4 = vector.load %arg4[%c0_5, %c0_6] : memref<1x72xf32, #tpu.memory_space<vmem>>, vector<1x72xf32>
    %5 = vector.broadcast %4 : vector<1x72xf32> to vector<128x72xf32>
    %6 = arith.addf %3, %5 : vector<128x72xf32>
    %7 = vector.extract_strided_slice %6 {offsets = [0, 0], sizes = [128, 64], strides = [1, 1]} : vector<128x72xf32> to vector<128x64xf32>
    %8 = vector.extract_strided_slice %6 {offsets = [0, 64], sizes = [128, 4], strides = [1, 1]} : vector<128x72xf32> to vector<128x4xf32>
    %9 = vector.extract_strided_slice %6 {offsets = [0, 68], sizes = [128, 4], strides = [1, 1]} : vector<128x72xf32> to vector<128x4xf32>
    %10 = tpu.concatenate %8, %9 in 0 : vector<128x4xf32>, vector<128x4xf32> -> vector<256x4xf32>
    %cst_7 = arith.constant dense<0xFF800000> : vector<256xf32>
    %11 = vector.multi_reduction <maximumf>, %10, %cst_7 [1] : vector<256x4xf32> to vector<256xf32>
    %12 = vector.shape_cast %11 : vector<256xf32> to vector<256x1xf32>
    %13 = vector.broadcast %12 : vector<256x1xf32> to vector<256x4xf32>
    %14 = arith.subf %10, %13 : vector<256x4xf32>
    %15 = math.exp %14 : vector<256x4xf32>
    %cst_8 = arith.constant dense<0.000000e+00> : vector<256xf32>
    %16 = vector.multi_reduction <add>, %15, %cst_8 [1] : vector<256x4xf32> to vector<256xf32>
    %17 = vector.shape_cast %16 : vector<256xf32> to vector<256x1xf32>
    %18 = tpu.reciprocal %17 {approx = true} : vector<256x1xf32> -> vector<256x1xf32>
    %19 = vector.broadcast %18 : vector<256x1xf32> to vector<256x4xf32>
    %20 = arith.mulf %15, %19 : vector<256x4xf32>
    %21 = tpu.concatenate %1, %1 in 0 : vector<128x1xi32>, vector<128x1xi32> -> vector<256x1xi32>
    %c0_i32 = arith.constant 0 : i32
    %22 = vector.broadcast %c0_i32 : i32 to vector<256x1xi32>
    %23 = arith.cmpi sgt, %21, %22 : vector<256x1xi32>
    %cst_9 = arith.constant 2.500000e-01 : f32
    %24 = vector.shape_cast %23 : vector<256x1xi1> to vector<256x1xi1>
    %25 = vector.broadcast %24 : vector<256x1xi1> to vector<256x4xi1>
    %26 = vector.broadcast %cst_9 : f32 to vector<256x4xf32>
    %27 = arith.select %25, %26, %20 : vector<256x4xi1>, vector<256x4xf32>
    %28 = vector.extract_strided_slice %27 {offsets = [0, 0], sizes = [128, 4], strides = [1, 1]} : vector<256x4xf32> to vector<128x4xf32>
    %29 = vector.extract_strided_slice %27 {offsets = [128, 0], sizes = [128, 4], strides = [1, 1]} : vector<256x4xf32> to vector<128x4xf32>
    %30 = arith.addf %28, %29 : vector<128x4xf32>
    %cst_10 = arith.constant 5.000000e-01 : f32
    %31 = vector.broadcast %cst_10 : f32 to vector<128x4xf32>
    %32 = arith.mulf %30, %31 : vector<128x4xf32>
    %c0_11 = arith.constant 0 : index
    %c0_12 = arith.constant 0 : index
    %33 = vector.load %arg7[%c0_11, %c0_12] : memref<128x4xf32, #tpu.memory_space<vmem>>, vector<128x4xf32>
    tpu.vector_store %arg7[%c0_11, %c0_12], %32 {strides = array<i32>} : memref<128x4xf32, #tpu.memory_space<vmem>>, vector<128x4xf32>,
    %cst_13 = arith.constant 9.99999997E-7 : f32
    %34 = vector.broadcast %cst_13 : f32 to vector<256x4xf32>
    %35 = arith.addf %27, %34 : vector<256x4xf32>
    %36 = math.log %35 : vector<256x4xf32>
    %37 = arith.mulf %27, %36 : vector<256x4xf32>
    %cst_14 = arith.constant dense<0.000000e+00> : vector<256xf32>
    %38 = vector.multi_reduction <add>, %37, %cst_14 [1] : vector<256x4xf32> to vector<256xf32>
    %39 = vector.shape_cast %38 : vector<256xf32> to vector<256x1xf32>
    %40 = math.exp %39 : vector<256x1xf32>
    %41 = vector.broadcast %40 : vector<256x1xf32> to vector<256x4xf32>
    %42 = arith.mulf %27, %41 : vector<256x4xf32>
    %c0_15 = arith.constant 0 : index
    %c0_16 = arith.constant 0 : index
    %43 = vector.load %arg5[%c0_15, %c0_16] : memref<2x64xf32, #tpu.memory_space<vmem>>, vector<2x64xf32>
    %44 = vector.extract_strided_slice %42 {offsets = [0, 0], sizes = [128, 1], strides = [1, 1]} : vector<256x4xf32> to vector<128x1xf32>
    %45 = vector.extract_strided_slice %42 {offsets = [128, 0], sizes = [128, 1], strides = [1, 1]} : vector<256x4xf32> to vector<128x1xf32>
    %46 = tpu.concatenate %44, %45 in 1 : vector<128x1xf32>, vector<128x1xf32> -> vector<128x2xf32>
    %cst_17 = arith.constant dense<0.000000e+00> : vector<128x64xf32>
    %47 = tpu.matmul %46, %43, %cst_17 {dimension_numbers = #tpu.dot_dimension_numbers<[1], [0], [0], [1], [0, 0, 1, 1], [], []>} : vector<128x2xf32>, vector<2x64xf32>, vector<128x64xf32> -> vector<128x64xf32>
    %48 = arith.mulf %7, %47 : vector<128x64xf32>
    %c0_18 = arith.constant 0 : index
    %c0_19 = arith.constant 0 : index
    %c0_20 = arith.constant 0 : index
    %49 = vector.load %arg6[%c0_18, %c0_19, %c0_20] : memref<4x128x64xf32, #tpu.memory_space<vmem>>, vector<1x128x64xf32>
    %50 = vector.shape_cast %49 : vector<1x128x64xf32> to vector<128x64xf32>
    %51 = vector.shape_cast %48 : vector<128x64xf32> to vector<1x128x64xf32>
    tpu.vector_store %arg6[%c0_18, %c0_19, %c0_20], %51 {strides = array<i32>} : memref<4x128x64xf32, #tpu.memory_space<vmem>>, vector<1x128x64xf32>,
    %52 = vector.extract_strided_slice %42 {offsets = [0, 1], sizes = [128, 1], strides = [1, 1]} : vector<256x4xf32> to vector<128x1xf32>
    %53 = vector.extract_strided_slice %42 {offsets = [128, 1], sizes = [128, 1], strides = [1, 1]} : vector<256x4xf32> to vector<128x1xf32>
    %54 = tpu.concatenate %52, %53 in 1 : vector<128x1xf32>, vector<128x1xf32> -> vector<128x2xf32>
    %cst_21 = arith.constant dense<0.000000e+00> : vector<128x64xf32>
    %55 = tpu.matmul %54, %43, %cst_21 {dimension_numbers = #tpu.dot_dimension_numbers<[1], [0], [0], [1], [0, 0, 1, 1], [], []>} : vector<128x2xf32>, vector<2x64xf32>, vector<128x64xf32> -> vector<128x64xf32>
    %56 = arith.mulf %7, %55 : vector<128x64xf32>
    %c1 = arith.constant 1 : index
    %c0_22 = arith.constant 0 : index
    %c0_23 = arith.constant 0 : index
    %57 = vector.load %arg6[%c1, %c0_22, %c0_23] : memref<4x128x64xf32, #tpu.memory_space<vmem>>, vector<1x128x64xf32>
    %58 = vector.shape_cast %57 : vector<1x128x64xf32> to vector<128x64xf32>
    %59 = vector.shape_cast %56 : vector<128x64xf32> to vector<1x128x64xf32>
    tpu.vector_store %arg6[%c1, %c0_22, %c0_23], %59 {strides = array<i32>} : memref<4x128x64xf32, #tpu.memory_space<vmem>>, vector<1x128x64xf32>,
    %60 = vector.extract_strided_slice %42 {offsets = [0, 2], sizes = [128, 1], strides = [1, 1]} : vector<256x4xf32> to vector<128x1xf32>
    %61 = vector.extract_strided_slice %42 {offsets = [128, 2], sizes = [128, 1], strides = [1, 1]} : vector<256x4xf32> to vector<128x1xf32>
    %62 = tpu.concatenate %60, %61 in 1 : vector<128x1xf32>, vector<128x1xf32> -> vector<128x2xf32>
    %cst_24 = arith.constant dense<0.000000e+00> : vector<128x64xf32>
    %63 = tpu.matmul %62, %43, %cst_24 {dimension_numbers = #tpu.dot_dimension_numbers<[1], [0], [0], [1], [0, 0, 1, 1], [], []>} : vector<128x2xf32>, vector<2x64xf32>, vector<128x64xf32> -> vector<128x64xf32>
    %64 = arith.mulf %7, %63 : vector<128x64xf32>
    %c2 = arith.constant 2 : index
    %c0_25 = arith.constant 0 : index
    %c0_26 = arith.constant 0 : index
    %65 = vector.load %arg6[%c2, %c0_25, %c0_26] : memref<4x128x64xf32, #tpu.memory_space<vmem>>, vector<1x128x64xf32>
    %66 = vector.shape_cast %65 : vector<1x128x64xf32> to vector<128x64xf32>
    %67 = vector.shape_cast %64 : vector<128x64xf32> to vector<1x128x64xf32>
    tpu.vector_store %arg6[%c2, %c0_25, %c0_26], %67 {strides = array<i32>} : memref<4x128x64xf32, #tpu.memory_space<vmem>>, vector<1x128x64xf32>,
    %68 = vector.extract_strided_slice %42 {offsets = [0, 3], sizes = [128, 1], strides = [1, 1]} : vector<256x4xf32> to vector<128x1xf32>
    %69 = vector.extract_strided_slice %42 {offsets = [128, 3], sizes = [128, 1], strides = [1, 1]} : vector<256x4xf32> to vector<128x1xf32>
    %70 = tpu.concatenate %68, %69 in 1 : vector<128x1xf32>, vector<128x1xf32> -> vector<128x2xf32>
    %cst_27 = arith.constant dense<0.000000e+00> : vector<128x64xf32>
    %71 = tpu.matmul %70, %43, %cst_27 {dimension_numbers = #tpu.dot_dimension_numbers<[1], [0], [0], [1], [0, 0, 1, 1], [], []>} : vector<128x2xf32>, vector<2x64xf32>, vector<128x64xf32> -> vector<128x64xf32>
    %72 = arith.mulf %7, %71 : vector<128x64xf32>
    %c3 = arith.constant 3 : index
    %c0_28 = arith.constant 0 : index
    %c0_29 = arith.constant 0 : index
    %73 = vector.load %arg6[%c3, %c0_28, %c0_29] : memref<4x128x64xf32, #tpu.memory_space<vmem>>, vector<1x128x64xf32>
    %74 = vector.shape_cast %73 : vector<1x128x64xf32> to vector<128x64xf32>
    %75 = vector.shape_cast %72 : vector<128x64xf32> to vector<1x128x64xf32>
    tpu.vector_store %arg6[%c3, %c0_28, %c0_29], %75 {strides = array<i32>} : memref<4x128x64xf32, #tpu.memory_space<vmem>>, vector<1x128x64xf32>,
    return
  }
  func.func @transform_0(%arg0: i32) -> (i32, i32) {
    %c0_i32 = arith.constant 0 : i32
    %c0_i32_0 = arith.constant 0 : i32
    return %arg0, %c0_i32 : i32, i32
  }
  func.func @transform_1(%arg0: i32) -> (i32, i32) {
    %c0_i32 = arith.constant 0 : i32
    %c0_i32_0 = arith.constant 0 : i32
    return %arg0, %c0_i32 : i32, i32
  }
  func.func @transform_2(%arg0: i32) -> (i32, i32) {
    %c0_i32 = arith.constant 0 : i32
    %c0_i32_0 = arith.constant 0 : i32
    %c0_i32_1 = arith.constant 0 : i32
    return %c0_i32, %c0_i32_0 : i32, i32
  }
  func.func @transform_3(%arg0: i32) -> (i32, i32) {
    %c0_i32 = arith.constant 0 : i32
    %c0_i32_0 = arith.constant 0 : i32
    %c0_i32_1 = arith.constant 0 : i32
    return %c0_i32, %c0_i32_0 : i32, i32
  }
  func.func @transform_4(%arg0: i32) -> (i32, i32) {
    %c0_i32 = arith.constant 0 : i32
    %c0_i32_0 = arith.constant 0 : i32
    %c0_i32_1 = arith.constant 0 : i32
    return %c0_i32, %c0_i32_0 : i32, i32
  }
  func.func @transform_5(%arg0: i32) -> (i32, i32, i32) {
    %c0_i32 = arith.constant 0 : i32
    %c0_i32_0 = arith.constant 0 : i32
    %c0_i32_1 = arith.constant 0 : i32
    return %c0_i32, %arg0, %c0_i32_0 : i32, i32, i32
  }
  func.func @transform_6(%arg0: i32) -> (i32, i32) {
    %c0_i32 = arith.constant 0 : i32
    %c0_i32_0 = arith.constant 0 : i32
    return %arg0, %c0_i32 : i32, i32
  }
}

</mosaic_0001>

<bundles_post_ra>
// kernel: tree_track_builder.1
= control target key start
LH: loop header
LB: loop body
LE: loop exit
PB: predicated region body
PF: predicated region fallthrough
CT: control target
= control target key end

     0   :  { %s4265_s21 = smov 0   ;;  %s4267_s22 = smov 0   ;;  %s6247_s0 = inlined_call_operand.vmem [shape: f32[256,16], index: 0, kind: input, shape index: {}]   ;;  %s6248_s1 = inlined_call_operand.vmem [shape: s32[256,1], index: 1, kind: input, shape index: {}]   ;;  %s6249_s2 = inlined_call_operand.vmem [shape: f32[16,72], index: 2, kind: input, shape index: {}]   ;;  %s6250_s3 = inlined_call_operand.vmem [shape: f32[1,72], index: 3, kind: input, shape index: {}]   ;;  %s6251_s4 = inlined_call_operand.vmem [shape: f32[2,64], index: 4, kind: input, shape index: {}]   ;;  %s6252_s5 = inlined_call_operand.vmem [shape: f32[4,256,64], index: 5, kind: output, shape index: {0}]   ;;  %s6253_s6 = inlined_call_operand.vmem [shape: f32[256,4], index: 6, kind: output, shape index: {1}]  }
   0x1   :  { %s4269_s23 = smov 0  }
   0x2 LB: > { %s4278_s24 = sadd.s32 4294967295, %s4221_s23   ;;  %s4280_s25 = sadd.s32 1, %s4221_s23   ;;  %s4221_s23 = sphi %s4269_s23, %s6421_s23   ;;  %s4217_s22 = sphi %s4267_s22, %s6420_s22   ;;  %s4213_s21 = sphi %s4265_s21, %s6419_s21  }
   0x3   : > { %s136_s26 = ssub.s32 %s4221_s23, %s4280_s25  ;;  %s139_s27 = sadd.s32 1, %s4217_s22 }
   0x4   : > { %p137_p0 = scmp.eq.s32.totalorder %s136_s26, 0  ;;  %p149_p1 = scmp.ne.s32.totalorder %s4217_s22, %s4213_s21 }
   0x5   : > { %p150_p2 = scmp.eq.s32.totalorder %s4278_s24, 1  ;;  %p3539_p3 = scmp.ge.s32.totalorder %s4221_s23, 1 }
   0x6   : > { %s4288_s28 = scalar_select %p137_p0, %s4217_s22, %s139_s27  }
   0x7   : > { %p4290_p4 = por %p150_p2, %p149_p1  ;;  %p227_p5 = scmp.lt.s32.totalorder %s4221_s23, 3 }
   0x9   : > { %p228_p6 = pnand %p3539_p3, %p227_p5 }
   0xb   : > { %231 = sbr.rel (%p228_p6) target bundleno = 2166 (0x876), region = 40 }
  0x12   : > { %v317_v0 = vld [vmem:[%s6249_s2] sm:$0xff]  ;;  %v318_v1 = vld [vmem:[%s6249_s2 + $0x8] sm:$0xff]  ;;  %s3541_s10 = sshll.u32 %s4278_s24, 4  ;;  %v4223_v3 = vmov 0   ;;  %vm326_vm0 = vcmask 130048   ;;  %s4224_s20 = smov 124  }
  0x13   : > { %v3904_v2 = vpack.c.bf16 %v318_v1, %v317_v0  ;;  %p267_p7 = scmp.lt.s32.totalorder %s3541_s10, 31  ;;  %3942 = vset.pattern.permute.xlu0 %v4223_v3  ;;  %3941 = vset.pattern.permute.xlu1 %v4223_v3  ;;  %v3547_v52 = vld [vmem:[%s6250_s3] ss:$0 sm:$0xff]  ;;  %s4225_s23 = smov 64  }
  0x14   : > { %s4226_s26 = smov 63   ;;  %s4227_s27 = smov 62  }
  0x15   : > { %3905 = vmatprep.subr.bf16.mxu0 %v3904_v2  ;;  %s6423_s10 = smov (!%p267_p7, %s3541_s10), 31  ;;  %s4228_s30 = smov 61  }
  0x16   : > { %3907 = vmatpush3.bf16.msra.mxu0 %v3904_v2  ;;  %s4303_s11 = sshll.u32 %s6423_s10, 3  ;;  %s4229_s7 = smov 65  }
  0x17   : > { %s4309_s14 = scalar_lea.vmem %s6247_s0, %s4303_s11  ;;  %s4320_s17 = scalar_lea.vmem %s6248_s1, %s4303_s11 }
  0x18   : > { %v285_v4 = vld [vmem:[%s4309_s14] sm:$0xff]  ;;  %v286_v5 = vld [vmem:[%s4309_s14 + $0x8] sm:$0xff]  ;;  %v287_v6 = vld [vmem:[%s4309_s14 + $0x10] sm:$0xff]  ;;  %s5668_s13 = scalar_lea.vmem %s6253_s6, %s4303_s11  ;;  %s256_s11 = sand.u32 1, %s4213_s21  }
  0x19   : > { %3776 = vmatprep.mubr.msk.f32.mxu0 %vm326_vm0, %v285_v4  ;;  %v288_v7 = vld [vmem:[%s4309_s14 + $0x18] sm:$0xff]  ;;  %v289_v8 = vld [vmem:[%s4309_s14 + $0x20] sm:$0xff]  ;;  %v307_v11 = vld [vmem:[%s4320_s17 + $0x30] sm:$0xff]  ;;  %s3685_s15 = sshll.u32 (%p4290_p4), %s4278_s24, 7 }
  0x1a   : > { %3777 = vmatmul.mubr.msk.f32.vlgmr.msra.gmra.mrb[0].mxu0 %vm326_vm0, %v286_v5  ;;  %v308_v9 = vld [vmem:[%s4320_s17 + $0x38] sm:$0xff]  ;;  %v309_v10 = vld [vmem:[%s4320_s17 + $0x40] sm:$0xff]  ;;  %v290_v12 = vld [vmem:[%s4309_s14 + $0x28] sm:$0xff]  ;;  %vm1072_vm3 = vcmp.gt.s32.totalorder %v307_v11, 0  ;;  %s6110_s18 = scalar_lea.vmem (%p4290_p4), %s6252_s5, %s3685_s15 }
  0x1b   : > { %3779 = vmatprep.mubr.msk.f32.mxu0 %vm326_vm0, %v287_v6  ;;  %vm1073_vm1 = vcmp.gt.s32.totalorder %v308_v9, 0  ;;  %vm1074_vm2 = vcmp.gt.s32.totalorder %v309_v10, 0  ;;  %v311_v14 = vld [vmem:[%s4320_s17 + $0x50] sm:$0xff]  ;;  %v310_v15 = vld [vmem:[%s4320_s17 + $0x48] sm:$0xff]  ;;  %v1088_v17 = vsel %vm1072_vm3, 1, %v4223_v3  ;;  %v312_v18 = vld [vmem:[%s4320_s17 + $0x58] sm:$0xff] }
  0x1c   : > { %v1089_v13 = vsel %vm1073_vm1, 1, %v4223_v3  ;;  %v291_v16 = vld [vmem:[%s4309_s14 + $0x30] sm:$0xff]  ;;  %vm1075_vm4 = vcmp.gt.s32.totalorder %v310_v15, 0  ;;  %v1090_v19 = vsel %vm1074_vm2, 1, %v4223_v3  ;;  %1117 = vperm.xlu1 %3941, %v1088_v17   ;;  %vm1076_vm5 = vcmp.gt.s32.totalorder %v311_v14, 0  ;;  %v292_v21 = vld [vmem:[%s4309_s14 + $0x38] sm:$0xff] }
  0x1d   : > { %1120 = vperm.xlu0 %3942, %v1089_v13   ;;  %v1091_v20 = vsel %vm1075_vm4, 1, %v4223_v3  ;;  %v313_v22 = vld [vmem:[%s4320_s17 + $0x60] sm:$0xff]  ;;  %vm1077_vm6 = vcmp.gt.s32.totalorder %v312_v18, 0  ;;  %v314_v24 = vld [vmem:[%s4320_s17 + $0x68] sm:$0xff]  ;;  %v1092_v25 = vsel %vm1076_vm5, 1, %v4223_v3  ;;  %v315_v28 = vld [vmem:[%s4320_s17 + $0x70] sm:$0xff] }
  0x1e   : > { %3780 = vmatmul.mubr.msk.f32.gmra.mrb[2].mxu0 %vm326_vm0, %v288_v7  ;;  %v293_v23 = vld [vmem:[%s4309_s14 + $0x40] sm:$0xff]  ;;  %vm1078_vm7 = vcmp.gt.s32.totalorder %v313_v22, 0  ;;  %v1093_v26 = vsel %vm1077_vm6, 1, %v4223_v3  ;;  %v294_v27 = vld [vmem:[%s4309_s14 + $0x48] sm:$0xff]  ;;  %vm1079_vm8 = vcmp.gt.s32.totalorder %v314_v24, 0  ;;  %v295_v29 = vld [vmem:[%s4309_s14 + $0x50] sm:$0xff] }
  0x1f   : > { %3782 = vmatprep.mubr.msk.f32.mxu0 %vm326_vm0, %v289_v8  ;;  %v303_v30 = vld [vmem:[%s4320_s17 + $0x10] sm:$0xff]  ;;  %v1094_v31 = vsel %vm1078_vm7, 1, %v4223_v3  ;;  %vm1080_vm9 = vcmp.gt.s32.totalorder %v315_v28, 0  ;;  %v1095_v32 = vsel %vm1079_vm8, 1, %v4223_v3  ;;  %v296_v33 = vld [vmem:[%s4309_s14 + $0x58] sm:$0xff]  ;;  %v297_v35 = vld [vmem:[%s4309_s14 + $0x60] sm:$0xff] }
  0x20   : > { %1126 = vperm.xlu1 %3941, %v1091_v20   ;;  %v316_v34 = vld [vmem:[%s4320_s17 + $0x78] sm:$0xff]  ;;  %vm1068_vm10 = vcmp.gt.s32.totalorder %v303_v30, 0  ;;  %v305_v36 = vld [vmem:[%s4320_s17 + $0x20] sm:$0xff]  ;;  %v1096_v37 = vsel %vm1080_vm9, 1, %v4223_v3  ;;  %v298_v39 = vld [vmem:[%s4309_s14 + $0x68] sm:$0xff]  ;;  %vm905_vm2 = vcmask 31744  }
  0x21   : > { %1123 = vperm.xlu0 %3942, %v1090_v19   ;;  %vm1081_vm11 = vcmp.gt.s32.totalorder %v316_v34, 0  ;;  %v1084_v38 = vsel %vm1068_vm10, 1, %v4223_v3  ;;  %v301_v40 = vld [vmem:[%s4320_s17] sm:$0xff]  ;;  %vm1070_vm12 = vcmp.gt.s32.totalorder %v305_v36, 0  ;;  %v299_v41 = vld [vmem:[%s4309_s14 + $0x70] sm:$0xff]  ;;  %v300_v44 = vld [vmem:[%s4309_s14 + $0x78] sm:$0xff] }
  0x22   : > { %3783 = vmatmul.mubr.msk.f32.gmra.mrb[4].mxu0 %vm326_vm0, %v290_v12  ;;  %v1097_v42 = vsel %vm1081_vm11, 1, %v4223_v3  ;;  %vm1066_vm13 = vcmp.gt.s32.totalorder %v301_v40, 0  ;;  %v1086_v43 = vsel %vm1070_vm12, 1, %v4223_v3  ;;  %v302_v45 = vld [vmem:[%s4320_s17 + $0x8] sm:$0xff]  ;;  %v304_v47 = vld [vmem:[%s4320_s17 + $0x18] sm:$0xff]  ;;  %s3540_s14 = sshll.u32 %s256_s11, 9 }
  0x23   : > { %3785 = vmatprep.mubr.msk.f32.mxu0 %vm326_vm0, %v291_v16  ;;  %v1082_v46 = vsel %vm1066_vm13, 1, %v4223_v3  ;;  %vm1067_vm14 = vcmp.gt.s32.totalorder %v302_v45, 0  ;;  %vm1069_vm15 = vcmp.gt.s32.totalorder %v304_v47, 0  ;;  %v306_v49 = vld [vmem:[%s4320_s17 + $0x28] sm:$0xff]  ;;  %s5872_s21 = scalar_lea.vmem [#allocation2], %s3540_s14 }
  0x24   : > { %1132 = vperm.xlu1 %3941, %v1093_v26   ;;  %v1083_v48 = vsel %vm1067_vm14, 1, %v4223_v3  ;;  %v1085_v50 = vsel %vm1069_vm15, 1, %v4223_v3  ;;  %vm1071_vm1 = vcmp.gt.s32.totalorder %v306_v49, 0 }
  0x25   : > { %1129 = vperm.xlu0 %3942, %v1092_v25   ;;  %v1087_v51 = vsel %vm1071_vm1, 1, %v4223_v3 }
  0x26   : > { %3786 = vmatmul.mubr.msk.f32.gmra.mrb[6].mxu0 %vm326_vm0, %v292_v21 }
  0x27   : > { %3788 = vmatprep.mubr.msk.f32.mxu0 %vm326_vm0, %v293_v23 }
  0x28   : > { %1138 = vperm.xlu1 %3941, %v1095_v32  }
  0x29   : > { %1135 = vperm.xlu0 %3942, %v1094_v31  }
  0x2a   : > { %3789 = vmatmul.mubr.msk.f32.gmra.mrb[8].mxu0 %vm326_vm0, %v294_v27 }
  0x2b   : > { %3791 = vmatprep.mubr.msk.f32.mxu0 %vm326_vm0, %v295_v29 }
  0x2c   : > { %1105 = vperm.xlu1 %3941, %v1084_v38  }
  0x2d   : > { %1141 = vperm.xlu0 %3942, %v1096_v37  }
  0x2e   : > { %3792 = vmatmul.mubr.msk.f32.gmra.mrb[10].mxu0 %vm326_vm0, %v296_v33 }
  0x2f   : > { %3794 = vmatprep.mubr.msk.f32.mxu0 %vm326_vm0, %v297_v35 }
  0x30   : > { %1111 = vperm.xlu1 %3941, %v1086_v43  }
  0x31   : > { %1144 = vperm.xlu0 %3942, %v1097_v42  }
  0x32   : > { %3795 = vmatmul.mubr.msk.f32.gmra.mrb[12].mxu0 %vm326_vm0, %v298_v39 }
  0x33   : > { %3797 = vmatprep.mubr.msk.f32.mxu0 %vm326_vm0, %v299_v41 }
  0x35   : > { %1099 = vperm.xlu0 %3942, %v1082_v46  }
  0x36   : > { %3798 = vmatmul.mubr.msk.f32.gmra.mrb[14].mxu0 %vm326_vm0, %v300_v44  ;;  %vm584_vm0 = vcmask 556544  }
  0x39   : > { %1102 = vperm.xlu0 %3942, %v1083_v48  }
  0x3d   : > { %1108 = vperm.xlu0 %3942, %v1085_v50  }
  0x41   : > { %1114 = vperm.xlu0 %3942, %v1087_v51  }
  0x9b   : > { %v4450_v29 = vpop.permute.xlu1 %1117 }
  0x9c   : > { %v4436_v25 = vpop.permute.xlu0 %1120  ;;  %vm1152_vm10 = vcmp.eq.s32.totalorder %v4450_v29, 1 }
  0x9d   : > { %vm1153_vm9 = vcmp.eq.s32.totalorder %v4436_v25, 1 }
  0x9f   : > { %v4456_v31 = vpop.permute.xlu1 %1126 }
  0xa0   : > { %v4440_v26 = vpop.permute.xlu0 %1123  ;;  %vm1155_vm11 = vcmp.eq.s32.totalorder %v4456_v31, 1 }
  0xa1   : > { %vm1154_vm12 = vcmp.eq.s32.totalorder %v4440_v26, 1 }
  0xa3   : > { %v4460_v33 = vpop.permute.xlu1 %1132 }
  0xa4   : > { %v4442_v27 = vpop.permute.xlu0 %1129  ;;  %vm1157_vm13 = vcmp.eq.s32.totalorder %v4460_v33, 1 }
  0xa5   : > { %vm1156_vm14 = vcmp.eq.s32.totalorder %v4442_v27, 1 }
  0xa7   : > { %v4468_v37 = vpop.permute.xlu1 %1138 }
  0xa8   : > { %v4446_v28 = vpop.permute.xlu0 %1135  ;;  %vm1159_vm15 = vcmp.eq.s32.totalorder %v4468_v37, 1 }
  0xa9   : > { %6316 = vst [vmem:[#allocation19_spill] sm:$0xff] %v4446_v28 }
  0xab   : > { %v4472_v39 = vpop.permute.xlu1 %1105 }
  0xac   : > { %v4452_v30 = vpop.permute.xlu0 %1141  ;;  %vm1148_vm6 = vcmp.eq.s32.totalorder %v4472_v39, 1 }
  0xad   : > { %6317 = vst [vmem:[#allocation20_spill] sm:$0xff] %v4452_v30 }
  0xaf   : > { %v4476_v41 = vpop.permute.xlu1 %1111 }
  0xb0   : > { %v4458_v32 = vpop.permute.xlu0 %1144  ;;  %vm1150_vm8 = vcmp.eq.s32.totalorder %v4476_v41, 1 }
  0xb1   : > { %6318 = vst [vmem:[#allocation21_spill] sm:$0xff] %v4458_v32 }
  0xb4   : > { %v4464_v35 = vpop.permute.xlu0 %1099 }
  0xb5   : > { %vm1146_vm4 = vcmp.eq.s32.totalorder %v4464_v35, 1 }
  0xb8   : > { %v4470_v38 = vpop.permute.xlu0 %1102 }
  0xb9   : > { %vm1147_vm3 = vcmp.eq.s32.totalorder %v4470_v38, 1 }
  0xbc   : > { %v4474_v40 = vpop.permute.xlu0 %1108 }
  0xbd   : > { %vm1149_vm5 = vcmp.eq.s32.totalorder %v4474_v40, 1 }
  0xc0   : > { %v4478_v42 = vpop.permute.xlu0 %1114 }
  0xc1   : > { %vm1151_vm7 = vcmp.eq.s32.totalorder %v4478_v42, 1 }
  0xed   : > { %v3778_v53 = vpop.f32.mrb[0].mxu0 }
  0xee   : > { %v4384_v54 = vadd.f32 %v3778_v53, %v3547_v52  ;;  %v441_v55 = vpop.f32.mrb[1].mxu0 }
  0xef   : > { %v4386_v56 = vadd.f32 %v3547_v52, %v441_v55 }
  0xf0   : > { %6300 = vst [vmem:[#allocation3_spill] sm:$0xff] %v4384_v54  ;;  %538 = vrot.lane.b32.xlu1 %v4384_v54, %s4224_s20  ;;  %v588_v20 = vsel %vm584_vm0, %v4384_v54, -inf }
  0xf1   : > { %6301 = vst [vmem:[#allocation4_spill] sm:$0xff] %v4386_v56  ;;  %v3781_v57 = vpop.f32.mrb[2].mxu0  ;;  %536 = vrot.lane.b32.xlu0 %v4386_v56, %s4224_s20  ;;  %v585_v21 = vsel %vm584_vm0, %v4386_v56, -inf }
  0xf2   : > { %v451_v58 = vpop.f32.mrb[3].mxu0  ;;  %v4434_v24 = vadd.f32 %v3781_v57, %v3547_v52 }
  0xf3   : > { %v4392_v59 = vadd.f32 %v3547_v52, %v451_v58 }
  0xf4   : > { %6315 = vst [vmem:[#allocation18_spill] sm:$0xff] %v4434_v24  ;;  %v594_v34 = vsel %vm584_vm0, %v4434_v24, -inf }
  0xf5   : > { %6302 = vst [vmem:[#allocation5_spill] sm:$0xff] %v4392_v59  ;;  %v3784_v60 = vpop.f32.mrb[4].mxu0  ;;  %540 = vrot.lane.b32.xlu0 %v4392_v59, %s4224_s20  ;;  %v591_v36 = vsel %vm584_vm0, %v4392_v59, -inf }
  0xf6   : > { %v4396_v61 = vadd.f32 %v3784_v60, %v3547_v52  ;;  %v461_v62 = vpop.f32.mrb[5].mxu0 }
  0xf7   : > { %v4398_v63 = vadd.f32 %v3547_v52, %v461_v62 }
  0xf8   : > { %6303 = vst [vmem:[#allocation6_spill] sm:$0xff] %v4396_v61  ;;  %v600_v47 = vsel %vm584_vm0, %v4396_v61, -inf }
  0xf9   : > { %6304 = vst [vmem:[#allocation7_spill] sm:$0xff] %v4398_v63  ;;  %544 = vrot.lane.b32.xlu0 %v4398_v63, %s4224_s20  ;;  %v3787_v0 = vpop.f32.mrb[6].mxu0  ;;  %v597_v48 = vsel %vm584_vm0, %v4398_v63, -inf }
  0xfa   : > { %v4402_v1 = vadd.f32 %v3787_v0, %v3547_v52  ;;  %v471_v2 = vpop.f32.mrb[7].mxu0 }
  0xfb   : > { %v4406_v3 = vadd.f32 %v3547_v52, %v471_v2 }
  0xfc   : > { %6305 = vst [vmem:[#allocation8_spill] sm:$0xff] %v4402_v1  ;;  %v606_v22 = vsel %vm584_vm0, %v4402_v1, -inf }
  0xfd   : > { %550 = vrot.lane.b32.xlu0 %v4402_v1, %s4224_s20  ;;  %6306 = vst [vmem:[#allocation9_spill] sm:$0xff] %v4406_v3  ;;  %v3790_v4 = vpop.f32.mrb[8].mxu0  ;;  %v603_v23 = vsel %vm584_vm0, %v4406_v3, -inf }
  0xfe   : > { %v4408_v5 = vadd.f32 %v3790_v4, %v3547_v52  ;;  %v481_v6 = vpop.f32.mrb[9].mxu0 }
  0xff   : > { %v4410_v7 = vadd.f32 %v3547_v52, %v481_v6 }
 0x100   : > { %6307 = vst [vmem:[#allocation10_spill] sm:$0xff] %v4408_v5  ;;  %v612_v57 = vsel %vm584_vm0, %v4408_v5, -inf }
 0x101   : > { %6308 = vst [vmem:[#allocation11_spill] sm:$0xff] %v4410_v7  ;;  %548 = vrot.lane.b32.xlu0 %v4406_v3, %s4224_s20  ;;  %v3793_v8 = vpop.f32.mrb[10].mxu0  ;;  %v609_v58 = vsel %vm584_vm0, %v4410_v7, -inf }
 0x102   : > { %v4414_v9 = vadd.f32 %v3793_v8, %v3547_v52  ;;  %v491_v10 = vpop.f32.mrb[11].mxu0 }
 0x103   : > { %v4416_v11 = vadd.f32 %v3547_v52, %v491_v10 }
 0x104   : > { %6309 = vst [vmem:[#allocation12_spill] sm:$0xff] %v4414_v9 }
 0x105   : > { %6310 = vst [vmem:[#allocation13_spill] sm:$0xff] %v4416_v11  ;;  %v3796_v12 = vpop.f32.mrb[12].mxu0 }
 0x106   : > { %v4418_v13 = vadd.f32 %v3796_v12, %v3547_v52  ;;  %v501_v14 = vpop.f32.mrb[13].mxu0  ;;  %v618_v12 = vsel %vm584_vm0, %v4414_v9, -inf }
 0x107   : > { %v4420_v15 = vadd.f32 %v3547_v52, %v501_v14  ;;  %v615_v14 = vsel %vm584_vm0, %v4416_v11, -inf }
 0x108   : > { %6311 = vst [vmem:[#allocation14_spill] sm:$0xff] %v4418_v13 }
 0x109   : > { %6312 = vst [vmem:[#allocation15_spill] sm:$0xff] %v4420_v15  ;;  %v3799_v16 = vpop.f32.mrb[14].mxu0 }
 0x10a   : > { %v4422_v17 = vadd.f32 %v3799_v16, %v3547_v52  ;;  %v511_v18 = vpop.f32.mrb[15].mxu0 }
 0x10b   : > { %v4424_v19 = vadd.f32 %v3547_v52, %v511_v18 }
 0x10c   : > { %6313 = vst [vmem:[#allocation16_spill] sm:$0xff] %v4422_v17 }
 0x10d   : > { %6314 = vst [vmem:[#allocation17_spill] sm:$0xff] %v4424_v19 }
 0x114   : > { %589 = vmax.xlane.f32.xlu1 %v588_v20 }
 0x118   : > { %586 = vmax.xlane.f32.xlu1 %v585_v21 }
 0x120   : > { %607 = vmax.xlane.f32.xlu0 %v606_v22 }
 0x124   : > { %604 = vmax.xlane.f32.xlu0 %v603_v23 }
 0x129   : > { %542 = vrot.lane.b32.xlu1 %v4434_v24, %s4224_s20 }
 0x13a   : > { %556 = vrot.lane.b32.xlu0 %v4416_v11, %s4224_s20 }
 0x13e   : > { %560 = vrot.lane.b32.xlu0 %v4420_v15, %s4224_s20 }
 0x142   : > { %564 = vrot.lane.b32.xlu0 %v4424_v19, %s4224_s20 }
 0x14d   : > { %595 = vmax.xlane.f32.xlu1 %v594_v34  ;;  %v624_v34 = vsel %vm584_vm0, %v4418_v13, -inf }
 0x151   : > { %592 = vmax.xlane.f32.xlu1 %v591_v36  ;;  %v621_v36 = vsel %vm584_vm0, %v4420_v15, -inf }
 0x162   : > { %v4480_v43 = vpop.permute.xlu1 %538  ;;  %546 = vrot.lane.b32.xlu1 %v4396_v61, %s4224_s20 }
 0x163   : > { %v636_v44 = vsel %vm584_vm0, %v4480_v43, -inf  ;;  %v4486_v45 = vpop.permute.xlu0 %536 }
 0x164   : > { %637 = vmax.xlane.f32.xlu0 %v636_v44  ;;  %v633_v46 = vsel %vm584_vm0, %v4486_v45, -inf }
 0x167   : > { %v4504_v53 = vpop.permute.xlu0 %540 }
 0x168   : > { %634 = vmax.xlane.f32.xlu0 %v633_v46  ;;  %v639_v55 = vsel %vm584_vm0, %v4504_v53, -inf }
 0x16b   : > { %v4518_v0 = vpop.permute.xlu0 %544 }
 0x16c   : > { %v645_v6 = vsel %vm584_vm0, %v4518_v0, -inf }
 0x16f   : > { %v4526_v8 = vpop.permute.xlu0 %550 }
 0x170   : > { %v654_v10 = vsel %vm584_vm0, %v4526_v8, -inf }
 0x173   : > { %v4554_v44 = vpop.permute.xlu0 %548 }
 0x186   : > { %601 = vmax.xlane.f32.xlu1 %v600_v47 }
 0x18a   : > { %598 = vmax.xlane.f32.xlu1 %v597_v48 }
 0x19b   : > { %554 = vrot.lane.b32.xlu1 %v4408_v5, %s4224_s20 }
 0x19f   : > { %552 = vrot.lane.b32.xlu1 %v4410_v7, %s4224_s20 }
 0x1a1   : > { %v4498_v49 = vpop.xlane.xlu1 %589 }
 0x1a5   : > { %v587_v50 = vpop.xlane.xlu1 %586 }
 0x1a9   : > { %v4500_v51 = vpop.permute.xlu1 %542 }
 0x1aa   : > { %v642_v52 = vsel %vm584_vm0, %v4500_v51, -inf }
 0x1ab   : > { %643 = vmax.xlane.f32.xlu0 %v642_v52 }
 0x1ad   : > { %v608_v47 = vpop.xlane.xlu0 %607 }
 0x1af   : > { %640 = vmax.xlane.f32.xlu0 %v639_v55 }
 0x1b1   : > { %v4556_v52 = vpop.xlane.xlu0 %604 }
 0x1c3   : > { %613 = vmax.xlane.f32.xlu1 %v612_v57 }
 0x1c7   : > { %610 = vmax.xlane.f32.xlu1 %v609_v58  ;;  %v4562_v58 = vpop.permute.xlu0 %556 }
 0x1d8   : > { %558 = vrot.lane.b32.xlu1 %v4414_v9, %s4224_s20 }
 0x1da   : > { %v4514_v60 = vpop.xlane.xlu1 %595 }
 0x1de   : > { %v4516_v62 = vpop.xlane.xlu1 %592 }
 0x1e2   : > { %v4520_v2 = vpop.permute.xlu1 %546 }
 0x1e3   : > { %v648_v4 = vsel %vm584_vm0, %v4520_v2, -inf }
 0x1e4   : > { %649 = vmax.xlane.f32.xlu0 %v648_v4  ;;  %v663_v4 = vsel %vm584_vm0, %v4562_v58, -inf }
 0x1e8   : > { %646 = vmax.xlane.f32.xlu0 %v645_v6  ;;  %v630_v6 = vsel %vm584_vm0, %v4422_v17, -inf }
 0x1ec   : > { %655 = vmax.xlane.f32.xlu0 %v654_v10  ;;  %v627_v10 = vsel %vm584_vm0, %v4424_v19, -inf }
 0x1fc   : > { %619 = vmax.xlane.f32.xlu1 %v618_v12  ;;  %v681_v12 = vsub.f32 %v4386_v56, %v587_v50 }
 0x200   : > { %616 = vmax.xlane.f32.xlu1 %v615_v14  ;;  %v651_v14 = vsel %vm584_vm0, %v4554_v44, -inf }
 0x211   : > { %562 = vrot.lane.b32.xlu1 %v4418_v13, %s4224_s20 }
 0x213   : > { %v4536_v16 = vpop.xlane.xlu1 %601 }
 0x217   : > { %v4538_v18 = vpop.xlane.xlu1 %598 }
 0x21b   : > { %v4540_v20 = vpop.permute.xlu1 %554 }
 0x21c   : > { %v660_v21 = vsel %vm584_vm0, %v4540_v20, -inf }
 0x21d   : > { %661 = vmax.xlane.f32.xlu0 %v660_v21  ;;  %v713_v21 = vmul.f32 1.442695, %v681_v12 }
 0x21f   : > { %v4544_v22 = vpop.permute.xlu1 %552  ;;  %3943 = vpow2.f32 %v713_v21 }
 0x220   : > { %v657_v23 = vsel %vm584_vm0, %v4544_v22, -inf }
 0x221   : > { %658 = vmax.xlane.f32.xlu0 %v657_v23  ;;  %v688_v23 = vsub.f32 %v4402_v1, %v608_v47 }
 0x235   : > { %625 = vmax.xlane.f32.xlu1 %v624_v34  ;;  %v727_v34 = vmul.f32 1.442695, %v688_v23 }
 0x237   : > { %3945 = vpow2.f32 %v727_v34 }
 0x239   : > { %622 = vmax.xlane.f32.xlu1 %v621_v36 }
 0x24a   : > { %566 = vrot.lane.b32.xlu1 %v4422_v17, %s4224_s20 }
 0x250   : > { %v614_v46 = vpop.xlane.xlu1 %613 }
 0x251   : > { %v690_v36 = vsub.f32 %v4408_v5, %v614_v46 }
 0x254   : > { %v611_v48 = vpop.xlane.xlu1 %610 }
 0x258   : > { %v4558_v55 = vpop.permute.xlu1 %558 }
 0x259   : > { %v666_v57 = vsel %vm584_vm0, %v4558_v55, -inf }
 0x25a   : > { %667 = vmax.xlane.f32.xlu0 %v666_v57  ;;  %v731_v57 = vmul.f32 1.442695, %v690_v36 }
 0x25c   : > { %3947 = vpow2.f32 %v731_v57 }
 0x25e   : > { %664 = vmax.xlane.f32.xlu0 %v663_v4  ;;  %v689_v4 = vsub.f32 %v4410_v7, %v611_v48 }
 0x26e   : > { %631 = vmax.xlane.f32.xlu1 %v630_v6  ;;  %v729_v6 = vmul.f32 1.442695, %v689_v4  ;;  %v4598_v4 = vpop.permute.xlu0 %560 }
 0x270   : > { %3949 = vpow2.f32 %v729_v6  ;;  %v669_v6 = vsel %vm584_vm0, %v4598_v4, -inf }
 0x272   : > { %628 = vmax.xlane.f32.xlu1 %v627_v10  ;;  %v4576_v10 = vpop.eup %3943  ;;  %v4616_v7 = vpop.permute.xlu0 %564 }
 0x273   : > { %v4580_v12 = vpop.eup %3945  ;;  %v675_v5 = vsel %vm584_vm0, %v4616_v7, -inf }
 0x274   : > { %v4585_v48 = vpop.eup %3947 }
 0x276   : > { %652 = vmax.xlane.f32.xlu1 %v651_v14 }
 0x27a   : > { %v4592_v36 = vpop.eup %3949 }
 0x287   : > { %809 = vrot.lane.b32.xlu1 %v4576_v10, %s4225_s23 }
 0x289   : > { %v620_v50 = vpop.xlane.xlu1 %619 }
 0x28a   : > { %v692_v47 = vsub.f32 %v4414_v9, %v620_v50 }
 0x28b   : > { %823 = vrot.lane.b32.xlu1 %v4580_v12, %s4225_s23 }
 0x28c   : > { %v735_v46 = vmul.f32 1.442695, %v692_v47 }
 0x28d   : > { %v617_v14 = vpop.xlane.xlu1 %616 }
 0x28e   : > { %3951 = vpow2.f32 %v735_v46  ;;  %v691_v21 = vsub.f32 %v4416_v11, %v617_v14 }
 0x28f   : > { %827 = vrot.lane.b32.xlu1 %v4585_v48, %s4225_s23 }
 0x290   : > { %v733_v23 = vmul.f32 1.442695, %v691_v21 }
 0x291   : > { %v4590_v34 = vpop.permute.xlu1 %562 }
 0x292   : > { %3953 = vpow2.f32 %v733_v23  ;;  %v672_v57 = vsel %vm584_vm0, %v4590_v34, -inf }
 0x293   : > { %825 = vrot.lane.b32.xlu1 %v4592_v36, %s4225_s23  ;;  %673 = vmax.xlane.f32.xlu0 %v672_v57 }
 0x297   : > { %670 = vmax.xlane.f32.xlu0 %v669_v6 }
 0x298   : > { %v4602_v50 = vpop.eup %3951 }
 0x299   : > { %831 = vrot.lane.b32.xlu1 %v4602_v50, %s4225_s23 }
 0x29c   : > { %v4606_v47 = vpop.eup %3953 }
 0x29d   : > { %829 = vrot.lane.b32.xlu1 %v4606_v47, %s4225_s23 }
 0x2c2   : > { %v626_v46 = vpop.xlane.xlu1 %625 }
 0x2c3   : > { %v694_v14 = vsub.f32 %v4418_v13, %v626_v46  ;;  %v685_v13 = vsub.f32 %v4398_v63, %v4538_v18 }
 0x2c5   : > { %v739_v21 = vmul.f32 1.442695, %v694_v14  ;;  %v682_v14 = vsub.f32 %v4384_v54, %v4498_v49 }
 0x2c6   : > { %v623_v23 = vpop.xlane.xlu1 %622 }
 0x2c7   : > { %3955 = vpow2.f32 %v739_v21  ;;  %v693_v57 = vsub.f32 %v4420_v15, %v623_v23  ;;  %v686_v15 = vsub.f32 %v4396_v61, %v4536_v16 }
 0x2c9   : > { %v737_v11 = vmul.f32 1.442695, %v693_v57  ;;  %v723_v49 = vmul.f32 1.442695, %v686_v15 }
 0x2ca   : > { %v4612_v6 = vpop.permute.xlu1 %566 }
 0x2cb   : > { %3957 = vpow2.f32 %v737_v11  ;;  %v678_v9 = vsel %vm584_vm0, %v4612_v6, -inf  ;;  %v684_v11 = vsub.f32 %v4434_v24, %v4514_v60  ;;  %v687_v60 = vsub.f32 %v4406_v3, %v4556_v52 }
 0x2cc   : > { %679 = vmax.xlane.f32.xlu0 %v678_v9  ;;  %v715_v9 = vmul.f32 1.442695, %v682_v14 }
 0x2cd   : > { %v719_v23 = vmul.f32 1.442695, %v684_v11  ;;  %v725_v16 = vmul.f32 1.442695, %v687_v60 }
 0x2ce   : > { %3959 = vpow2.f32 %v715_v9  ;;  %v638_v9 = vpop.xlane.xlu0 %637 }
 0x2cf   : > { %3961 = vpow2.f32 %v719_v23  ;;  %v698_v60 = vsub.f32 %v4480_v43, %v638_v9 }
 0x2d0   : > { %676 = vmax.xlane.f32.xlu0 %v675_v5  ;;  %v683_v5 = vsub.f32 %v4392_v59, %v4516_v62  ;;  %v721_v62 = vmul.f32 1.442695, %v685_v13 }
 0x2d1   : > { %v4620_v46 = vpop.eup %3955  ;;  %v747_v63 = vmul.f32 1.442695, %v698_v60 }
 0x2d2   : > { %835 = vrot.lane.b32.xlu1 %v4620_v46, %s4225_s23  ;;  %v717_v57 = vmul.f32 1.442695, %v683_v5 }
 0x2d4   : > { %3963 = vpow2.f32 %v717_v57  ;;  %v635_v57 = vpop.xlane.xlu0 %634 }
 0x2d5   : > { %v4626_v21 = vpop.eup %3957  ;;  %3965 = vpow2.f32 %v723_v49  ;;  %v697_v61 = vsub.f32 %v4486_v45, %v635_v57 }
 0x2d6   : > { %833 = vrot.lane.b32.xlu1 %v4626_v21, %s4225_s23  ;;  %3967 = vpow2.f32 %v721_v62 }
 0x2d7   : > { %3969 = vpow2.f32 %v725_v16  ;;  %v745_v59 = vmul.f32 1.442695, %v697_v61 }
 0x2d8   : > { %v4638_v1 = vpop.eup %3959  ;;  %v644_v3 = vpop.xlane.xlu0 %643 }
 0x2d9   : > { %v4644_v14 = vpop.eup %3961 }
 0x2dc   : > { %v641_v24 = vpop.xlane.xlu0 %640 }
 0x2de   : > { %v4648_v15 = vpop.eup %3963 }
 0x2df   : > { %v4652_v18 = vpop.eup %3965 }
 0x2e0   : > { %v4656_v52 = vpop.eup %3967 }
 0x2e1   : > { %v4660_v13 = vpop.eup %3969 }
 0x2e6   : > { %811 = vrot.lane.b32.xlu0 %v4638_v1, %s4225_s23 }
 0x2ea   : > { %815 = vrot.lane.b32.xlu0 %v4644_v14, %s4225_s23 }
 0x2ee   : > { %813 = vrot.lane.b32.xlu0 %v4648_v15, %s4225_s23 }
 0x2f2   : > { %819 = vrot.lane.b32.xlu0 %v4652_v18, %s4225_s23 }
 0x2f6   : > { %817 = vrot.lane.b32.xlu0 %v4656_v52, %s4225_s23 }
 0x2fa   : > { %821 = vrot.lane.b32.xlu0 %v4660_v13, %s4225_s23 }
 0x2fb   : > { %v632_v11 = vpop.xlane.xlu1 %631 }
 0x2fc   : > { %v696_v23 = vsub.f32 %v4422_v17, %v632_v11  ;;  %v4672_v11 = vpop.xlane.xlu0 %649 }
 0x2fe   : > { %v743_v5 = vmul.f32 1.442695, %v696_v23 }
 0x2ff   : > { %v629_v49 = vpop.xlane.xlu1 %628 }
 0x300   : > { %3971 = vpow2.f32 %v743_v5  ;;  %v695_v62 = vsub.f32 %v4424_v19, %v629_v49 }
 0x302   : > { %v741_v16 = vmul.f32 1.442695, %v695_v62 }
 0x303   : > { %v4676_v9 = vpop.xlane.xlu1 %652 }
 0x304   : > { %3973 = vpow2.f32 %v741_v16 }
 0x305   : > { %3975 = vpow2.f32 %v747_v63  ;;  %v4682_v63 = vpop.xlane.xlu0 %646 }
 0x306   : > { %3977 = vpow2.f32 %v745_v59 }
 0x307   : > { %v810_v61 = vpop.permute.xlu1 %809 }
 0x308   : > { %v906_v59 = vsel %vm905_vm2, %v810_v61, 0.0 }
 0x309   : > { %v656_v5 = vpop.xlane.xlu0 %655 }
 0x30a   : > { %v4668_v56 = vpop.eup %3971  ;;  %v704_v57 = vsub.f32 %v4526_v8, %v656_v5  ;;  %v700_v8 = vsub.f32 %v4500_v51, %v644_v3 }
 0x30b   : > { %6319 = vst [vmem:[#allocation22_spill] sm:$0xff] %v4668_v56  ;;  %839 = vrot.lane.b32.xlu1 %v4668_v56, %s4225_s23  ;;  %v824_v17 = vpop.permute.xlu1 %823 }
 0x30c   : > { %v759_v49 = vmul.f32 1.442695, %v704_v57 }
 0x30d   : > { %v662_v62 = vpop.xlane.xlu0 %661 }
 0x30e   : > { %v4674_v43 = vpop.eup %3973  ;;  %3979 = vpow2.f32 %v759_v49  ;;  %v751_v49 = vmul.f32 1.442695, %v700_v8 }
 0x30f   : > { %6320 = vst [vmem:[#allocation23_spill] sm:$0xff] %v4674_v43  ;;  %837 = vrot.lane.b32.xlu1 %v4674_v43, %s4225_s23  ;;  %v4680_v45 = vpop.eup %3975 }
 0x310   : > { %6321 = vst [vmem:[#allocation24_spill] sm:$0xff] %v4680_v45  ;;  %v4686_v23 = vpop.eup %3977  ;;  %3981 = vpow2.f32 %v751_v49 }
 0x311   : > { %6322 = vst [vmem:[#allocation25_spill] sm:$0xff] %v4686_v23  ;;  %v659_v16 = vpop.xlane.xlu0 %658 }
 0x313   : > { %843 = vrot.lane.b32.xlu1 %v4680_v45, %s4225_s23  ;;  %v927_v45 = vsel %vm905_vm2, %v824_v17, 0.0 }
 0x315   : > { %v668_v19 = vpop.xlane.xlu0 %667 }
 0x317   : > { %841 = vrot.lane.b32.xlu1 %v4686_v23, %s4225_s23 }
 0x318   : > { %v4692_v60 = vpop.eup %3979 }
 0x319   : > { %907 = vadd.xlane.f32.xlu0 %v906_v59  ;;  %6323 = vst [vmem:[#allocation26_spill] sm:$0xff] %v4692_v60  ;;  %v665_v54 = vpop.xlane.xlu0 %664 }
 0x31a   : > { %v4704_v28 = vpop.eup %3981  ;;  %v707_v49 = vsub.f32 %v4562_v58, %v665_v54 }
 0x31b   : > { %6324 = vst [vmem:[#allocation27_spill] sm:$0xff] %v4704_v28 }
 0x320   : > { %v674_v61 = vpop.xlane.xlu0 %673 }
 0x324   : > { %v671_v30 = vpop.xlane.xlu0 %670 }
 0x32f   : > { %855 = vrot.lane.b32.xlu0 %v4692_v60, %s4225_s23  ;;  %v699_v60 = vsub.f32 %v4504_v53, %v641_v24  ;;  %v706_v24 = vsub.f32 %v4540_v20, %v662_v62  ;;  %v705_v53 = vsub.f32 %v4544_v22, %v659_v16  ;;  %v709_v22 = vsub.f32 %v4598_v4, %v671_v30 }
 0x331   : > { %v749_v32 = vmul.f32 1.442695, %v699_v60  ;;  %v761_v60 = vmul.f32 1.442695, %v705_v53  ;;  %v769_v54 = vmul.f32 1.442695, %v709_v22  ;;  %v701_v53 = vsub.f32 %v4518_v0, %v4682_v63 }
 0x333   : > { %3983 = vpow2.f32 %v749_v32  ;;  %v763_v32 = vmul.f32 1.442695, %v706_v24 }
 0x335   : > { %3985 = vpow2.f32 %v763_v32 }
 0x336   : > { %3987 = vpow2.f32 %v761_v60 }
 0x33d   : > { %v4709_v8 = vpop.eup %3983 }
 0x34e   : > { %928 = vadd.xlane.f32.xlu0 %v927_v45 }
 0x359   : > { %v680_v59 = vpop.xlane.xlu0 %679 }
 0x35d   : > { %v677_v43 = vpop.xlane.xlu0 %676 }
 0x35e   : > { %v711_v30 = vsub.f32 %v4616_v7, %v677_v43 }
 0x361   : > { %v812_v5 = vpop.permute.xlu0 %811 }
 0x362   : > { %v909_v57 = vsel %vm905_vm2, %v812_v5, 0.0  ;;  %v708_v5 = vsub.f32 %v4558_v55, %v668_v19  ;;  %v4727_v19 = vpop.permute.xlu1 %827  ;;  %v712_v55 = vsub.f32 %v4612_v6, %v680_v59  ;;  %v702_v59 = vsub.f32 %v4520_v2, %v4672_v11 }
 0x363   : > { %910 = vadd.xlane.f32.xlu1 %v909_v57  ;;  %v753_v2 = vmul.f32 1.442695, %v701_v53 }
 0x364   : > { %v767_v57 = vmul.f32 1.442695, %v708_v5 }
 0x365   : > { %v816_v23 = vpop.permute.xlu0 %815 }
 0x366   : > { %3989 = vpow2.f32 %v767_v57  ;;  %v826_v16 = vpop.permute.xlu1 %825  ;;  %v915_v24 = vsel %vm905_vm2, %v816_v23, 0.0  ;;  %v755_v23 = vmul.f32 1.442695, %v702_v59 }
 0x369   : > { %v814_v56 = vpop.permute.xlu0 %813 }
 0x36a   : > { %v832_v7 = vpop.permute.xlu1 %831  ;;  %v912_v43 = vsel %vm905_vm2, %v814_v56, 0.0 }
 0x36b   : > { %v939_v53 = vsel %vm905_vm2, %v832_v7, 0.0 }
 0x36d   : > { %v4700_v17 = vpop.permute.xlu0 %819 }
 0x36e   : > { %v830_v5 = vpop.permute.xlu1 %829 }
 0x371   : > { %v4702_v45 = vpop.permute.xlu0 %817 }
 0x372   : > { %v836_v56 = vpop.permute.xlu1 %835 }
 0x374   : > { %847 = vrot.lane.b32.xlu1 %v4704_v28, %s4225_s23  ;;  %v4718_v28 = vpop.eup %3985 }
 0x375   : > { %v822_v3 = vpop.permute.xlu0 %821  ;;  %v4723_v62 = vpop.eup %3987 }
 0x376   : > { %v924_v51 = vsel %vm905_vm2, %v822_v3, 0.0  ;;  %v765_v3 = vmul.f32 1.442695, %v707_v49  ;;  %v4730_v58 = vpop.eup %3989  ;;  %v834_v57 = vpop.permute.xlu1 %833 }
 0x377   : > { %925 = vadd.xlane.f32.xlu0 %v924_v51  ;;  %v710_v51 = vsub.f32 %v4590_v34, %v674_v61  ;;  %v775_v34 = vmul.f32 1.442695, %v712_v55  ;;  %v773_v61 = vmul.f32 1.442695, %v711_v30  ;;  %v703_v55 = vsub.f32 %v4554_v44, %v4676_v9 }
 0x378   : > { %845 = vrot.lane.b32.xlu1 %v4709_v8, %s4225_s23  ;;  %3991 = vpow2.f32 %v765_v3  ;;  %v933_v44 = vsel %vm905_vm2, %v4727_v19, 0.0  ;;  %v930_v9 = vsel %vm905_vm2, %v826_v16, 0.0 }
 0x379   : > { %v771_v20 = vmul.f32 1.442695, %v710_v51  ;;  %v757_v30 = vmul.f32 1.442695, %v703_v55  ;;  %v942_v55 = vsel %vm905_vm2, %v834_v57, 0.0 }
 0x37b   : > { %3993 = vpow2.f32 %v771_v20 }
 0x37c   : > { %3995 = vpow2.f32 %v769_v54  ;;  %v921_v54 = vsel %vm905_vm2, %v4700_v17, 0.0 }
 0x37d   : > { %3997 = vpow2.f32 %v775_v34  ;;  %v840_v0 = vpop.permute.xlu1 %839  ;;  %v918_v34 = vsel %vm905_vm2, %v4702_v45, 0.0 }
 0x37e   : > { %3999 = vpow2.f32 %v773_v61 }
 0x37f   : > { %4001 = vpow2.f32 %v755_v23 }
 0x380   : > { %4003 = vpow2.f32 %v753_v2  ;;  %v936_v2 = vsel %vm905_vm2, %v830_v5, 0.0 }
 0x381   : > { %v838_v3 = vpop.permute.xlu1 %837  ;;  %4005 = vpow2.f32 %v757_v30 }
 0x382   : > { %v4735_v4 = vpop.eup %3991  ;;  %v948_v5 = vsel %vm905_vm2, %v838_v3, 0.0 }
 0x385   : > { %v4740_v6 = vpop.eup %3993  ;;  %v844_v51 = vpop.permute.xlu1 %843 }
 0x386   : > { %v4747_v32 = vpop.eup %3995 }
 0x387   : > { %v4753_v60 = vpop.eup %3997 }
 0x388   : > { %v4757_v11 = vpop.eup %3999 }
 0x389   : > { %v4761_v49 = vpop.eup %4001  ;;  %v842_v20 = vpop.permute.xlu1 %841 }
 0x38a   : > { %v4765_v63 = vpop.eup %4003  ;;  %v954_v22 = vsel %vm905_vm2, %v842_v20, 0.0 }
 0x38b   : > { %v4776_v61 = vpop.eup %4005 }
 0x38d   : > { %859 = vrot.lane.b32.xlu0 %v4718_v28, %s4225_s23 }
 0x391   : > { %857 = vrot.lane.b32.xlu0 %v4723_v62, %s4225_s23 }
 0x395   : > { %863 = vrot.lane.b32.xlu0 %v4730_v58, %s4225_s23 }
 0x399   : > { %861 = vrot.lane.b32.xlu0 %v4735_v4, %s4225_s23 }
 0x39c   : > { %916 = vadd.xlane.f32.xlu1 %v915_v24 }
 0x39d   : > { %867 = vrot.lane.b32.xlu0 %v4740_v6, %s4225_s23 }
 0x3a0   : > { %913 = vadd.xlane.f32.xlu1 %v912_v43 }
 0x3a1   : > { %865 = vrot.lane.b32.xlu0 %v4747_v32, %s4225_s23 }
 0x3a5   : > { %871 = vrot.lane.b32.xlu0 %v4753_v60, %s4225_s23 }
 0x3a6   : > { %v908_v45 = vpop.xlane.xlu0 %907 }
 0x3a9   : > { %869 = vrot.lane.b32.xlu0 %v4757_v11, %s4225_s23 }
 0x3aa   : > { %v856_v20 = vpop.permute.xlu0 %855 }
 0x3b1   : > { %851 = vrot.lane.b32.xlu1 %v4761_v49, %s4225_s23 }
 0x3b5   : > { %849 = vrot.lane.b32.xlu1 %v4765_v63, %s4225_s23 }
 0x3c8   : > { %955 = vadd.xlane.f32.xlu0 %v954_v22  ;;  %v945_v22 = vsel %vm905_vm2, %v836_v56, 0.0  ;;  %v957_v56 = vsel %vm905_vm2, %v844_v51, 0.0 }
 0x3d9   : > { %922 = vadd.xlane.f32.xlu1 %v921_v54 }
 0x3db   : > { %v4788_v54 = vpop.xlane.xlu0 %928 }
 0x3dd   : > { %919 = vadd.xlane.f32.xlu1 %v918_v34  ;;  %v951_v34 = vsel %vm905_vm2, %v840_v0, 0.0  ;;  %v975_v0 = vsel %vm905_vm2, %v856_v20, 0.0 }
 0x3ee   : > { %853 = vrot.lane.b32.xlu1 %v4776_v61, %s4225_s23 }
 0x3f0   : > { %v911_v24 = vpop.xlane.xlu1 %910 }
 0x3f1   : > { %4007 = vrcp.f32 %v911_v24 }
 0x3f2   : > { %4009 = vrcp.f32 %v908_v45 }
 0x3f4   : > { %v848_v59 = vpop.permute.xlu1 %847 }
 0x3f5   : > { %v963_v43 = vsel %vm905_vm2, %v848_v59, 0.0 }
 0x3f6   : > { %964 = vadd.xlane.f32.xlu0 %v963_v43 }
 0x3f8   : > { %v846_v17 = vpop.permute.xlu1 %845 }
 0x3f9   : > { %v960_v23 = vsel %vm905_vm2, %v846_v17, 0.0 }
 0x3fa   : > { %961 = vadd.xlane.f32.xlu0 %v960_v23 }
 0x404   : > { %v4791_v19 = vpop.xlane.xlu0 %925 }
 0x408   : > { %v860_v7 = vpop.permute.xlu0 %859 }
 0x40c   : > { %v858_v17 = vpop.permute.xlu0 %857 }
 0x412   : > { %934 = vadd.xlane.f32.xlu1 %v933_v44  ;;  %v864_v44 = vpop.permute.xlu0 %863 }
 0x416   : > { %931 = vadd.xlane.f32.xlu1 %v930_v9  ;;  %v981_v9 = vsel %vm905_vm2, %v860_v7, 0.0  ;;  %v862_v3 = vpop.permute.xlu0 %861 }
 0x41a   : > { %940 = vadd.xlane.f32.xlu1 %v939_v53  ;;  %v978_v53 = vsel %vm905_vm2, %v858_v17, 0.0  ;;  %v868_v51 = vpop.permute.xlu0 %867 }
 0x41e   : > { %937 = vadd.xlane.f32.xlu1 %v936_v2  ;;  %v987_v2 = vsel %vm905_vm2, %v864_v44, 0.0 }
 0x422   : > { %946 = vadd.xlane.f32.xlu1 %v945_v22  ;;  %v984_v22 = vsel %vm905_vm2, %v862_v3, 0.0 }
 0x426   : > { %943 = vadd.xlane.f32.xlu1 %v942_v55  ;;  %v866_v55 = vpop.permute.xlu0 %865 }
 0x429   : > { %v917_v16 = vpop.xlane.xlu1 %916 }
 0x42a   : > { %952 = vadd.xlane.f32.xlu1 %v951_v34  ;;  %v993_v34 = vsel %vm905_vm2, %v868_v51, 0.0  ;;  %v872_v20 = vpop.permute.xlu0 %871  ;;  %4011 = vrcp.f32 %v917_v16 }
 0x42b   : > { %v999_v7 = vsel %vm905_vm2, %v872_v20, 0.0 }
 0x42d   : > { %v914_v30 = vpop.xlane.xlu1 %913 }
 0x42e   : > { %949 = vadd.xlane.f32.xlu1 %v948_v5  ;;  %v990_v5 = vsel %vm905_vm2, %v866_v55, 0.0  ;;  %4013 = vrcp.f32 %v914_v30 }
 0x431   : > { %v852_v59 = vpop.permute.xlu1 %851 }
 0x432   : > { %958 = vadd.xlane.f32.xlu1 %v957_v56  ;;  %v969_v43 = vsel %vm905_vm2, %v852_v59, 0.0  ;;  %v870_v59 = vpop.permute.xlu0 %869 }
 0x433   : > { %970 = vadd.xlane.f32.xlu0 %v969_v43  ;;  %v996_v56 = vsel %vm905_vm2, %v870_v59, 0.0  ;;  %v4008_v43 = vpop.eup %4007 }
 0x434   : > { %v4010_v17 = vpop.eup %4009 }
 0x435   : > { %v850_v57 = vpop.permute.xlu1 %849  ;;  %v4012_v45 = vpop.eup %4011 }
 0x436   : > { %v966_v23 = vsel %vm905_vm2, %v850_v57, 0.0  ;;  %v1035_v57 = vmul.f32 %v4008_v43, %v4638_v1  ;;  %v1037_v1 = vmul.f32 %v4012_v45, %v4644_v14 }
 0x437   : > { %967 = vadd.xlane.f32.xlu0 %v966_v23  ;;  %v1034_v23 = vmul.f32 %v4010_v17, %v4576_v10 }
 0x438   : > { %v4812_v24 = vsel %vm1147_vm3, 0.25, %v1035_v57  ;;  %v4014_v10 = vpop.eup %4013 }
 0x439   : > { %v1307_v16 = vadd.f32 1e-06, %v4812_v24  ;;  %v4818_v30 = vsel %vm1146_vm4, 0.25, %v1034_v23 }
 0x43b   : > { %976 = vadd.xlane.f32.xlu0 %v975_v0 }
 0x43f   : > { %982 = vadd.xlane.f32.xlu0 %v981_v9  ;;  %v1306_v9 = vadd.f32 1e-06, %v4818_v30 }
 0x443   : > { %979 = vadd.xlane.f32.xlu0 %v978_v53  ;;  %v1036_v53 = vmul.f32 %v4014_v10, %v4648_v15 }
 0x445   : > { %v4836_v15 = vsel %vm1148_vm6, 0.25, %v1036_v53 }
 0x447   : > { %988 = vadd.xlane.f32.xlu0 %v987_v2  ;;  %v4828_v2 = vsel %vm1149_vm5, 0.25, %v1037_v1 }
 0x44b   : > { %985 = vadd.xlane.f32.xlu0 %v984_v22 }
 0x44f   : > { %994 = vadd.xlane.f32.xlu0 %v993_v34  ;;  %v1308_v34 = vadd.f32 1e-06, %v4836_v15 }
 0x453   : > { %991 = vadd.xlane.f32.xlu0 %v990_v5 }
 0x457   : > { %1000 = vadd.xlane.f32.xlu0 %v999_v7 }
 0x45b   : > { %997 = vadd.xlane.f32.xlu0 %v996_v56 }
 0x466   : > { %v923_v44 = vpop.xlane.xlu1 %922 }
 0x467   : > { %4015 = vrcp.f32 %v923_v44 }
 0x46a   : > { %v920_v0 = vpop.xlane.xlu1 %919 }
 0x46b   : > { %4017 = vrcp.f32 %v920_v0 }
 0x46c   : > { %4019 = vrcp.f32 %v4788_v54  ;;  %v1309_v54 = vadd.f32 1e-06, %v4828_v2 }
 0x46d   : > { %4021 = vlog2.f32 %v1307_v16 }
 0x46e   : > { %v854_v3 = vpop.permute.xlu1 %853  ;;  %4023 = vlog2.f32 %v1306_v9 }
 0x46f   : > { %v972_v51 = vsel %vm905_vm2, %v854_v3, 0.0  ;;  %4025 = vrcp.f32 %v4791_v19 }
 0x470   : > { %973 = vadd.xlane.f32.xlu1 %v972_v51  ;;  %4027 = vlog2.f32 %v1309_v54 }
 0x471   : > { %v4016_v14 = vpop.eup %4015  ;;  %4029 = vlog2.f32 %v1308_v34 }
 0x472   : > { %v1039_v22 = vmul.f32 %v4016_v14, %v4652_v18 }
 0x474   : > { %v4843_v19 = vsel %vm1151_vm7, 0.25, %v1039_v22 }
 0x475   : > { %v4018_v55 = vpop.eup %4017  ;;  %v1311_v18 = vadd.f32 1e-06, %v4843_v19 }
 0x476   : > { %v4020_v20 = vpop.eup %4019  ;;  %v1038_v5 = vmul.f32 %v4018_v55, %v4656_v52 }
 0x477   : > { %v4022_v7 = vpop.eup %4021  ;;  %v1041_v56 = vmul.f32 %v4020_v20, %v4580_v12  ;;  %4031 = vlog2.f32 %v1311_v18 }
 0x478   : > { %v4024_v59 = vpop.eup %4023  ;;  %v1341_v43 = vmul.f32 0.6931472, %v4022_v7  ;;  %v4850_v17 = vsel %vm1150_vm8, 0.25, %v1038_v5 }
 0x479   : > { %v4026_v57 = vpop.eup %4025  ;;  %v1310_v52 = vadd.f32 1e-06, %v4850_v17  ;;  %v1339_v45 = vmul.f32 0.6931472, %v4024_v59  ;;  %v4858_v0 = vsel %vm1153_vm9, 0.25, %v1041_v56 }
 0x47a   : > { %v1040_v23 = vmul.f32 %v4026_v57, %v4660_v13  ;;  %v1403_v44 = vmul.f32 %v1341_v43, %v4812_v24  ;;  %v4028_v12 = vpop.eup %4027  ;;  %v1313_v16 = vadd.f32 1e-06, %v4858_v0 }
 0x47b   : > { %4033 = vlog2.f32 %v1310_v52  ;;  %v1402_v1 = vmul.f32 %v1339_v45, %v4818_v30  ;;  %v1345_v10 = vmul.f32 0.6931472, %v4028_v12  ;;  %v4030_v9 = vpop.eup %4029 }
 0x47c   : > { %v4866_v13 = vsel %vm1152_vm10, 0.25, %v1040_v23  ;;  %4035 = vlog2.f32 %v1313_v16  ;;  %v1343_v51 = vmul.f32 0.6931472, %v4030_v9 }
 0x47d   : > { %v1312_v3 = vadd.f32 1e-06, %v4866_v13  ;;  %v1405_v53 = vmul.f32 %v1345_v10, %v4828_v2 }
 0x47e   : > { %v1404_v54 = vmul.f32 %v1343_v51, %v4836_v15 }
 0x47f   : > { %4037 = vlog2.f32 %v1312_v3 }
 0x481   : > { %1468 = vrot.lane.b32.xlu1 %v1403_v44, %s4225_s23  ;;  %v4032_v14 = vpop.eup %4031 }
 0x482   : > { %v1349_v22 = vmul.f32 0.6931472, %v4032_v14  ;;  %v956_v14 = vpop.xlane.xlu0 %955 }
 0x484   : > { %v1407_v34 = vmul.f32 %v1349_v22, %v4843_v19 }
 0x485   : > { %1466 = vrot.lane.b32.xlu1 %v1402_v1, %s4225_s23  ;;  %v4034_v55 = vpop.eup %4033 }
 0x486   : > { %v1347_v20 = vmul.f32 0.6931472, %v4034_v55  ;;  %v4036_v5 = vpop.eup %4035 }
 0x487   : > { %v1353_v18 = vmul.f32 0.6931472, %v4036_v5 }
 0x488   : > { %v1406_v7 = vmul.f32 %v1347_v20, %v4850_v17  ;;  %v965_v20 = vpop.xlane.xlu0 %964 }
 0x489   : > { %1472 = vrot.lane.b32.xlu1 %v1405_v53, %s4225_s23  ;;  %v4038_v59 = vpop.eup %4037  ;;  %v1409_v56 = vmul.f32 %v1353_v18, %v4858_v0 }
 0x48a   : > { %v1351_v43 = vmul.f32 0.6931472, %v4038_v59 }
 0x48c   : > { %v1408_v57 = vmul.f32 %v1351_v43, %v4866_v13 }
 0x48d   : > { %1470 = vrot.lane.b32.xlu1 %v1404_v54, %s4225_s23 }
 0x491   : > { %1476 = vrot.lane.b32.xlu1 %v1407_v34, %s4225_s23 }
 0x495   : > { %1474 = vrot.lane.b32.xlu1 %v1406_v7, %s4225_s23 }
 0x499   : > { %1480 = vrot.lane.b32.xlu1 %v1409_v56, %s4225_s23 }
 0x49d   : > { %1478 = vrot.lane.b32.xlu1 %v1408_v57, %s4225_s23 }
 0x49f   : > { %v935_v52 = vpop.xlane.xlu1 %934 }
 0x4a0   : > { %4039 = vrcp.f32 %v935_v52 }
 0x4a3   : > { %v932_v23 = vpop.xlane.xlu1 %931 }
 0x4a4   : > { %4041 = vrcp.f32 %v932_v23 }
 0x4a7   : > { %v941_v44 = vpop.xlane.xlu1 %940 }
 0x4a8   : > { %4043 = vrcp.f32 %v941_v44 }
 0x4aa   : > { %v4040_v45 = vpop.eup %4039 }
 0x4ab   : > { %v1043_v12 = vmul.f32 %v4040_v45, %v4585_v48  ;;  %v938_v16 = vpop.xlane.xlu1 %937 }
 0x4ac   : > { %4045 = vrcp.f32 %v938_v16 }
 0x4ad   : > { %v4886_v1 = vsel %vm1155_vm11, 0.25, %v1043_v12 }
 0x4ae   : > { %v4042_v10 = vpop.eup %4041  ;;  %v1315_v9 = vadd.f32 1e-06, %v4886_v1 }
 0x4af   : > { %v1042_v3 = vmul.f32 %v4042_v10, %v4592_v36  ;;  %v947_v53 = vpop.xlane.xlu1 %946 }
 0x4b0   : > { %4047 = vrcp.f32 %v947_v53 }
 0x4b1   : > { %4049 = vlog2.f32 %v1315_v9  ;;  %v4893_v48 = vsel %vm1154_vm12, 0.25, %v1042_v3  ;;  %v6327_v3 = vld [vmem:[#allocation19_spill] sm:$0xff] }
 0x4b2   : > { %v4044_v51 = vpop.eup %4043  ;;  %v1314_v54 = vadd.f32 1e-06, %v4893_v48  ;;  %vm6295_vm1 = vcmp.eq.s32.totalorder %v6327_v3, 1 }
 0x4b3   : > { %v1045_v22 = vmul.f32 %v4044_v51, %v4602_v50  ;;  %v944_v55 = vpop.xlane.xlu1 %943 }
 0x4b4   : > { %4051 = vrcp.f32 %v944_v55 }
 0x4b5   : > { %4053 = vlog2.f32 %v1314_v54  ;;  %v4900_v36 = vsel %vm1157_vm13, 0.25, %v1045_v22 }
 0x4b6   : > { %6325 = vst [vmem:[#allocation28_spill] sm:$0xff] %v4900_v36  ;;  %v4046_v34 = vpop.eup %4045  ;;  %v1317_v5 = vadd.f32 1e-06, %v4900_v36  ;;  %4055 = vrcp.f32 %v956_v14 }
 0x4b7   : > { %v1044_v7 = vmul.f32 %v4046_v34, %v4606_v47  ;;  %v953_v18 = vpop.xlane.xlu1 %952  ;;  %v962_v47 = vpop.xlane.xlu0 %961 }
 0x4b8   : > { %4057 = vrcp.f32 %v953_v18  ;;  %v6330_v18 = vld [vmem:[#allocation25_spill] sm:$0xff] }
 0x4b9   : > { %4059 = vlog2.f32 %v1317_v5  ;;  %v4907_v50 = vsel %vm1156_vm14, 0.25, %v1044_v7  ;;  %v6329_v7 = vld [vmem:[#allocation21_spill] sm:$0xff] }
 0x4ba   : > { %v4048_v59 = vpop.eup %4047  ;;  %v1316_v56 = vadd.f32 1e-06, %v4907_v50  ;;  %4061 = vrcp.f32 %v965_v20  ;;  %v6328_v20 = vld [vmem:[#allocation22_spill] sm:$0xff]  ;;  %vm1161_vm0 = vcmp.eq.s32.totalorder %v6329_v7, 1 }
 0x4bb   : > { %v4050_v43 = vpop.eup %4049  ;;  %v1047_v57 = vmul.f32 %v4048_v59, %v4620_v46  ;;  %v950_v52 = vpop.xlane.xlu1 %949 }
 0x4bc   : > { %4063 = vrcp.f32 %v950_v52  ;;  %v1357_v23 = vmul.f32 0.6931472, %v4050_v43 }
 0x4bd   : > { %4065 = vlog2.f32 %v1316_v56  ;;  %v4914_v44 = vsel %vm1159_vm15, 0.25, %v1047_v57 }
 0x4be   : > { %6326 = vst [vmem:[#allocation29_spill] sm:$0xff] %v4914_v44  ;;  %v4052_v45 = vpop.eup %4051  ;;  %v1411_v12 = vmul.f32 %v1357_v23, %v4886_v1  ;;  %v1319_v16 = vadd.f32 1e-06, %v4914_v44  ;;  %4067 = vrcp.f32 %v962_v47 }
 0x4bf   : > { %v4054_v10 = vpop.eup %4053  ;;  %v1046_v46 = vmul.f32 %v4052_v45, %v4626_v21  ;;  %v959_v9 = vpop.xlane.xlu1 %958 }
 0x4c0   : > { %1484 = vrot.lane.b32.xlu1 %v1411_v12, %s4225_s23  ;;  %4069 = vrcp.f32 %v959_v9  ;;  %v971_v53 = vpop.xlane.xlu0 %970  ;;  %v1355_v51 = vmul.f32 0.6931472, %v4054_v10  ;;  %v4056_v14 = vpop.eup %4055 }
 0x4c1   : > { %v4923_v54 = vsel %vm6295_vm1, 0.25, %v1046_v46  ;;  %4071 = vlog2.f32 %v1319_v16  ;;  %v1050_v59 = vmul.f32 %v4056_v14, %v6330_v18  ;;  %v6332_v16 = vld [vmem:[#allocation23_spill] sm:$0xff]  ;;  %v6333_v46 = vld [vmem:[#allocation20_spill] sm:$0xff] }
 0x4c2   : > { %v4058_v22 = vpop.eup %4057  ;;  %v1410_v55 = vmul.f32 %v1355_v51, %v4893_v48  ;;  %v1318_v34 = vadd.f32 1e-06, %v4923_v54  ;;  %4073 = vrcp.f32 %v971_v53  ;;  %vm1160_vm1 = vcmp.eq.s32.totalorder %v6333_v46, 1  ;;  %v6335_v18 = vld [vmem:[#allocation24_spill] sm:$0xff] }
 0x4c3   : > { %v4060_v21 = vpop.eup %4059  ;;  %v1049_v5 = vmul.f32 %v4058_v22, %v6328_v20  ;;  %v4942_v51 = vsel %vm1146_vm4, 0.25, %v1050_v59  ;;  %v6334_v22 = vld [vmem:[#allocation27_spill] sm:$0xff]  ;;  %vm1949_vm4 = vcmask 1041408  }
 0x4c4   : > { %1482 = vrot.lane.b32.xlu1 %v1410_v55, %s4225_s23  ;;  %v968_v56 = vpop.xlane.xlu0 %967  ;;  %v1361_v43 = vmul.f32 0.6931472, %v4060_v21  ;;  %4075 = vlog2.f32 %v1318_v34  ;;  %v4062_v57 = vpop.eup %4061 }
 0x4c5   : > { %v4933_v52 = vsel %vm1161_vm0, 0.25, %v1049_v5  ;;  %4077 = vrcp.f32 %v968_v56  ;;  %v1053_v55 = vmul.f32 %v4062_v57, %v6334_v22 }
 0x4c6   : > { %6331 = vst [vmem:[#allocation19_spill] sm:$0xff] %v4933_v52  ;;  %v4064_v47 = vpop.eup %4063  ;;  %v1413_v23 = vmul.f32 %v1361_v43, %v4900_v36  ;;  %v1321_v45 = vadd.f32 1e-06, %v4933_v52  ;;  %v1322_v43 = vadd.f32 1e-06, %v4942_v51 }
 0x4c7   : > { %v4066_v12 = vpop.eup %4065  ;;  %v1048_v10 = vmul.f32 %v4064_v47, %v6332_v16 }
 0x4c8   : > { %1488 = vrot.lane.b32.xlu1 %v1413_v23, %s4225_s23  ;;  %v977_v9 = vpop.xlane.xlu0 %976  ;;  %v1359_v53 = vmul.f32 0.6931472, %v4066_v12  ;;  %4079 = vlog2.f32 %v1321_v45  ;;  %v4068_v14 = vpop.eup %4067  ;;  %v4961_v45 = vsel %vm1149_vm5, 0.25, %v1053_v55  ;;  %vm1900_vm5 = vcmask 15360  }
 0x4c9   : > { %v4947_v34 = vsel %vm1160_vm1, 0.25, %v1048_v10  ;;  %4081 = vrcp.f32 %v977_v9  ;;  %v1052_v57 = vmul.f32 %v4068_v14, %v4709_v8 }
 0x4ca   : > { %v4070_v21 = vpop.eup %4069  ;;  %v1412_v20 = vmul.f32 %v1359_v53, %v4907_v50  ;;  %v1320_v5 = vadd.f32 1e-06, %v4947_v34  ;;  %v1325_v53 = vadd.f32 1e-06, %v4961_v45 }
 0x4cb   : > { %v1051_v56 = vmul.f32 %v4070_v21, %v6335_v18  ;;  %v4072_v35 = vpop.eup %4071  ;;  %v4971_v40 = vsel %vm1148_vm6, 0.25, %v1052_v57  ;;  %vm1883_vm6 = vcmask 7168  }
 0x4cc   : > { %1486 = vrot.lane.b32.xlu1 %v1412_v20, %s4225_s23  ;;  %4083 = vlog2.f32 %v1320_v5  ;;  %v4074_v59 = vpop.eup %4073  ;;  %v1365_v47 = vmul.f32 0.6931472, %v4072_v35  ;;  %v1324_v21 = vadd.f32 1e-06, %v4971_v40 }
 0x4cd   : > { %v4957_v23 = vsel %vm1147_vm3, 0.25, %v1051_v56  ;;  %4085 = vlog2.f32 %v1322_v43  ;;  %v1055_v14 = vmul.f32 %v4074_v59, %v4761_v49  ;;  %v6336_v59 = vld [vmem:[#allocation26_spill] sm:$0xff]  ;;  %vm6337_vm3 = vcmp.eq.s32.totalorder %v6327_v3, 1 }
 0x4ce   : > { %v4076_v12 = vpop.eup %4075  ;;  %v1323_v16 = vadd.f32 1e-06, %v4957_v23  ;;  %v1415_v10 = vmul.f32 %v1365_v47, %v4914_v44 }
 0x4cf   : > { %v1363_v9 = vmul.f32 0.6931472, %v4076_v12  ;;  %v4078_v8 = vpop.eup %4077  ;;  %v4979_v18 = vsel %vm1151_vm7, 0.25, %v1055_v14  ;;  %vm2114_vm7 = vcmask 523264  }
 0x4d0   : > { %4087 = vlog2.f32 %v1323_v16  ;;  %1492 = vrot.lane.b32.xlu1 %v1415_v10, %s4225_s23  ;;  %v1054_v5 = vmul.f32 %v4078_v8, %v4765_v63  ;;  %v1327_v43 = vadd.f32 1e-06, %v4979_v18 }
 0x4d1   : > { %v1414_v38 = vmul.f32 %v1363_v9, %v4923_v54  ;;  %4089 = vlog2.f32 %v1325_v53 }
 0x4d2   : > { %v4080_v22 = vpop.eup %4079  ;;  %4091 = vlog2.f32 %v1324_v21  ;;  %v4987_v47 = vsel %vm1150_vm8, 0.25, %v1054_v5 }
 0x4d3   : > { %v1369_v55 = vmul.f32 0.6931472, %v4080_v22  ;;  %v4082_v20 = vpop.eup %4081  ;;  %4093 = vlog2.f32 %v1327_v43  ;;  %v1326_v16 = vadd.f32 1e-06, %v4987_v47 }
 0x4d4   : > { %1490 = vrot.lane.b32.xlu1 %v1414_v38, %s4225_s23  ;;  %v1057_v57 = vmul.f32 %v4082_v20, %v6336_v59 }
 0x4d5   : > { %v1417_v49 = vmul.f32 %v1369_v55, %v4933_v52  ;;  %4095 = vlog2.f32 %v1326_v16 }
 0x4d6   : > { %v4084_v56 = vpop.eup %4083  ;;  %v4994_v53 = vsel %vm1153_vm9, 0.25, %v1057_v57 }
 0x4d7   : > { %v1367_v39 = vmul.f32 0.6931472, %v4084_v56  ;;  %v4086_v35 = vpop.eup %4085  ;;  %v1329_v41 = vadd.f32 1e-06, %v4994_v53 }
 0x4d8   : > { %1496 = vrot.lane.b32.xlu1 %v1417_v49, %s4225_s23  ;;  %v1371_v9 = vmul.f32 0.6931472, %v4086_v35 }
 0x4d9   : > { %v1416_v63 = vmul.f32 %v1367_v39, %v4947_v34  ;;  %4097 = vlog2.f32 %v1329_v41 }
 0x4da   : > { %v4088_v12 = vpop.eup %4087  ;;  %v1418_v14 = vmul.f32 %v1371_v9, %v4942_v51 }
 0x4db   : > { %v1373_v42 = vmul.f32 0.6931472, %v4088_v12  ;;  %v4090_v8 = vpop.eup %4089 }
 0x4dc   : > { %1494 = vrot.lane.b32.xlu1 %v1416_v63, %s4225_s23  ;;  %v1377_v38 = vmul.f32 0.6931472, %v4090_v8  ;;  %v4092_v22 = vpop.eup %4091 }
 0x4dd   : > { %v1419_v10 = vmul.f32 %v1373_v42, %v4957_v23  ;;  %v1375_v21 = vmul.f32 0.6931472, %v4092_v22  ;;  %v4094_v20 = vpop.eup %4093 }
 0x4de   : > { %v1421_v55 = vmul.f32 %v1377_v38, %v4961_v45  ;;  %v1381_v5 = vmul.f32 0.6931472, %v4094_v20 }
 0x4df   : > { %1500 = vrot.lane.b32.xlu0 %v1419_v10, %s4225_s23  ;;  %v1420_v25 = vmul.f32 %v1375_v21, %v4971_v40  ;;  %v4096_v49 = vpop.eup %4095 }
 0x4e0   : > { %v1423_v56 = vmul.f32 %v1381_v5, %v4979_v18  ;;  %v1379_v39 = vmul.f32 0.6931472, %v4096_v49  ;;  %v983_v5 = vpop.xlane.xlu0 %982 }
 0x4e2   : > { %v1422_v35 = vmul.f32 %v1379_v39, %v4987_v47 }
 0x4e3   : > { %1498 = vrot.lane.b32.xlu0 %v1418_v14, %s4225_s23  ;;  %v4098_v43 = vpop.eup %4097 }
 0x4e4   : > { %v1385_v59 = vmul.f32 0.6931472, %v4098_v43 }
 0x4e6   : > { %v1425_v57 = vmul.f32 %v1385_v59, %v4994_v53 }
 0x4e7   : > { %1504 = vrot.lane.b32.xlu0 %v1421_v55, %s4225_s23 }
 0x4eb   : > { %1502 = vrot.lane.b32.xlu0 %v1420_v25, %s4225_s23 }
 0x4ef   : > { %1508 = vrot.lane.b32.xlu0 %v1423_v56, %s4225_s23 }
 0x4f3   : > { %1506 = vrot.lane.b32.xlu0 %v1422_v35, %s4225_s23  ;;  %v980_v35 = vpop.xlane.xlu0 %979 }
 0x4f7   : > { %1512 = vrot.lane.b32.xlu0 %v1425_v57, %s4225_s23 }
 0x4fd   : > { %v974_v63 = vpop.xlane.xlu1 %973 }
 0x4fe   : > { %4099 = vrcp.f32 %v974_v63  ;;  %v989_v63 = vpop.xlane.xlu0 %988 }
 0x501   : > { %v1469_v12 = vpop.permute.xlu1 %1468 }
 0x502   : > { %v1565_v42 = vsel %vm905_vm2, %v1469_v12, 0.0  ;;  %v986_v12 = vpop.xlane.xlu0 %985 }
 0x503   : > { %1566 = vadd.xlane.f32.xlu1 %v1565_v42 }
 0x505   : > { %v1467_v16 = vpop.permute.xlu1 %1466 }
 0x506   : > { %v1562_v10 = vsel %vm905_vm2, %v1467_v16, 0.0  ;;  %v995_v42 = vpop.xlane.xlu0 %994 }
 0x507   : > { %1563 = vadd.xlane.f32.xlu1 %v1562_v10 }
 0x508   : > { %v4100_v9 = vpop.eup %4099 }
 0x509   : > { %v1056_v8 = vmul.f32 %v4100_v9, %v4776_v61  ;;  %v1473_v41 = vpop.permute.xlu1 %1472 }
 0x50a   : > { %v1571_v14 = vsel %vm905_vm2, %v1473_v41, 0.0 }
 0x50b   : > { %1572 = vadd.xlane.f32.xlu1 %v1571_v14  ;;  %v5016_v38 = vsel %vm1152_vm10, 0.25, %v1056_v8  ;;  %v992_v14 = vpop.xlane.xlu0 %991 }
 0x50c   : > { %v1328_v22 = vadd.f32 1e-06, %v5016_v38 }
 0x50d   : > { %v1471_v55 = vpop.permute.xlu1 %1470 }
 0x50e   : > { %v1568_v21 = vsel %vm905_vm2, %v1471_v55, 0.0  ;;  %4101 = vlog2.f32 %v1328_v22 }
 0x50f   : > { %1569 = vadd.xlane.f32.xlu1 %v1568_v21  ;;  %4103 = vrcp.f32 %v983_v5 }
 0x510   : > { %4105 = vrcp.f32 %v980_v35 }
 0x511   : > { %v1477_v20 = vpop.permute.xlu1 %1476  ;;  %4107 = vrcp.f32 %v989_v63 }
 0x512   : > { %v1577_v25 = vsel %vm905_vm2, %v1477_v20, 0.0  ;;  %4109 = vrcp.f32 %v986_v12 }
 0x513   : > { %1578 = vadd.xlane.f32.xlu1 %v1577_v25  ;;  %4111 = vrcp.f32 %v995_v42 }
 0x514   : > { %4113 = vrcp.f32 %v992_v14 }
 0x515   : > { %v1475_v61 = vpop.permute.xlu1 %1474 }
 0x516   : > { %v1574_v49 = vsel %vm905_vm2, %v1475_v61, 0.0  ;;  %v1001_v61 = vpop.xlane.xlu0 %1000 }
 0x517   : > { %1575 = vadd.xlane.f32.xlu1 %v1574_v49 }
 0x518   : > { %v4102_v56 = vpop.eup %4101 }
 0x519   : > { %v1481_v29 = vpop.permute.xlu1 %1480  ;;  %v1383_v39 = vmul.f32 0.6931472, %v4102_v56  ;;  %v4104_v16 = vpop.eup %4103 }
 0x51a   : > { %v1059_v9 = vmul.f32 %v4104_v16, %v4718_v28  ;;  %v4106_v41 = vpop.eup %4105  ;;  %v1583_v56 = vsel %vm905_vm2, %v1481_v29, 0.0  ;;  %v998_v63 = vpop.xlane.xlu0 %997 }
 0x51b   : > { %v1424_v43 = vmul.f32 %v1383_v39, %v5016_v38  ;;  %v1058_v55 = vmul.f32 %v4106_v41, %v4723_v62  ;;  %v4108_v25 = vpop.eup %4107 }
 0x51c   : > { %v5031_v20 = vsel %vm1155_vm11, 0.25, %v1059_v9  ;;  %v1061_v39 = vmul.f32 %v4108_v25, %v4730_v58  ;;  %v4110_v31 = vpop.eup %4109 }
 0x51d   : > { %1510 = vrot.lane.b32.xlu0 %v1424_v43, %s4225_s23  ;;  %v1479_v59 = vpop.permute.xlu1 %1478  ;;  %v1331_v5 = vadd.f32 1e-06, %v5031_v20  ;;  %v5038_v62 = vsel %vm1154_vm12, 0.25, %v1058_v55  ;;  %v4112_v29 = vpop.eup %4111 }
 0x51e   : > { %v1580_v57 = vsel %vm905_vm2, %v1479_v59, 0.0  ;;  %v1330_v35 = vadd.f32 1e-06, %v5038_v62  ;;  %v5046_v26 = vsel %vm1157_vm13, 0.25, %v1061_v39  ;;  %v1063_v42 = vmul.f32 %v4112_v29, %v4740_v6 }
 0x51f   : > { %1581 = vadd.xlane.f32.xlu1 %v1580_v57  ;;  %4115 = vlog2.f32 %v1331_v5  ;;  %v1060_v57 = vmul.f32 %v4110_v31, %v4735_v4  ;;  %v1333_v12 = vadd.f32 1e-06, %v5046_v26  ;;  %v4114_v4 = vpop.eup %4113 }
 0x520   : > { %4117 = vrcp.f32 %v1001_v61  ;;  %v1062_v41 = vmul.f32 %v4114_v4, %v4747_v32  ;;  %v5060_v6 = vsel %vm1159_vm15, 0.25, %v1063_v42 }
 0x521   : > { %4119 = vlog2.f32 %v1330_v35 }
 0x522   : > { %4121 = vrcp.f32 %v998_v63  ;;  %v5067_v32 = vsel %vm6337_vm3, 0.25, %v1062_v41 }
 0x523   : > { %4123 = vlog2.f32 %v1333_v12 }
 0x532   : > { %v1485_v10 = vpop.permute.xlu1 %1484 }
 0x533   : > { %v1589_v8 = vsel %vm905_vm2, %v1485_v10, 0.0  ;;  %v5053_v10 = vsel %vm1156_vm14, 0.25, %v1060_v57 }
 0x534   : > { %1590 = vadd.xlane.f32.xlu1 %v1589_v8  ;;  %v1332_v33 = vadd.f32 1e-06, %v5053_v10  ;;  %v4116_v8 = vpop.eup %4115 }
 0x535   : > { %v1389_v55 = vmul.f32 0.6931472, %v4116_v8 }
 0x536   : > { %v1483_v22 = vpop.permute.xlu1 %1482  ;;  %4125 = vlog2.f32 %v1332_v33 }
 0x537   : > { %v1586_v21 = vsel %vm905_vm2, %v1483_v22, 0.0  ;;  %v4118_v22 = vpop.eup %4117 }
 0x538   : > { %1587 = vadd.xlane.f32.xlu1 %v1586_v21  ;;  %v1335_v21 = vadd.f32 1e-06, %v5060_v6  ;;  %v4120_v25 = vpop.eup %4119  ;;  %v1065_v61 = vmul.f32 %v4118_v22, %v4753_v60 }
 0x539   : > { %v4122_v5 = vpop.eup %4121 }
 0x53a   : > { %v1489_v28 = vpop.permute.xlu1 %1488  ;;  %4127 = vlog2.f32 %v1335_v21  ;;  %v1064_v39 = vmul.f32 %v4122_v5, %v4757_v11  ;;  %v5075_v60 = vsel %vm1161_vm0, 0.25, %v1065_v61  ;;  %v4124_v3 = vpop.eup %4123 }
 0x53b   : > { %v1595_v49 = vsel %vm905_vm2, %v1489_v28, 0.0  ;;  %v1337_v35 = vadd.f32 1e-06, %v5075_v60  ;;  %v1393_v57 = vmul.f32 0.6931472, %v4124_v3 }
 0x53c   : > { %1596 = vadd.xlane.f32.xlu1 %v1595_v49  ;;  %1584 = vadd.xlane.f32.xlu0 %v1583_v56  ;;  %v1427_v49 = vmul.f32 %v1389_v55, %v5031_v20  ;;  %v1334_v56 = vadd.f32 1e-06, %v5067_v32  ;;  %v5082_v11 = vsel %vm1160_vm1, 0.25, %v1064_v39 }
 0x53d   : > { %v1336_v7 = vadd.f32 1e-06, %v5082_v11  ;;  %v1429_v29 = vmul.f32 %v1393_v57, %v5046_v26 }
 0x53e   : > { %v1487_v43 = vpop.permute.xlu1 %1486  ;;  %4129 = vlog2.f32 %v1334_v56 }
 0x53f   : > { %v1592_v59 = vsel %vm905_vm2, %v1487_v43, 0.0  ;;  %v1387_v43 = vmul.f32 0.6931472, %v4120_v25  ;;  %4131 = vlog2.f32 %v1337_v35 }
 0x540   : > { %1593 = vadd.xlane.f32.xlu1 %v1592_v59  ;;  %v4126_v63 = vpop.eup %4125  ;;  %4133 = vlog2.f32 %v1336_v7 }
 0x541   : > { %v1426_v59 = vmul.f32 %v1387_v43, %v5038_v62 }
 0x542   : > { %v1493_v58 = vpop.permute.xlu1 %1492 }
 0x543   : > { %v1601_v16 = vsel %vm905_vm2, %v1493_v58, 0.0  ;;  %v1391_v58 = vmul.f32 0.6931472, %v4126_v63 }
 0x544   : > { %1602 = vadd.xlane.f32.xlu1 %v1601_v16  ;;  %v4128_v12 = vpop.eup %4127 }
 0x545   : > { %v1428_v42 = vmul.f32 %v1391_v58, %v5053_v10  ;;  %v1397_v16 = vmul.f32 0.6931472, %v4128_v12 }
 0x546   : > { %v1491_v9 = vpop.permute.xlu1 %1490 }
 0x547   : > { %v1598_v14 = vsel %vm905_vm2, %v1491_v9, 0.0  ;;  %v1431_v46 = vmul.f32 %v1397_v16, %v5060_v6 }
 0x548   : > { %1599 = vadd.xlane.f32.xlu1 %v1598_v14  ;;  %v4130_v4 = vpop.eup %4129 }
 0x549   : > { %v1395_v9 = vmul.f32 0.6931472, %v4130_v4  ;;  %v4132_v33 = vpop.eup %4131 }
 0x54a   : > { %v1497_v27 = vpop.permute.xlu1 %1496  ;;  %v1401_v41 = vmul.f32 0.6931472, %v4132_v33  ;;  %v4134_v14 = vpop.eup %4133 }
 0x54b   : > { %v1607_v28 = vsel %vm905_vm2, %v1497_v27, 0.0  ;;  %v1430_v8 = vmul.f32 %v1395_v9, %v5067_v32  ;;  %v1399_v27 = vmul.f32 0.6931472, %v4134_v14 }
 0x54c   : > { %1608 = vadd.xlane.f32.xlu1 %v1607_v28  ;;  %v1433_v22 = vmul.f32 %v1401_v41, %v5075_v60 }
 0x54d   : > { %v1432_v55 = vmul.f32 %v1399_v27, %v5082_v11 }
 0x54e   : > { %v1495_v37 = vpop.permute.xlu1 %1494 }
 0x54f   : > { %v1604_v31 = vsel %vm905_vm2, %v1495_v37, 0.0 }
 0x550   : > { %1605 = vadd.xlane.f32.xlu1 %v1604_v31 }
 0x551   : > { %v1501_v21 = vpop.permute.xlu0 %1500 }
 0x552   : > { %1516 = vrot.lane.b32.xlu0 %v1427_v49, %s4225_s23  ;;  %v1613_v28 = vsel %vm905_vm2, %v1501_v21, 0.0 }
 0x555   : > { %v1499_v25 = vpop.permute.xlu0 %1498 }
 0x556   : > { %1514 = vrot.lane.b32.xlu0 %v1426_v59, %s4225_s23  ;;  %v1610_v49 = vsel %vm905_vm2, %v1499_v25, 0.0 }
 0x559   : > { %v1505_v61 = vpop.permute.xlu0 %1504 }
 0x55a   : > { %1520 = vrot.lane.b32.xlu0 %v1429_v29, %s4225_s23  ;;  %v1619_v39 = vsel %vm905_vm2, %v1505_v61, 0.0 }
 0x55d   : > { %v1503_v5 = vpop.permute.xlu0 %1502 }
 0x55e   : > { %1518 = vrot.lane.b32.xlu0 %v1428_v42, %s4225_s23  ;;  %v1616_v43 = vsel %vm905_vm2, %v1503_v5, 0.0 }
 0x561   : > { %v1509_v31 = vpop.permute.xlu0 %1508 }
 0x562   : > { %1524 = vrot.lane.b32.xlu0 %v1431_v46, %s4225_s23  ;;  %v1625_v59 = vsel %vm905_vm2, %v1509_v31, 0.0 }
 0x565   : > { %v1507_v35 = vpop.permute.xlu0 %1506 }
 0x566   : > { %1522 = vrot.lane.b32.xlu0 %v1430_v8, %s4225_s23  ;;  %v1622_v29 = vsel %vm905_vm2, %v1507_v35, 0.0 }
 0x569   : > { %v1513_v58 = vpop.permute.xlu0 %1512 }
 0x56a   : > { %1528 = vrot.lane.b32.xlu0 %v1433_v22, %s4225_s23  ;;  %v1631_v12 = vsel %vm905_vm2, %v1513_v58, 0.0 }
 0x56e   : > { %1526 = vrot.lane.b32.xlu0 %v1432_v55, %s4225_s23 }
 0x58d   : > { %1614 = vadd.xlane.f32.xlu0 %v1613_v28 }
 0x58f   : > { %v1511_v42 = vpop.permute.xlu0 %1510 }
 0x590   : > { %v1567_v37 = vpop.xlane.xlu1 %1566  ;;  %v1628_v16 = vsel %vm905_vm2, %v1511_v42, 0.0 }
 0x591   : > { %v1660_v56 = vmul.f32 1.442695, %v1567_v37  ;;  %1611 = vadd.xlane.f32.xlu0 %v1610_v49 }
 0x593   : > { %4135 = vpow2.f32 %v1660_v56 }
 0x594   : > { %v1564_v3 = vpop.xlane.xlu1 %1563 }
 0x595   : > { %1620 = vadd.xlane.f32.xlu0 %v1619_v39  ;;  %v1658_v63 = vmul.f32 1.442695, %v1564_v3 }
 0x597   : > { %4137 = vpow2.f32 %v1658_v63 }
 0x598   : > { %v1573_v4 = vpop.xlane.xlu1 %1572 }
 0x599   : > { %1617 = vadd.xlane.f32.xlu0 %v1616_v43  ;;  %v1664_v9 = vmul.f32 1.442695, %v1573_v4 }
 0x59b   : > { %4139 = vpow2.f32 %v1664_v9 }
 0x59c   : > { %v1570_v8 = vpop.xlane.xlu1 %1569 }
 0x59d   : > { %v4136_v57 = vpop.eup %4135  ;;  %1626 = vadd.xlane.f32.xlu0 %v1625_v59  ;;  %v1662_v14 = vmul.f32 1.442695, %v1570_v8 }
 0x59e   : > { %v1723_v7 = vmul.f32 %v4136_v57, %v4812_v24 }
 0x59f   : > { %4141 = vpow2.f32 %v1662_v14 }
 0x5a0   : > { %2133 = vrot.lane.b32.xlu1 %v1723_v7, %s4226_s26  ;;  %v1579_v55 = vpop.xlane.xlu1 %1578 }
 0x5a1   : > { %1623 = vadd.xlane.f32.xlu0 %v1622_v29  ;;  %v4138_v46 = vpop.eup %4137  ;;  %v1668_v25 = vmul.f32 1.442695, %v1579_v55 }
 0x5a2   : > { %v1722_v33 = vmul.f32 %v4138_v46, %v4818_v30 }
 0x5a3   : > { %4143 = vpow2.f32 %v1668_v25 }
 0x5a4   : > { %1773 = vrot.lane.b32.xlu1 %v1723_v7, %s4225_s23  ;;  %v1576_v43 = vpop.xlane.xlu1 %1575 }
 0x5a5   : > { %1632 = vadd.xlane.f32.xlu0 %v1631_v12  ;;  %v4140_v41 = vpop.eup %4139  ;;  %v1666_v59 = vmul.f32 1.442695, %v1576_v43 }
 0x5a6   : > { %v1725_v22 = vmul.f32 %v4140_v41, %v4828_v2 }
 0x5a7   : > { %4145 = vpow2.f32 %v1666_v59 }
 0x5a8   : > { %2471 = vrot.lane.b32.xlu1 %v1723_v7, %s4227_s27 }
 0x5a9   : > { %1629 = vadd.xlane.f32.xlu0 %v1628_v16  ;;  %v4142_v21 = vpop.eup %4141 }
 0x5aa   : > { %v1724_v5 = vmul.f32 %v4142_v21, %v4836_v15 }
 0x5ac   : > { %2809 = vrot.lane.b32.xlu1 %v1723_v7, %s4228_s30  ;;  %v1582_v29 = vpop.xlane.xlu1 %1581 }
 0x5ad   : > { %v4144_v35 = vpop.eup %4143  ;;  %v1670_v55 = vmul.f32 1.442695, %v1582_v29 }
 0x5ae   : > { %v1727_v7 = vmul.f32 %v4144_v35, %v4843_v19 }
 0x5b0   : > { %2131 = vrot.lane.b32.xlu1 %v1722_v33, %s4226_s26 }
 0x5b1   : > { %v4146_v8 = vpop.eup %4145 }
 0x5b2   : > { %v1726_v14 = vmul.f32 %v4146_v8, %v4850_v17 }
 0x5b4   : > { %1771 = vrot.lane.b32.xlu1 %v1722_v33, %s4225_s23 }
 0x5b8   : > { %2469 = vrot.lane.b32.xlu1 %v1722_v33, %s4227_s27 }
 0x5bc   : > { %2807 = vrot.lane.b32.xlu1 %v1722_v33, %s4228_s30 }
 0x5c0   : > { %2137 = vrot.lane.b32.xlu1 %v1725_v22, %s4226_s26 }
 0x5c1   : > { %v1591_v42 = vpop.xlane.xlu1 %1590 }
 0x5c4   : > { %1777 = vrot.lane.b32.xlu1 %v1725_v22, %s4225_s23 }
 0x5c5   : > { %v1588_v9 = vpop.xlane.xlu1 %1587 }
 0x5c8   : > { %2475 = vrot.lane.b32.xlu1 %v1725_v22, %s4227_s27 }
 0x5c9   : > { %v1585_v27 = vpop.xlane.xlu0 %1584 }
 0x5ca   : > { %v1672_v41 = vmul.f32 1.442695, %v1585_v27 }
 0x5cc   : > { %2813 = vrot.lane.b32.xlu1 %v1725_v22, %s4228_s30  ;;  %v1597_v22 = vpop.xlane.xlu1 %1596  ;;  %4147 = vpow2.f32 %v1672_v41 }
 0x5cd   : > { %v1517_v61 = vpop.permute.xlu0 %1516  ;;  %4149 = vpow2.f32 %v1670_v55  ;;  %v1680_v43 = vmul.f32 1.442695, %v1597_v22 }
 0x5ce   : > { %v1637_v28 = vsel %vm905_vm2, %v1517_v61, 0.0 }
 0x5cf   : > { %1638 = vadd.xlane.f32.xlu0 %v1637_v28  ;;  %v1676_v28 = vmul.f32 1.442695, %v1591_v42 }
 0x5d0   : > { %2135 = vrot.lane.b32.xlu1 %v1724_v5, %s4226_s26  ;;  %v1594_v21 = vpop.xlane.xlu1 %1593 }
 0x5d1   : > { %v1515_v37 = vpop.permute.xlu0 %1514  ;;  %4151 = vpow2.f32 %v1676_v28 }
 0x5d2   : > { %v1634_v49 = vsel %vm905_vm2, %v1515_v37, 0.0 }
 0x5d3   : > { %1635 = vadd.xlane.f32.xlu0 %v1634_v49  ;;  %v1674_v49 = vmul.f32 1.442695, %v1588_v9 }
 0x5d4   : > { %1775 = vrot.lane.b32.xlu1 %v1724_v5, %s4225_s23  ;;  %v1603_v61 = vpop.xlane.xlu1 %1602 }
 0x5d5   : > { %v1521_v56 = vpop.permute.xlu0 %1520  ;;  %4153 = vpow2.f32 %v1674_v49 }
 0x5d6   : > { %v1643_v39 = vsel %vm905_vm2, %v1521_v56, 0.0  ;;  %v4148_v25 = vpop.eup %4147  ;;  %4155 = vpow2.f32 %v1680_v43 }
 0x5d7   : > { %1644 = vadd.xlane.f32.xlu0 %v1643_v39  ;;  %v5145_v27 = vmul.f32 %v4148_v25, %v4858_v0  ;;  %v4150_v37 = vpop.eup %4149 }
 0x5d8   : > { %2473 = vrot.lane.b32.xlu1 %v1724_v5, %s4227_s27  ;;  %v5152_v56 = vmul.f32 %v4150_v37, %v4866_v13 }
 0x5d9   : > { %v1519_v31 = vpop.permute.xlu0 %1518 }
 0x5da   : > { %v1640_v3 = vsel %vm905_vm2, %v1519_v31, 0.0 }
 0x5db   : > { %1641 = vadd.xlane.f32.xlu0 %v1640_v3  ;;  %v4152_v31 = vpop.eup %4151 }
 0x5dc   : > { %2811 = vrot.lane.b32.xlu1 %v1724_v5, %s4228_s30  ;;  %v1600_v5 = vpop.xlane.xlu1 %1599  ;;  %v5159_v35 = vmul.f32 %v4152_v31, %v4886_v1 }
 0x5dd   : > { %v1525_v57 = vpop.permute.xlu0 %1524  ;;  %v1682_v22 = vmul.f32 1.442695, %v1600_v5 }
 0x5de   : > { %v1649_v63 = vsel %vm905_vm2, %v1525_v57, 0.0 }
 0x5df   : > { %1650 = vadd.xlane.f32.xlu0 %v1649_v63  ;;  %v4154_v57 = vpop.eup %4153  ;;  %v1678_v63 = vmul.f32 1.442695, %v1594_v21 }
 0x5e0   : > { %2141 = vrot.lane.b32.xlu1 %v1727_v7, %s4226_s26  ;;  %v1609_v39 = vpop.xlane.xlu1 %1608  ;;  %v5170_v29 = vmul.f32 %v4154_v57, %v4893_v48  ;;  %v4156_v42 = vpop.eup %4155 }
 0x5e1   : > { %v1523_v58 = vpop.permute.xlu0 %1522  ;;  %4157 = vpow2.f32 %v1678_v63  ;;  %v1688_v5 = vmul.f32 1.442695, %v1609_v39 }
 0x5e2   : > { %v1646_v12 = vsel %vm905_vm2, %v1523_v58, 0.0 }
 0x5e3   : > { %1647 = vadd.xlane.f32.xlu0 %v1646_v12 }
 0x5e4   : > { %1781 = vrot.lane.b32.xlu1 %v1727_v7, %s4225_s23  ;;  %v1606_v3 = vpop.xlane.xlu1 %1605 }
 0x5e5   : > { %v1529_v16 = vpop.permute.xlu0 %1528 }
 0x5e6   : > { %v1655_v4 = vsel %vm905_vm2, %v1529_v16, 0.0 }
 0x5e7   : > { %1656 = vadd.xlane.f32.xlu0 %v1655_v4  ;;  %v1684_v4 = vmul.f32 1.442695, %v1603_v61 }
 0x5e8   : > { %2479 = vrot.lane.b32.xlu1 %v1727_v7, %s4227_s27 }
 0x5e9   : > { %v1527_v46 = vpop.permute.xlu0 %1526 }
 0x5ea   : > { %v1652_v33 = vsel %vm905_vm2, %v1527_v46, 0.0 }
 0x5eb   : > { %1653 = vadd.xlane.f32.xlu0 %v1652_v33  ;;  %v5181_v33 = vmul.f32 %v4156_v42, %v4900_v36  ;;  %v1196_v36 = vadd.f32 %v4971_v40, %v4836_v15 }
 0x5ec   : > { %2817 = vrot.lane.b32.xlu1 %v1727_v7, %s4228_s30 }
 0x5f0   : > { %2139 = vrot.lane.b32.xlu1 %v1726_v14, %s4226_s26 }
 0x5f4   : > { %1779 = vrot.lane.b32.xlu1 %v1726_v14, %s4225_s23 }
 0x5f8   : > { %2477 = vrot.lane.b32.xlu1 %v1726_v14, %s4227_s27 }
 0x5fc   : > { %2815 = vrot.lane.b32.xlu1 %v1726_v14, %s4228_s30  ;;  %v4158_v14 = vpop.eup %4157 }
 0x5fd   : > { %v5192_v21 = vmul.f32 %v4158_v14, %v4907_v50 }
 0x600   : > { %1785 = vrot.lane.b32.xlu1 %v5145_v27, %s4225_s23 }
 0x604   : > { %2145 = vrot.lane.b32.xlu1 %v5145_v27, %s4226_s26 }
 0x608   : > { %1783 = vrot.lane.b32.xlu1 %v5152_v56, %s4225_s23 }
 0x60c   : > { %2143 = vrot.lane.b32.xlu1 %v5152_v56, %s4226_s26 }
 0x610   : > { %1789 = vrot.lane.b32.xlu1 %v5159_v35, %s4225_s23 }
 0x612   : > { %v5163_v59 = vpop.permute.xlu1 %2133 }
 0x613   : > { %6338 = vst [vmem:[#allocation22_spill] sm:$0xff] %v5163_v59 }
 0x614   : > { %2149 = vrot.lane.b32.xlu1 %v5159_v35, %s4226_s26 }
 0x616   : > { %v5167_v7 = vpop.permute.xlu1 %1773 }
 0x618   : > { %1787 = vrot.lane.b32.xlu1 %v5170_v29, %s4225_s23 }
 0x61a   : > { %v1615_v58 = vpop.xlane.xlu0 %1614  ;;  %v5174_v12 = vpop.permute.xlu1 %2471 }
 0x61b   : > { %v1692_v16 = vmul.f32 1.442695, %v1615_v58  ;;  %v5215_v58 = vld [vmem:[%s6251_s4] sm:$0x3] }
 0x61c   : > { %2147 = vrot.lane.b32.xlu1 %v5170_v29, %s4226_s26  ;;  %3800 = vmatprep.subr.msk.mxu0 %vm1949_vm4, %v5215_v58 }
 0x61d   : > { %4159 = vpow2.f32 %v1692_v16  ;;  %3801 = vmatpush3.msk.msra.mxu0 %vm1949_vm4, %v5215_v58  ;;  %3908 = vmatprep.subr.msk.mxu1 %vm1949_vm4, %v5215_v58 }
 0x61e   : > { %v1612_v46 = vpop.xlane.xlu0 %1611  ;;  %v5178_v9 = vpop.permute.xlu1 %2809  ;;  %4161 = vpow2.f32 %v1684_v4  ;;  %3852 = vmatprep.subr.msk.mxu0 %vm1949_vm4, %v5215_v58  ;;  %3909 = vmatpush3.msk.msra.mxu1 %vm1949_vm4, %v5215_v58 }
 0x61f   : > { %6339 = vst [vmem:[#allocation21_spill] sm:$0xff] %v5178_v9  ;;  %v1690_v61 = vmul.f32 1.442695, %v1612_v46  ;;  %4163 = vpow2.f32 %v1682_v22  ;;  %v1686_v46 = vmul.f32 1.442695, %v1606_v3  ;;  %3826 = vmatprep.subr.msk.mxu1 %vm1949_vm4, %v5215_v58 }
 0x620   : > { %1793 = vrot.lane.b32.xlu1 %v5181_v33, %s4225_s23 }
 0x621   : > { %4165 = vpow2.f32 %v1690_v61 }
 0x622   : > { %v1621_v8 = vpop.xlane.xlu0 %1620  ;;  %v5185_v41 = vpop.permute.xlu1 %2131  ;;  %4167 = vpow2.f32 %v1688_v5 }
 0x623   : > { %6340 = vst [vmem:[#allocation25_spill] sm:$0xff] %v5185_v41  ;;  %4169 = vpow2.f32 %v1686_v46 }
 0x624   : > { %2153 = vrot.lane.b32.xlu1 %v5181_v33, %s4226_s26 }
 0x626   : > { %v5189_v55 = vpop.permute.xlu1 %1771  ;;  %v1618_v28 = vpop.xlane.xlu0 %1617 }
 0x627   : > { %v4160_v25 = vpop.eup %4159 }
 0x628   : > { %1791 = vrot.lane.b32.xlu1 %v5192_v21, %s4225_s23  ;;  %v1739_v37 = vmul.f32 %v4160_v25, %v4957_v23  ;;  %v4162_v31 = vpop.eup %4161  ;;  %v1696_v25 = vmul.f32 1.442695, %v1621_v8 }
 0x629   : > { %v5208_v63 = vmul.f32 %v4162_v31, %v4914_v44  ;;  %v4164_v42 = vpop.eup %4163 }
 0x62a   : > { %2181 = vrot.lane.b32.xlu0 %v1739_v37, %s4225_s23  ;;  %v5198_v49 = vpop.permute.xlu1 %2469  ;;  %v5202_v43 = vpop.xlane.xlu0 %1626  ;;  %v5238_v22 = vmul.f32 %v4164_v42, %v4923_v54  ;;  %4171 = vpow2.f32 %v1696_v25 }
 0x62b   : > { %v4166_v4 = vpop.eup %4165 }
 0x62c   : > { %2151 = vrot.lane.b32.xlu1 %v5192_v21, %s4226_s26  ;;  %v1738_v61 = vmul.f32 %v4166_v4, %v4942_v51 }
 0x62e   : > { %1837 = vrot.lane.b32.xlu0 %v1739_v37, %s4229_s7  ;;  %v5205_v57 = vpop.permute.xlu1 %2807  ;;  %v5226_v16 = vpop.xlane.xlu0 %1623 }
 0x62f   : > { %6341 = vst [vmem:[#allocation23_spill] sm:$0xff] %v5205_v57 }
 0x630   : > { %1797 = vrot.lane.b32.xlu1 %v5208_v63, %s4225_s23 }
 0x632   : > { %2519 = vrot.lane.b32.xlu0 %v1739_v37, %s4226_s26  ;;  %v5218_v39 = vpop.permute.xlu1 %2137  ;;  %v1633_v3 = vpop.xlane.xlu0 %1632 }
 0x633   : > { %6342 = vst [vmem:[#allocation20_spill] sm:$0xff] %v5218_v39  ;;  %v1704_v5 = vmul.f32 1.442695, %v1633_v3 }
 0x634   : > { %2157 = vrot.lane.b32.xlu1 %v5208_v63, %s4226_s26 }
 0x635   : > { %4173 = vpow2.f32 %v1704_v5 }
 0x636   : > { %2857 = vrot.lane.b32.xlu0 %v1739_v37, %s4227_s27  ;;  %v5235_v14 = vpop.permute.xlu1 %1777  ;;  %v4168_v37 = vpop.eup %4167 }
 0x637   : > { %v5254_v42 = vmul.f32 %v4168_v37, %v4933_v52  ;;  %v4170_v46 = vpop.eup %4169 }
 0x638   : > { %1795 = vrot.lane.b32.xlu1 %v5238_v22, %s4225_s23  ;;  %v4172_v25 = vpop.eup %4171  ;;  %v5267_v37 = vmul.f32 %v4170_v46, %v4947_v34 }
 0x639   : > { %v1741_v5 = vmul.f32 %v4172_v25, %v4961_v45 }
 0x63a   : > { %2179 = vrot.lane.b32.xlu0 %v1738_v61, %s4225_s23  ;;  %v5246_v31 = vpop.permute.xlu1 %2475 }
 0x63c   : > { %2155 = vrot.lane.b32.xlu1 %v5238_v22, %s4226_s26 }
 0x63e   : > { %1835 = vrot.lane.b32.xlu0 %v1738_v61, %s4229_s7  ;;  %v5251_v8 = vpop.permute.xlu1 %2813 }
 0x63f   : > { %6343 = vst [vmem:[#allocation27_spill] sm:$0xff] %v5251_v8  ;;  %v1694_v8 = vmul.f32 1.442695, %v1618_v28  ;;  %v4174_v57 = vpop.eup %4173 }
 0x640   : > { %1801 = vrot.lane.b32.xlu1 %v5254_v42, %s4225_s23  ;;  %v5281_v28 = vmul.f32 %v4174_v57, %v4994_v53 }
 0x641   : > { %4175 = vpow2.f32 %v1694_v8 }
 0x642   : > { %2517 = vrot.lane.b32.xlu0 %v1738_v61, %s4226_s26  ;;  %v5259_v4 = vpop.permute.xlu1 %2135 }
 0x643   : > { %6344 = vst [vmem:[#allocation24_spill] sm:$0xff] %v5259_v4 }
 0x644   : > { %2161 = vrot.lane.b32.xlu1 %v5254_v42, %s4226_s26 }
 0x646   : > { %2855 = vrot.lane.b32.xlu0 %v1738_v61, %s4227_s27  ;;  %v5264_v3 = vpop.permute.xlu1 %1775 }
 0x648   : > { %1799 = vrot.lane.b32.xlu1 %v5267_v37, %s4225_s23 }
 0x64a   : > { %2185 = vrot.lane.b32.xlu0 %v1741_v5, %s4225_s23  ;;  %v5273_v9 = vpop.permute.xlu1 %2473 }
 0x64b   : > { %v4176_v8 = vpop.eup %4175 }
 0x64c   : > { %2159 = vrot.lane.b32.xlu1 %v5267_v37, %s4226_s26  ;;  %v1740_v57 = vmul.f32 %v4176_v8, %v4971_v40  ;;  %v1698_v8 = vmul.f32 1.442695, %v5226_v16 }
 0x64e   : > { %1841 = vrot.lane.b32.xlu0 %v1741_v5, %s4229_s7  ;;  %v5278_v61 = vpop.permute.xlu1 %2811 }
 0x64f   : > { %6345 = vst [vmem:[#allocation26_spill] sm:$0xff] %v5278_v61  ;;  %v1700_v61 = vmul.f32 1.442695, %v5202_v43 }
 0x650   : > { %1849 = vrot.lane.b32.xlu1 %v5281_v28, %s4229_s7 }
 0x651   : > { %4177 = vpow2.f32 %v1700_v61 }
 0x652   : > { %2523 = vrot.lane.b32.xlu0 %v1741_v5, %s4226_s26  ;;  %v5286_v46 = vpop.permute.xlu1 %2141  ;;  %4179 = vpow2.f32 %v1698_v8 }
 0x653   : > { %6346 = vst [vmem:[#allocation30_spill] sm:$0xff] %v5286_v46 }
 0x654   : > { %2481 = vrot.lane.b32.xlu1 %v5152_v56, %s4227_s27 }
 0x656   : > { %2861 = vrot.lane.b32.xlu0 %v1741_v5, %s4227_s27  ;;  %v5291_v25 = vpop.permute.xlu1 %1781 }
 0x658   : > { %2819 = vrot.lane.b32.xlu1 %v5152_v56, %s4228_s30 }
 0x65a   : > { %2183 = vrot.lane.b32.xlu0 %v1740_v57, %s4225_s23  ;;  %v5298_v39 = vpop.permute.xlu1 %2479 }
 0x65b   : > { %v4178_v43 = vpop.eup %4177 }
 0x65c   : > { %2483 = vrot.lane.b32.xlu1 %v5145_v27, %s4227_s27 }
 0x65e   : > { %1839 = vrot.lane.b32.xlu0 %v1740_v57, %s4229_s7  ;;  %v5303_v5 = vpop.permute.xlu1 %2817 }
 0x65f   : > { %6347 = vst [vmem:[#allocation31_spill] sm:$0xff] %v5303_v5  ;;  %v1743_v5 = vmul.f32 %v4178_v43, %v4979_v18  ;;  %v4180_v43 = vpop.eup %4179 }
 0x660   : > { %2821 = vrot.lane.b32.xlu1 %v5145_v27, %s4228_s30  ;;  %v1630_v27 = vpop.xlane.xlu0 %1629 }
 0x662   : > { %2521 = vrot.lane.b32.xlu0 %v1740_v57, %s4226_s26  ;;  %v5308_v56 = vpop.permute.xlu1 %2139 }
 0x663   : > { %6348 = vst [vmem:[#allocation32_spill] sm:$0xff] %v5308_v56 }
 0x664   : > { %2485 = vrot.lane.b32.xlu1 %v5170_v29, %s4227_s27  ;;  %v1639_v56 = vpop.xlane.xlu0 %1638 }
 0x666   : > { %2859 = vrot.lane.b32.xlu0 %v1740_v57, %s4227_s27  ;;  %v5313_v61 = vpop.permute.xlu1 %1779 }
 0x668   : > { %2823 = vrot.lane.b32.xlu1 %v5170_v29, %s4228_s30  ;;  %v1636_v16 = vpop.xlane.xlu0 %1635 }
 0x66a   : > { %2189 = vrot.lane.b32.xlu0 %v1743_v5, %s4225_s23  ;;  %v5320_v46 = vpop.permute.xlu1 %2477 }
 0x66c   : > { %2487 = vrot.lane.b32.xlu1 %v5159_v35, %s4227_s27  ;;  %v1645_v4 = vpop.xlane.xlu0 %1644 }
 0x66e   : > { %1845 = vrot.lane.b32.xlu0 %v1743_v5, %s4229_s7  ;;  %v5325_v57 = vpop.permute.xlu1 %2815 }
 0x66f   : > { %6349 = vst [vmem:[#allocation33_spill] sm:$0xff] %v5325_v57  ;;  %v1742_v57 = vmul.f32 %v4180_v43, %v4987_v47  ;;  %v1702_v43 = vmul.f32 1.442695, %v1630_v27 }
 0x670   : > { %2825 = vrot.lane.b32.xlu1 %v5159_v35, %s4228_s30 }
 0x671   : > { %4181 = vpow2.f32 %v1702_v43 }
 0x672   : > { %2527 = vrot.lane.b32.xlu0 %v1743_v5, %s4226_s26  ;;  %v5330_v29 = vpop.permute.xlu1 %1785 }
 0x674   : > { %2489 = vrot.lane.b32.xlu1 %v5192_v21, %s4227_s27 }
 0x676   : > { %2865 = vrot.lane.b32.xlu0 %v1743_v5, %s4227_s27  ;;  %v5335_v8 = vpop.permute.xlu1 %2145  ;;  %v1642_v5 = vpop.xlane.xlu0 %1641 }
 0x677   : > { %6350 = vst [vmem:[#allocation34_spill] sm:$0xff] %v5335_v8 }
 0x678   : > { %2827 = vrot.lane.b32.xlu1 %v5192_v21, %s4228_s30 }
 0x67a   : > { %2187 = vrot.lane.b32.xlu0 %v1742_v57, %s4225_s23  ;;  %v5341_v35 = vpop.permute.xlu1 %1783  ;;  %v5355_v8 = vpop.xlane.xlu0 %1650 }
 0x67c   : > { %2491 = vrot.lane.b32.xlu1 %v5181_v33, %s4227_s27 }
 0x67e   : > { %1843 = vrot.lane.b32.xlu0 %v1742_v57, %s4229_s7  ;;  %v5346_v59 = vpop.permute.xlu1 %2143 }
 0x67f   : > { %6351 = vst [vmem:[#allocation35_spill] sm:$0xff] %v5346_v59  ;;  %v5366_v59 = vpop.xlane.xlu0 %1647 }
 0x680   : > { %2829 = vrot.lane.b32.xlu1 %v5181_v33, %s4228_s30 }
 0x682   : > { %2525 = vrot.lane.b32.xlu0 %v1742_v57, %s4226_s26  ;;  %v5351_v21 = vpop.permute.xlu1 %1789 }
 0x684   : > { %2493 = vrot.lane.b32.xlu1 %v5238_v22, %s4227_s27 }
 0x686   : > { %2863 = vrot.lane.b32.xlu0 %v1742_v57, %s4227_s27  ;;  %v5358_v41 = vpop.permute.xlu1 %2149  ;;  %v4182_v57 = vpop.eup %4181 }
 0x687   : > { %6352 = vst [vmem:[#allocation36_spill] sm:$0xff] %v5358_v41  ;;  %v1708_v41 = vmul.f32 1.442695, %v1639_v56  ;;  %v1744_v52 = vmul.f32 %v4182_v57, %v5016_v38  ;;  %v1706_v56 = vmul.f32 1.442695, %v1636_v16 }
 0x688   : > { %2831 = vrot.lane.b32.xlu1 %v5238_v22, %s4228_s30  ;;  %v5376_v22 = vpop.xlane.xlu0 %1656 }
 0x689   : > { %4183 = vpow2.f32 %v1708_v41  ;;  %v1194_v41 = vadd.f32 %v4942_v51, %v4818_v30 }
 0x68a   : > { %2193 = vrot.lane.b32.xlu0 %v5281_v28, %s4225_s23  ;;  %v5364_v33 = vpop.permute.xlu1 %1787  ;;  %4185 = vpow2.f32 %v1706_v56 }
 0x68c   : > { %2495 = vrot.lane.b32.xlu1 %v5208_v63, %s4227_s27 }
 0x68e   : > { %2531 = vrot.lane.b32.xlu0 %v5281_v28, %s4226_s26  ;;  %v5372_v27 = vpop.permute.xlu1 %2147 }
 0x68f   : > { %6353 = vst [vmem:[#allocation37_spill] sm:$0xff] %v5372_v27 }
 0x690   : > { %2833 = vrot.lane.b32.xlu1 %v5208_v63, %s4228_s30  ;;  %v5388_v63 = vpop.xlane.xlu0 %1653 }
 0x692   : > { %2869 = vrot.lane.b32.xlu0 %v5281_v28, %s4227_s27  ;;  %v5380_v43 = vpop.permute.xlu1 %1793 }
 0x693   : > { %6354 = vst [vmem:[#allocation38_spill] sm:$0xff] %v5380_v43  ;;  %v1712_v43 = vmul.f32 1.442695, %v1645_v4  ;;  %v1200_v4 = vadd.f32 %v5016_v38, %v4866_v13 }
 0x694   : > { %2497 = vrot.lane.b32.xlu1 %v5267_v37, %s4227_s27 }
 0x695   : > { %4187 = vpow2.f32 %v1712_v43  ;;  %v1216_v43 = vmul.f32 0.5, %v1200_v4 }
 0x696   : > { %1847 = vrot.lane.b32.xlu0 %v1744_v52, %s4229_s7  ;;  %v5386_v27 = vpop.permute.xlu1 %2153 }
 0x697   : > { %6355 = vst [vmem:[#allocation39_spill] sm:$0xff] %v5386_v27 }
 0x698   : > { %2835 = vrot.lane.b32.xlu1 %v5267_v37, %s4228_s30  ;;  %v4184_v37 = vpop.eup %4183 }
 0x699   : > { %v5415_v30 = vmul.f32 %v4184_v37, %v5031_v20  ;;  %v4186_v15 = vpop.eup %4185  ;;  %v1202_v37 = vadd.f32 %v5038_v62, %v4893_v48 }
 0x69a   : > { %2191 = vrot.lane.b32.xlu0 %v1744_v52, %s4225_s23  ;;  %v5393_v28 = vpop.permute.xlu1 %1791 }
 0x69b   : > { %6356 = vst [vmem:[#allocation40_spill] sm:$0xff] %v5393_v28  ;;  %v1218_v48 = vmul.f32 0.5, %v1202_v37  ;;  %v1208_v37 = vadd.f32 %v5082_v11, %v4947_v34 }
 0x69c   : > { %v5395_v44 = vpop.permute.xlu0 %2181  ;;  %2499 = vrot.lane.b32.xlu1 %v5254_v42, %s4227_s27 }
 0x69d   : > { %6357 = vst [vmem:[#allocation41_spill] sm:$0xff] %v5395_v44  ;;  %v1210_v44 = vmul.f32 0.5, %v1194_v41  ;;  %v1710_v41 = vmul.f32 1.442695, %v1642_v5 }
 0x69e   : > { %2529 = vrot.lane.b32.xlu0 %v1744_v52, %s4226_s26  ;;  %v5400_v57 = vpop.permute.xlu1 %2151 }
 0x69f   : > { %4189 = vpow2.f32 %v1710_v41  ;;  %v4188_v38 = vpop.eup %4187 }
 0x6a0   : > { %v1838_v27 = vpop.permute.xlu0 %1837  ;;  %2837 = vrot.lane.b32.xlu1 %v5254_v42, %s4228_s30  ;;  %v1198_v42 = vadd.f32 %v4987_v47, %v4850_v17  ;;  %v5436_v17 = vmul.f32 %v4186_v15, %v5038_v62  ;;  %v1204_v62 = vadd.f32 %v5053_v10, %v4907_v50  ;;  %v1716_v15 = vmul.f32 1.442695, %v5355_v8 }
 0x6a1   : > { %v1206_v8 = vadd.f32 %v5067_v32, %v4923_v54 }
 0x6a2   : > { %2867 = vrot.lane.b32.xlu0 %v1744_v52, %s4227_s27  ;;  %v5407_v16 = vpop.permute.xlu1 %1797  ;;  %v1212_v52 = vmul.f32 0.5, %v1196_v36  ;;  %v1214_v40 = vmul.f32 0.5, %v1198_v42  ;;  %v1220_v50 = vmul.f32 0.5, %v1204_v62  ;;  %4191 = vpow2.f32 %v1716_v15 }
 0x6a3   : > { %v1720_v62 = vmul.f32 1.442695, %v5376_v22  ;;  %v1718_v22 = vmul.f32 1.442695, %v5388_v63 }
 0x6a4   : > { %v5411_v28 = vpop.permute.xlu0 %2519  ;;  %1242 = vrot.lane.b32.xlu1 %v1210_v44, %s4225_s23 }
 0x6a6   : > { %1853 = vrot.lane.b32.xlu0 %v5415_v30, %s4229_s7  ;;  %v5419_v51 = vpop.permute.xlu1 %2157 }
 0x6a8   : > { %v5423_v56 = vpop.permute.xlu0 %2857  ;;  %1246 = vrot.lane.b32.xlu1 %v1212_v52, %s4225_s23  ;;  %v1885_v52 = vsel %vm1883_vm6, %v5167_v7, %v1838_v27  ;;  %v5462_v7 = vmul.f32 %v4188_v38, %v5046_v26 }
 0x6a9   : > { %6358 = vst [vmem:[#allocation42_spill] sm:$0xff] %v5423_v56  ;;  %v4190_v4 = vpop.eup %4189 }
 0x6aa   : > { %2197 = vrot.lane.b32.xlu0 %v5415_v30, %s4225_s23  ;;  %v5428_v44 = vpop.permute.xlu1 %1795  ;;  %v5486_v54 = vmul.f32 %v4190_v4, %v5053_v10 }
 0x6ac   : > { %v5432_v36 = vpop.permute.xlu0 %2179  ;;  %1250 = vrot.lane.b32.xlu1 %v1214_v40, %s4225_s23  ;;  %v4192_v34 = vpop.eup %4191 }
 0x6ad   : > { %v5501_v15 = vmul.f32 %v4192_v34, %v5060_v6 }
 0x6ae   : > { %1851 = vrot.lane.b32.xlu0 %v5436_v17, %s4229_s7  ;;  %v5440_v47 = vpop.permute.xlu1 %2155 }
 0x6b0   : > { %v1836_v13 = vpop.permute.xlu0 %1835  ;;  %1254 = vrot.lane.b32.xlu1 %v1216_v43, %s4225_s23  ;;  %v1222_v43 = vmul.f32 0.5, %v1206_v8 }
 0x6b1   : > { %v1884_v5 = vsel %vm1883_vm6, %v5189_v55, %v1836_v13  ;;  %v1714_v13 = vmul.f32 1.442695, %v5366_v59 }
 0x6b2   : > { %2195 = vrot.lane.b32.xlu0 %v5436_v17, %s4225_s23  ;;  %3802 = vmatprep.mubr.msk.f32.mxu0 %vm1900_vm5, %v1884_v5  ;;  %v5452_v42 = vpop.permute.xlu1 %1801 }
 0x6b3   : > { %3803 = vmatmul.mubr.msk.f32.vlgmr.msra.gmra.mrb[16].mxu0 %vm1900_vm5, %v1885_v52  ;;  %v1224_v52 = vmul.f32 0.5, %v1208_v37  ;;  %4193 = vpow2.f32 %v1714_v13 }
 0x6b4   : > { %v5458_v40 = vpop.permute.xlu0 %2517  ;;  %1258 = vrot.lane.b32.xlu1 %v1218_v48, %s4225_s23  ;;  %3853 = vmatpush3.msk.msra.mxu0 %vm1949_vm4, %v5215_v58  ;;  %4195 = vpow2.f32 %v1720_v62 }
 0x6b5   : > { %4197 = vpow2.f32 %v1718_v22 }
 0x6b6   : > { %1857 = vrot.lane.b32.xlu0 %v5462_v7, %s4229_s7  ;;  %v5468_v55 = vpop.permute.xlu1 %2161 }
 0x6b7   : > { %6359 = vst [vmem:[#allocation43_spill] sm:$0xff] %v5468_v55 }
 0x6b8   : > { %v5472_v27 = vpop.permute.xlu0 %2855  ;;  %1262 = vrot.lane.b32.xlu1 %v1220_v50, %s4225_s23 }
 0x6b9   : > { %6360 = vst [vmem:[#allocation44_spill] sm:$0xff] %v5472_v27 }
 0x6ba   : > { %2201 = vrot.lane.b32.xlu0 %v5462_v7, %s4225_s23  ;;  %v5477_v41 = vpop.permute.xlu1 %1799 }
 0x6bc   : > { %v5482_v38 = vpop.permute.xlu0 %2185  ;;  %1266 = vrot.lane.b32.xlu1 %v1222_v43, %s4225_s23 }
 0x6bd   : > { %v4194_v4 = vpop.eup %4193 }
 0x6be   : > { %1855 = vrot.lane.b32.xlu0 %v5486_v54, %s4229_s7  ;;  %v5490_v5 = vpop.permute.xlu1 %2159  ;;  %v5517_v13 = vmul.f32 %v4194_v4, %v5067_v32  ;;  %v4196_v62 = vpop.eup %4195 }
 0x6bf   : > { %6361 = vst [vmem:[#allocation45_spill] sm:$0xff] %v5490_v5  ;;  %v5532_v4 = vmul.f32 %v4196_v62, %v5075_v60 }
 0x6c0   : > { %v1842_v48 = vpop.permute.xlu0 %1841  ;;  %1270 = vrot.lane.b32.xlu1 %v1224_v52, %s4225_s23 }
 0x6c2   : > { %2199 = vrot.lane.b32.xlu0 %v5486_v54, %s4225_s23  ;;  %v5495_v59 = vpop.permute.xlu1 %1849 }
 0x6c4   : > { %v5498_v10 = vpop.permute.xlu0 %2523 }
 0x6c6   : > { %1861 = vrot.lane.b32.xlu0 %v5501_v15, %s4229_s7  ;;  %v5505_v50 = vpop.permute.xlu1 %2481 }
 0x6c8   : > { %v5507_v8 = vpop.permute.xlu0 %2861 }
 0x6c9   : > { %6362 = vst [vmem:[#allocation46_spill] sm:$0xff] %v5507_v8 }
 0x6ca   : > { %2205 = vrot.lane.b32.xlu0 %v5501_v15, %s4225_s23  ;;  %v5511_v43 = vpop.permute.xlu1 %2819 }
 0x6cb   : > { %6363 = vst [vmem:[#allocation47_spill] sm:$0xff] %v5511_v43  ;;  %v1887_v43 = vsel %vm1883_vm6, %v5235_v14, %v1842_v48  ;;  %v4198_v14 = vpop.eup %4197 }
 0x6cc   : > { %v5514_v37 = vpop.permute.xlu0 %2183 }
 0x6ce   : > { %1859 = vrot.lane.b32.xlu0 %v5517_v13, %s4229_s7  ;;  %v5521_v52 = vpop.permute.xlu1 %2483 }
 0x6d0   : > { %v1840_v34 = vpop.permute.xlu0 %1839 }
 0x6d1   : > { %v1886_v8 = vsel %vm1883_vm6, %v5264_v3, %v1840_v34 }
 0x6d2   : > { %2203 = vrot.lane.b32.xlu0 %v5517_v13, %s4225_s23  ;;  %3805 = vmatprep.mubr.msk.f32.mxu0 %vm1900_vm5, %v1886_v8  ;;  %v2822_v32 = vpop.permute.xlu1 %2821 }
 0x6d3   : > { %3806 = vmatmul.mubr.msk.f32.gmra.mrb[18].mxu0 %vm1900_vm5, %v1887_v43  ;;  %v5547_v43 = vmul.f32 %v4198_v14, %v5082_v11 }
 0x6d4   : > { %v2522_v63 = vpop.permute.xlu0 %2521 }
 0x6d6   : > { %1865 = vrot.lane.b32.xlu0 %v5532_v4, %s4229_s7  ;;  %v5536_v22 = vpop.permute.xlu1 %2485 }
 0x6d8   : > { %v5538_v3 = vpop.permute.xlu0 %2859 }
 0x6d9   : > { %6364 = vst [vmem:[#allocation48_spill] sm:$0xff] %v5538_v3 }
 0x6da   : > { %2209 = vrot.lane.b32.xlu0 %v5532_v4, %s4225_s23  ;;  %v5542_v48 = vpop.permute.xlu1 %2823 }
 0x6db   : > { %6365 = vst [vmem:[#allocation49_spill] sm:$0xff] %v5542_v48 }
 0x6dc   : > { %v5544_v8 = vpop.permute.xlu0 %2189 }
 0x6de   : > { %1863 = vrot.lane.b32.xlu0 %v5547_v43, %s4229_s7  ;;  %v5551_v34 = vpop.permute.xlu1 %2487 }
 0x6e0   : > { %v1846_v62 = vpop.permute.xlu0 %1845 }
 0x6e1   : > { %v1889_v5 = vsel %vm1883_vm6, %v5291_v25, %v1846_v62  ;;  %v2566_v25 = vsel %vm1883_vm6, %v5174_v12, %v5411_v28  ;;  %v1891_v62 = vsel %vm1883_vm6, %v5330_v29, %v5495_v59 }
 0x6e2   : > { %2533 = vrot.lane.b32.xlu0 %v5436_v17, %s4226_s26  ;;  %v5555_v3 = vpop.permute.xlu1 %2825 }
 0x6e3   : > { %6366 = vst [vmem:[#allocation50_spill] sm:$0xff] %v5555_v3 }
 0x6e4   : > { %v2528_v56 = vpop.permute.xlu0 %2527 }
 0x6e6   : > { %2871 = vrot.lane.b32.xlu0 %v5436_v17, %s4227_s27  ;;  %v5559_v48 = vpop.permute.xlu1 %2489 }
 0x6e8   : > { %v5561_v27 = vpop.permute.xlu0 %2865 }
 0x6e9   : > { %6367 = vst [vmem:[#allocation51_spill] sm:$0xff] %v5561_v27 }
 0x6ea   : > { %2535 = vrot.lane.b32.xlu0 %v5415_v30, %s4226_s26  ;;  %v5565_v11 = vpop.permute.xlu1 %2827 }
 0x6eb   : > { %6368 = vst [vmem:[#allocation52_spill] sm:$0xff] %v5565_v11 }
 0x6ec   : > { %v5567_v14 = vpop.permute.xlu0 %2187 }
 0x6ee   : > { %2873 = vrot.lane.b32.xlu0 %v5415_v30, %s4227_s27  ;;  %v5571_v55 = vpop.permute.xlu1 %2491  ;;  %v2565_v30 = vsel %vm1883_vm6, %v5198_v49, %v5458_v40  ;;  %v2568_v40 = vsel %vm1883_vm6, %v5246_v31, %v5498_v10 }
 0x6f0   : > { %v1844_v3 = vpop.permute.xlu0 %1843 }
 0x6f1   : > { %v1888_v17 = vsel %vm1883_vm6, %v5313_v61, %v1844_v3  ;;  %v2567_v3 = vsel %vm1883_vm6, %v5273_v9, %v2522_v63 }
 0x6f2   : > { %2537 = vrot.lane.b32.xlu0 %v5486_v54, %s4226_s26  ;;  %3808 = vmatprep.mubr.msk.f32.mxu0 %vm1900_vm5, %v1888_v17  ;;  %v5580_v11 = vpop.permute.xlu1 %2829 }
 0x6f3   : > { %3809 = vmatmul.mubr.msk.f32.gmra.mrb[20].mxu0 %vm1900_vm5, %v1889_v5 }
 0x6f4   : > { %v2526_v27 = vpop.permute.xlu0 %2525  ;;  %3854 = vmatprep.mubr.msk.f32.mxu0 %vm1900_vm5, %v2565_v30 }
 0x6f5   : > { %v2569_v28 = vsel %vm1883_vm6, %v5320_v46, %v2526_v27 }
 0x6f6   : > { %2875 = vrot.lane.b32.xlu0 %v5486_v54, %s4227_s27  ;;  %v5592_v61 = vpop.permute.xlu1 %2493  ;;  %v2570_v54 = vsel %vm1883_vm6, %v5298_v39, %v2528_v56 }
 0x6f7   : > { %3855 = vmatmul.mubr.msk.f32.vlgmr.msra.gmra.mrb[22].mxu0 %vm1900_vm5, %v2566_v25 }
 0x6f8   : > { %v5597_v49 = vpop.permute.xlu0 %2863  ;;  %3857 = vmatprep.mubr.msk.f32.mxu0 %vm1900_vm5, %v2567_v3 }
 0x6fa   : > { %2539 = vrot.lane.b32.xlu0 %v5462_v7, %s4226_s26  ;;  %v5605_v12 = vpop.permute.xlu1 %2831 }
 0x6fb   : > { %3858 = vmatmul.mubr.msk.f32.gmra.mrb[24].mxu0 %vm1900_vm5, %v2568_v40 }
 0x6fc   : > { %v5610_v9 = vpop.permute.xlu0 %2193  ;;  %3860 = vmatprep.mubr.msk.f32.mxu0 %vm1900_vm5, %v2569_v28  ;;  %v1195_v28 = vadd.f32 %v4957_v23, %v4812_v24  ;;  %v1197_v23 = vadd.f32 %v4961_v45, %v4828_v2  ;;  %v1201_v2 = vadd.f32 %v4994_v53, %v4858_v0 }
 0x6fe   : > { %2207 = vrot.lane.b32.xlu0 %v5547_v43, %s4225_s23  ;;  %v5617_v31 = vpop.permute.xlu1 %2495  ;;  %v1211_v24 = vmul.f32 0.5, %v1195_v28 }
 0x6ff   : > { %3861 = vmatmul.mubr.msk.f32.gmra.mrb[26].mxu0 %vm1900_vm5, %v2570_v54 }
 0x700   : > { %v2532_v5 = vpop.permute.xlu0 %2531 }
 0x702   : > { %2877 = vrot.lane.b32.xlu0 %v5462_v7, %s4227_s27  ;;  %v5622_v46 = vpop.permute.xlu1 %2833 }
 0x704   : > { %v2870_v27 = vpop.permute.xlu0 %2869 }
 0x705   : > { %v5625_v10 = vsel %vm1883_vm6, %v2822_v32, %v2870_v27 }
 0x706   : > { %2541 = vrot.lane.b32.xlu0 %v5517_v13, %s4226_s26  ;;  %v5629_v39 = vpop.permute.xlu1 %2497 }
 0x708   : > { %v1848_v56 = vpop.permute.xlu0 %1847 }
 0x709   : > { %v1890_v63 = vsel %vm1883_vm6, %v5341_v35, %v1848_v56  ;;  %v1199_v56 = vadd.f32 %v4979_v18, %v4843_v19  ;;  %v1203_v19 = vadd.f32 %v5031_v20, %v4886_v1  ;;  %v6369_v18 = vld [vmem:[#allocation40_spill] sm:$0xff] }
 0x70a   : > { %2879 = vrot.lane.b32.xlu0 %v5517_v13, %s4227_s27  ;;  %3811 = vmatprep.mubr.msk.f32.mxu1 %vm1900_vm5, %v1890_v63  ;;  %v5639_v7 = vpop.permute.xlu1 %2835  ;;  %v2572_v13 = vsel %vm1883_vm6, %v5521_v52, %v2532_v5 }
 0x70b   : > { %3812 = vmatmul.mubr.msk.f32.vlgmr.msra.gmra.mrb[0].mxu1 %vm1900_vm5, %v1891_v62 }
 0x70c   : > { %v5642_v32 = vpop.permute.xlu0 %2191  ;;  %3827 = vmatpush3.msk.msra.mxu1 %vm1949_vm4, %v5215_v58 }
 0x70d   : > { %3878 = vmatprep.subr.msk.mxu1 %vm1949_vm4, %v5215_v58 }
 0x70e   : > { %2543 = vrot.lane.b32.xlu0 %v5501_v15, %s4226_s26  ;;  %v5650_v29 = vpop.permute.xlu1 %2499 }
 0x710   : > { %v2530_v35 = vpop.permute.xlu0 %2529 }
 0x711   : > { %v2571_v59 = vsel %vm1883_vm6, %v5505_v50, %v2530_v35  ;;  %v1215_v35 = vmul.f32 0.5, %v1199_v56 }
 0x712   : > { %2881 = vrot.lane.b32.xlu0 %v5501_v15, %s4227_s27  ;;  %3863 = vmatprep.mubr.msk.f32.mxu0 %vm1900_vm5, %v2571_v59  ;;  %v5659_v17 = vpop.permute.xlu1 %2837 }
 0x713   : > { %3864 = vmatmul.mubr.msk.f32.gmra.mrb[28].mxu0 %vm1900_vm5, %v2572_v13  ;;  %v1217_v13 = vmul.f32 0.5, %v1201_v2 }
 0x714   : > { %v5662_v30 = vpop.permute.xlu0 %2867 }
 0x716   : > { %2547 = vrot.lane.b32.xlu0 %v5532_v4, %s4226_s26  ;;  %v1243_v15 = vpop.permute.xlu1 %1242 }
 0x717   : > { %1290 = vst.msk [vmem:[%s5668_s13] sm:$0xff] %vm905_vm2, %v1243_v15 }
 0x718   : > { %v1854_v50 = vpop.permute.xlu0 %1853 }
 0x719   : > { %v1893_v5 = vsel %vm1883_vm6, %v5351_v21, %v1854_v50  ;;  %v6370_v50 = vld [vmem:[#allocation38_spill] sm:$0xff] }
 0x71a   : > { %2545 = vrot.lane.b32.xlu0 %v5547_v43, %s4226_s26  ;;  %v1247_v52 = vpop.permute.xlu1 %1246 }
 0x71b   : > { %1292 = vst.msk [vmem:[%s5668_s13 + $0x10] sm:$0xff] %vm905_vm2, %v1247_v52 }
 0x71c   : > { %v5678_v25 = vpop.permute.xlu0 %2197 }
 0x71e   : > { %2883 = vrot.lane.b32.xlu0 %v5547_v43, %s4227_s27  ;;  %v1251_v3 = vpop.permute.xlu1 %1250 }
 0x71f   : > { %1294 = vst.msk [vmem:[%s5668_s13 + $0x20] sm:$0xff] %vm905_vm2, %v1251_v3  ;;  %v1219_v3 = vmul.f32 0.5, %v1203_v19  ;;  %v6375_v19 = vld [vmem:[#allocation41_spill] sm:$0xff] }
 0x720   : > { %v1852_v40 = vpop.permute.xlu0 %1851 }
 0x721   : > { %v1892_v54 = vsel %vm1883_vm6, %v5364_v33, %v1852_v40  ;;  %v6371_v40 = vld [vmem:[#allocation28_spill] sm:$0xff] }
 0x722   : > { %2885 = vrot.lane.b32.xlu0 %v5532_v4, %s4227_s27  ;;  %3814 = vmatprep.mubr.msk.f32.mxu1 %vm1900_vm5, %v1892_v54  ;;  %v1255_v43 = vpop.permute.xlu1 %1254  ;;  %v1213_v4 = vmul.f32 0.5, %v1197_v23  ;;  %v1205_v1 = vadd.f32 %v5046_v26, %v6371_v40  ;;  %v6372_v54 = vld [vmem:[#allocation29_spill] sm:$0xff]  ;;  %v6373_v23 = vld [vmem:[#allocation19_spill] sm:$0xff]  ;;  %v6380_v40 = vld [vmem:[#allocation30_spill] sm:$0xff] }
 0x723   : > { %1296 = vst.msk [vmem:[%s5668_s13 + $0x30] sm:$0xff] %vm905_vm2, %v1255_v43  ;;  %3815 = vmatmul.mubr.msk.f32.gmra.mrb[2].mxu1 %vm1900_vm5, %v1893_v5  ;;  %v1207_v5 = vadd.f32 %v5060_v6, %v6372_v54 }
 0x724   : > { %v5696_v27 = vpop.permute.xlu0 %2195  ;;  %v1221_v28 = vmul.f32 0.5, %v1205_v1 }
 0x726   : > { %1244 = vrot.lane.b32.xlu0 %v1211_v24, %s4225_s23  ;;  %v1259_v21 = vpop.permute.xlu1 %1258  ;;  %v1223_v24 = vmul.f32 0.5, %v1207_v5  ;;  %v6384_v5 = vld [vmem:[#allocation36_spill] sm:$0xff] }
 0x727   : > { %1298 = vst.msk [vmem:[%s5668_s13 + $0x40] sm:$0xff] %vm905_vm2, %v1259_v21  ;;  %v1209_v21 = vadd.f32 %v5075_v60, %v6373_v23  ;;  %v6385_v23 = vld [vmem:[#allocation39_spill] sm:$0xff] }
 0x728   : > { %v1858_v33 = vpop.permute.xlu0 %1857 }
 0x729   : > { %v1895_v52 = vsel %vm1883_vm6, %v6370_v50, %v1858_v33 }
 0x72a   : > { %1248 = vrot.lane.b32.xlu0 %v1213_v4, %s4225_s23  ;;  %v1263_v63 = vpop.permute.xlu1 %1262  ;;  %v1225_v4 = vmul.f32 0.5, %v1209_v21 }
 0x72b   : > { %1300 = vst.msk [vmem:[%s5668_s13 + $0x50] sm:$0xff] %vm905_vm2, %v1263_v63 }
 0x72c   : > { %v5708_v62 = vpop.permute.xlu0 %2201 }
 0x72d   : > { %v2238_v21 = vsel %vm1883_vm6, %v6385_v23, %v5708_v62  ;;  %v6386_v62 = vld [vmem:[#allocation45_spill] sm:$0xff] }
 0x72e   : > { %1252 = vrot.lane.b32.xlu0 %v1215_v35, %s4225_s23  ;;  %v1267_v45 = vpop.permute.xlu1 %1266 }
 0x72f   : > { %1302 = vst.msk [vmem:[%s5668_s13 + $0x60] sm:$0xff] %vm905_vm2, %v1267_v45 }
 0x730   : > { %v1856_v59 = vpop.permute.xlu0 %1855 }
 0x731   : > { %v1894_v15 = vsel %vm1883_vm6, %v6369_v18, %v1856_v59  ;;  %v6376_v18 = vld [vmem:[#allocation22_spill] sm:$0xff] }
 0x732   : > { %1256 = vrot.lane.b32.xlu0 %v1217_v13, %s4225_s23  ;;  %3817 = vmatprep.mubr.msk.f32.mxu1 %vm1900_vm5, %v1894_v15  ;;  %v1271_v0 = vpop.permute.xlu1 %1270 }
 0x733   : > { %1304 = vst.msk [vmem:[%s5668_s13 + $0x70] sm:$0xff] %vm905_vm2, %v1271_v0  ;;  %3818 = vmatmul.mubr.msk.f32.gmra.mrb[4].mxu1 %vm1900_vm5, %v1895_v52  ;;  %v6379_v52 = vld [vmem:[#allocation32_spill] sm:$0xff] }
 0x734   : > { %v2200_v53 = vpop.permute.xlu0 %2199  ;;  %v2231_v0 = vsel %vm1883_vm6, %v6379_v52, %v5567_v14 }
 0x736   : > { %1260 = vrot.lane.b32.xlu0 %v1219_v3, %s4225_s23 }
 0x738   : > { %v1862_v20 = vpop.permute.xlu0 %1861 }
 0x739   : > { %v1897_v56 = vsel %vm1883_vm6, %v5407_v16, %v1862_v20  ;;  %v6374_v16 = vld [vmem:[#allocation25_spill] sm:$0xff]  ;;  %v6382_v20 = vld [vmem:[#allocation34_spill] sm:$0xff] }
 0x73a   : > { %1264 = vrot.lane.b32.xlu0 %v1221_v28, %s4225_s23  ;;  %v2234_v28 = vsel %vm1883_vm6, %v6382_v20, %v5610_v9  ;;  %v2237_v9 = vsel %vm1883_vm6, %v5400_v57, %v2200_v53  ;;  %v6403_v20 = vld [vmem:[#allocation3_spill] sm:$0xff] }
 0x73c   : > { %v2206_v43 = vpop.permute.xlu0 %2205 }
 0x73d   : > { %v2240_v53 = vsel %vm1883_vm6, %v5419_v51, %v2206_v43  ;;  %v6390_v43 = vld [vmem:[#allocation42_spill] sm:$0xff] }
 0x73e   : > { %1268 = vrot.lane.b32.xlu0 %v1223_v24, %s4225_s23  ;;  %v2236_v24 = vsel %vm1883_vm6, %v6384_v5, %v5678_v25 }
 0x740   : > { %v1860_v33 = vpop.permute.xlu0 %1859 }
 0x741   : > { %v1896_v26 = vsel %vm1883_vm6, %v5428_v44, %v1860_v33  ;;  %v2227_v44 = vsel %vm1883_vm6, %v6374_v16, %v5432_v36 }
 0x742   : > { %1272 = vrot.lane.b32.xlu0 %v1225_v4, %s4225_s23  ;;  %3820 = vmatprep.mubr.msk.f32.mxu1 %vm1900_vm5, %v1896_v26 }
 0x743   : > { %3821 = vmatmul.mubr.msk.f32.gmra.mrb[6].mxu1 %vm1900_vm5, %v1897_v56  ;;  %v6388_v56 = vld [vmem:[#allocation44_spill] sm:$0xff] }
 0x744   : > { %v2204_v6 = vpop.permute.xlu0 %2203 }
 0x748   : > { %v1866_v63 = vpop.permute.xlu0 %1865 }
 0x749   : > { %v1899_v45 = vsel %vm1883_vm6, %v5452_v42, %v1866_v63  ;;  %v6377_v42 = vld [vmem:[#allocation24_spill] sm:$0xff]  ;;  %v6391_v63 = vld [vmem:[#allocation21_spill] sm:$0xff] }
 0x74a   : > { %v2229_v15 = vsel %vm1883_vm6, %v6377_v42, %v5514_v37 }
 0x74c   : > { %v2210_v35 = vpop.permute.xlu0 %2209 }
 0x750   : > { %v1864_v60 = vpop.permute.xlu0 %1863 }
 0x751   : > { %v1898_v2 = vsel %vm1883_vm6, %v5477_v41, %v1864_v60  ;;  %v2228_v41 = vsel %vm1883_vm6, %v6376_v18, %v6375_v19  ;;  %v2904_v60 = vsel %vm1883_vm6, %v6391_v63, %v6390_v43  ;;  %v6396_v18 = vld [vmem:[#allocation33_spill] sm:$0xff] }
 0x752   : > { %3823 = vmatprep.mubr.msk.f32.mxu1 %vm1900_vm5, %v1898_v2  ;;  %v6392_v2 = vld [vmem:[#allocation48_spill] sm:$0xff] }
 0x753   : > { %3824 = vmatmul.mubr.msk.f32.gmra.mrb[8].mxu1 %vm1900_vm5, %v1899_v45  ;;  %v6393_v45 = vld [vmem:[#allocation26_spill] sm:$0xff] }
 0x754   : > { %v2534_v59 = vpop.permute.xlu0 %2533  ;;  %3828 = vmatprep.mubr.msk.f32.mxu1 %vm1900_vm5, %v2227_v44  ;;  %v2905_v16 = vsel %vm1883_vm6, %v6393_v45, %v6392_v2 }
 0x755   : > { %v2573_v13 = vsel %vm1883_vm6, %v5536_v22, %v2534_v59  ;;  %v6378_v22 = vld [vmem:[#allocation20_spill] sm:$0xff]  ;;  %v6394_v59 = vld [vmem:[#allocation46_spill] sm:$0xff] }
 0x756   : > { %3866 = vmatprep.mubr.msk.f32.mxu0 %vm1900_vm5, %v2573_v13  ;;  %v2230_v50 = vsel %vm1883_vm6, %v6378_v22, %v5482_v38  ;;  %v6381_v38 = vld [vmem:[#allocation35_spill] sm:$0xff] }
 0x757   : > { %3829 = vmatmul.mubr.msk.f32.vlgmr.msra.gmra.mrb[10].mxu1 %vm1900_vm5, %v2228_v41  ;;  %v2233_v1 = vsel %vm1883_vm6, %v6381_v38, %v5642_v32  ;;  %v6395_v13 = vld [vmem:[#allocation27_spill] sm:$0xff]  ;;  %v2907_v41 = vsel %vm1883_vm6, %v6396_v18, %v5597_v49 }
 0x758   : > { %v5762_v36 = vpop.permute.xlu0 %2871  ;;  %3831 = vmatprep.mubr.msk.f32.mxu1 %vm1900_vm5, %v2229_v15  ;;  %3879 = vmatpush3.msk.msra.mxu1 %vm1949_vm4, %v5215_v58  ;;  %v2232_v58 = vsel %vm1883_vm6, %v6380_v40, %v5544_v8  ;;  %v2906_v19 = vsel %vm1883_vm6, %v6395_v13, %v6394_v59  ;;  %v6397_v15 = vld [vmem:[#allocation51_spill] sm:$0xff]  ;;  %v6401_v40 = vld [vmem:[#allocation50_spill] sm:$0xff] }
 0x759   : > { %v6398_v22 = vld [vmem:[#allocation31_spill] sm:$0xff] }
 0x75b   : > { %3832 = vmatmul.mubr.msk.f32.gmra.mrb[12].mxu1 %vm1900_vm5, %v2230_v50  ;;  %v2908_v50 = vsel %vm1883_vm6, %v6398_v22, %v6397_v15  ;;  %v6409_v15 = vld [vmem:[#allocation8_spill] sm:$0xff] }
 0x75c   : > { %v2536_v37 = vpop.permute.xlu0 %2535  ;;  %3834 = vmatprep.mubr.msk.f32.mxu1 %vm1900_vm5, %v2231_v0 }
 0x75d   : > { %v2574_v3 = vsel %vm1883_vm6, %v5551_v34, %v2536_v37  ;;  %v6383_v34 = vld [vmem:[#allocation37_spill] sm:$0xff] }
 0x75e   : > { %3867 = vmatmul.mubr.msk.f32.gmra.mrb[30].mxu0 %vm1900_vm5, %v2574_v3  ;;  %v2235_v54 = vsel %vm1883_vm6, %v6383_v34, %v5696_v27  ;;  %v6400_v37 = vld [vmem:[#allocation49_spill] sm:$0xff] }
 0x75f   : > { %3835 = vmatmul.mubr.msk.f32.gmra.mrb[14].mxu1 %vm1900_vm5, %v2232_v58  ;;  %v2911_v3 = vsel %vm1883_vm6, %v6400_v37, %v5762_v36  ;;  %v6404_v36 = vld [vmem:[#allocation4_spill] sm:$0xff] }
 0x760   : > { %v2874_v14 = vpop.permute.xlu0 %2873  ;;  %3837 = vmatprep.mubr.msk.f32.mxu1 %vm1900_vm5, %v2233_v1  ;;  %v6402_v1 = vld [vmem:[#allocation52_spill] sm:$0xff] }
 0x761   : > { %v2912_v58 = vsel %vm1883_vm6, %v6401_v40, %v2874_v14  ;;  %v6411_v40 = vld [vmem:[#allocation10_spill] sm:$0xff] }
 0x763   : > { %3838 = vmatmul.mubr.msk.f32.gmra.mrb[16].mxu1 %vm1900_vm5, %v2234_v28 }
 0x764   : > { %v2538_v8 = vpop.permute.xlu0 %2537  ;;  %3840 = vmatprep.mubr.msk.f32.mxu1 %vm1900_vm5, %v2235_v54 }
 0x765   : > { %v2575_v32 = vsel %vm1883_vm6, %v5559_v48, %v2538_v8  ;;  %v2239_v48 = vsel %vm1883_vm6, %v5440_v47, %v2204_v6  ;;  %v6387_v47 = vld [vmem:[#allocation43_spill] sm:$0xff] }
 0x766   : > { %3869 = vmatprep.mubr.msk.f32.mxu0 %vm1900_vm5, %v2575_v32  ;;  %v2242_v26 = vsel %vm1883_vm6, %v6387_v47, %v2210_v35  ;;  %v6389_v6 = vld [vmem:[#allocation23_spill] sm:$0xff] }
 0x767   : > { %3841 = vmatmul.mubr.msk.f32.gmra.mrb[18].mxu1 %vm1900_vm5, %v2236_v24 }
 0x768   : > { %v2876_v27 = vpop.permute.xlu0 %2875  ;;  %3843 = vmatprep.mubr.msk.f32.mxu1 %vm1900_vm5, %v2237_v9 }
 0x76b   : > { %3844 = vmatmul.mubr.msk.f32.gmra.mrb[20].mxu1 %vm1900_vm5, %v2238_v21  ;;  %v6405_v21 = vld [vmem:[#allocation18_spill] sm:$0xff] }
 0x76c   : > { %v2540_v25 = vpop.permute.xlu0 %2539  ;;  %3846 = vmatprep.mubr.msk.f32.mxu1 %vm1900_vm5, %v2239_v48 }
 0x76d   : > { %v2576_v57 = vsel %vm1883_vm6, %v5571_v55, %v2540_v25  ;;  %v2903_v55 = vsel %vm1883_vm6, %v6389_v6, %v6388_v56  ;;  %v6407_v56 = vld [vmem:[#allocation6_spill] sm:$0xff] }
 0x76e   : > { %3870 = vmatmul.mubr.msk.f32.gmra.mrb[32].mxu0 %vm1900_vm5, %v2576_v57  ;;  %v6406_v57 = vld [vmem:[#allocation5_spill] sm:$0xff] }
 0x76f   : > { %3847 = vmatmul.mubr.msk.f32.gmra.mrb[22].mxu1 %vm1900_vm5, %v2240_v53 }
 0x770   : > { %v2208_v33 = vpop.permute.xlu0 %2207 }
 0x771   : > { %v2241_v4 = vsel %vm1883_vm6, %v6386_v62, %v2208_v33 }
 0x772   : > { %3849 = vmatprep.mubr.msk.f32.mxu1 %vm1900_vm5, %v2241_v4 }
 0x773   : > { %3850 = vmatmul.mubr.msk.f32.gmra.mrb[24].mxu1 %vm1900_vm5, %v2242_v26 }
 0x774   : > { %v2878_v51 = vpop.permute.xlu0 %2877  ;;  %3880 = vmatprep.mubr.msk.f32.mxu1 %vm1900_vm5, %v2903_v55 }
 0x775   : > { %v2914_v14 = vsel %vm1883_vm6, %v5580_v11, %v2878_v51  ;;  %v6408_v51 = vld [vmem:[#allocation7_spill] sm:$0xff] }
 0x777   : > { %3881 = vmatmul.mubr.msk.f32.vlgmr.msra.gmra.mrb[26].mxu1 %vm1900_vm5, %v2904_v60 }
 0x778   : > { %v2542_v35 = vpop.permute.xlu0 %2541  ;;  %3883 = vmatprep.mubr.msk.f32.mxu1 %vm1900_vm5, %v2905_v16 }
 0x779   : > { %v2577_v44 = vsel %vm1883_vm6, %v5592_v61, %v2542_v35  ;;  %v6399_v61 = vld [vmem:[#allocation47_spill] sm:$0xff] }
 0x77a   : > { %3872 = vmatprep.mubr.msk.f32.mxu0 %vm1900_vm5, %v2577_v44  ;;  %v2909_v52 = vsel %vm1883_vm6, %v6399_v61, %v5662_v30  ;;  %v6410_v61 = vld [vmem:[#allocation9_spill] sm:$0xff] }
 0x77b   : > { %3884 = vmatmul.mubr.msk.f32.gmra.mrb[28].mxu1 %vm1900_vm5, %v2906_v19 }
 0x77c   : > { %v2880_v42 = vpop.permute.xlu0 %2879  ;;  %3886 = vmatprep.mubr.msk.f32.mxu1 %vm1900_vm5, %v2907_v41 }
 0x77d   : > { %v2915_v8 = vsel %vm1883_vm6, %v5605_v12, %v2880_v42 }
 0x77f   : > { %3887 = vmatmul.mubr.msk.f32.gmra.mrb[30].mxu1 %vm1900_vm5, %v2908_v50 }
 0x780   : > { %v2544_v0 = vpop.permute.xlu0 %2543  ;;  %3889 = vmatprep.mubr.msk.f32.mxu1 %vm1900_vm5, %v2909_v52 }
 0x781   : > { %v2578_v49 = vsel %vm1883_vm6, %v5617_v31, %v2544_v0  ;;  %v2913_v31 = vsel %vm1883_vm6, %v6402_v1, %v2876_v27  ;;  %v6412_v1 = vld [vmem:[#allocation11_spill] sm:$0xff] }
 0x782   : > { %3873 = vmatmul.mubr.msk.f32.gmra.mrb[34].mxu0 %vm1900_vm5, %v2578_v49 }
 0x783   : > { %3890 = vmatmul.mubr.msk.f32.gmra.mrb[32].mxu1 %vm1900_vm5, %v5625_v10 }
 0x784   : > { %v2882_v30 = vpop.permute.xlu0 %2881  ;;  %3892 = vmatprep.mubr.msk.f32.mxu1 %vm1900_vm5, %v2911_v3 }
 0x785   : > { %v2916_v24 = vsel %vm1883_vm6, %v5622_v46, %v2882_v30 }
 0x786   : > { %v3804_v38 = vpop.f32.mrb[16].mxu0 }
 0x787   : > { %v2099_v28 = vmul.f32 %v3804_v38, %v6403_v20  ;;  %v2019_v34 = vpop.f32.mrb[17].mxu0  ;;  %3893 = vmatmul.mubr.msk.f32.gmra.mrb[34].mxu1 %vm1900_vm5, %v2912_v58 }
 0x788   : > { %v2098_v54 = vmul.f32 %v2019_v34, %v6404_v36  ;;  %v2548_v10 = vpop.permute.xlu0 %2547  ;;  %3895 = vmatprep.mubr.msk.f32.mxu1 %vm1900_vm5, %v2913_v31  ;;  %v6413_v34 = vld [vmem:[#allocation12_spill] sm:$0xff] }
 0x789   : > { %2116 = vst.msk [vmem:[%s5872_s21 + $0x8] sm:$0xff] %vm2114_vm7, %v2099_v28  ;;  %v2580_v11 = vsel %vm1883_vm6, %v5650_v29, %v2548_v10 }
 0x78a   : > { %2115 = vst.msk [vmem:[%s5872_s21] sm:$0xff] %vm2114_vm7, %v2098_v54 }
 0x78b   : > { %3896 = vmatmul.mubr.msk.f32.gmra.mrb[36].mxu1 %vm1900_vm5, %v2914_v14  ;;  %v6414_v14 = vld [vmem:[#allocation13_spill] sm:$0xff] }
 0x78c   : > { %v2546_v32 = vpop.permute.xlu0 %2545  ;;  %3898 = vmatprep.mubr.msk.f32.mxu1 %vm1900_vm5, %v2915_v8 }
 0x78d   : > { %v2579_v5 = vsel %vm1883_vm6, %v5629_v39, %v2546_v32 }
 0x78e   : > { %3875 = vmatprep.mubr.msk.f32.mxu0 %vm1900_vm5, %v2579_v5  ;;  %v6415_v5 = vld [vmem:[#allocation14_spill] sm:$0xff] }
 0x78f   : > { %3876 = vmatmul.mubr.msk.f32.gmra.mrb[36].mxu0 %vm1900_vm5, %v2580_v11  ;;  %3899 = vmatmul.mubr.msk.f32.gmra.mrb[38].mxu1 %vm1900_vm5, %v2916_v24 }
 0x790   : > { %v2884_v12 = vpop.permute.xlu0 %2883 }
 0x791   : > { %v2917_v9 = vsel %vm1883_vm6, %v5639_v7, %v2884_v12  ;;  %v6416_v12 = vld [vmem:[#allocation15_spill] sm:$0xff] }
 0x792   : > { %3901 = vmatprep.mubr.msk.f32.mxu1 %vm1900_vm5, %v2917_v9 }
 0x794   : > { %v2886_v39 = vpop.permute.xlu0 %2885 }
 0x795   : > { %v2918_v46 = vsel %vm1883_vm6, %v5659_v17, %v2886_v39 }
 0x796   : > { %3902 = vmatmul.mubr.msk.f32.gmra.mrb[40].mxu1 %vm1900_vm5, %v2918_v46  ;;  %v6417_v46 = vld [vmem:[#allocation16_spill] sm:$0xff] }
 0x798   : > { %v1245_v29 = vpop.permute.xlu0 %1244 }
 0x799   : > { %1291 = vst.msk [vmem:[%s5668_s13 + $0x8] sm:$0xff] %vm905_vm2, %v1245_v29 }
 0x79c   : > { %v1249_v27 = vpop.permute.xlu0 %1248 }
 0x79d   : > { %1293 = vst.msk [vmem:[%s5668_s13 + $0x18] sm:$0xff] %vm905_vm2, %v1249_v27 }
 0x7a0   : > { %v1253_v7 = vpop.permute.xlu0 %1252 }
 0x7a1   : > { %1295 = vst.msk [vmem:[%s5668_s13 + $0x28] sm:$0xff] %vm905_vm2, %v1253_v7  ;;  %v6418_v7 = vld [vmem:[#allocation17_spill] sm:$0xff] }
 0x7a4   : > { %v1257_v23 = vpop.permute.xlu0 %1256 }
 0x7a5   : > { %1297 = vst.msk [vmem:[%s5668_s13 + $0x38] sm:$0xff] %vm905_vm2, %v1257_v23 }
 0x7a6   : > { %v3807_v17 = vpop.f32.mrb[18].mxu0 }
 0x7a7   : > { %v2101_v48 = vmul.f32 %v3807_v17, %v6405_v21  ;;  %v2029_v25 = vpop.f32.mrb[19].mxu0 }
 0x7a8   : > { %v2100_v53 = vmul.f32 %v2029_v25, %v6406_v57  ;;  %v1261_v33 = vpop.permute.xlu0 %1260 }
 0x7a9   : > { %2118 = vst.msk [vmem:[%s5872_s21 + $0x18] sm:$0xff] %vm2114_vm7, %v2101_v48 }
 0x7aa   : > { %1299 = vst.msk [vmem:[%s5668_s13 + $0x48] sm:$0xff] %vm905_vm2, %v1261_v33 }
 0x7ab   : > { %2117 = vst.msk [vmem:[%s5872_s21 + $0x10] sm:$0xff] %vm2114_vm7, %v2100_v53 }
 0x7ac   : > { %v1265_v62 = vpop.permute.xlu0 %1264 }
 0x7ad   : > { %1301 = vst.msk [vmem:[%s5668_s13 + $0x58] sm:$0xff] %vm905_vm2, %v1265_v62 }
 0x7b0   : > { %v1269_v4 = vpop.permute.xlu0 %1268 }
 0x7b1   : > { %1303 = vst.msk [vmem:[%s5668_s13 + $0x68] sm:$0xff] %vm905_vm2, %v1269_v4 }
 0x7b4   : > { %v1273_v47 = vpop.permute.xlu0 %1272 }
 0x7b5   : > { %1305 = vst.msk [vmem:[%s5668_s13 + $0x78] sm:$0xff] %vm905_vm2, %v1273_v47 }
 0x7c6   : > { %v3810_v26 = vpop.f32.mrb[20].mxu0 }
 0x7c7   : > { %v2103_v6 = vmul.f32 %v3810_v26, %v6407_v56  ;;  %v2039_v55 = vpop.f32.mrb[21].mxu0 }
 0x7c8   : > { %v2102_v43 = vmul.f32 %v2039_v55, %v6408_v51 }
 0x7c9   : > { %2120 = vst.msk [vmem:[%s5872_s21 + $0x28] sm:$0xff] %vm2114_vm7, %v2103_v6 }
 0x7ca   : > { %2119 = vst.msk [vmem:[%s5872_s21 + $0x20] sm:$0xff] %vm2114_vm7, %v2102_v43  ;;  %v3856_v63 = vpop.f32.mrb[22].mxu0 }
 0x7cb   : > { %v2775_v60 = vmul.f32 %v3856_v63, %v6403_v20  ;;  %v2695_v2 = vpop.f32.mrb[23].mxu0 }
 0x7cc   : > { %v2774_v45 = vmul.f32 %v2695_v2, %v6404_v36 }
 0x7cd   : > { %3632 = vst.msk [vmem:[%s5872_s21 + $0x108] sm:$0xff] %vm2114_vm7, %v2775_v60 }
 0x7ce   : > { %3631 = vst.msk [vmem:[%s5872_s21 + $0x100] sm:$0xff] %vm2114_vm7, %v2774_v45  ;;  %v3859_v16 = vpop.f32.mrb[24].mxu0 }
 0x7cf   : > { %v2777_v35 = vmul.f32 %v3859_v16, %v6405_v21  ;;  %v2705_v44 = vpop.f32.mrb[25].mxu0 }
 0x7d0   : > { %v2776_v59 = vmul.f32 %v2705_v44, %v6406_v57 }
 0x7d1   : > { %3634 = vst.msk [vmem:[%s5872_s21 + $0x118] sm:$0xff] %vm2114_vm7, %v2777_v35 }
 0x7d2   : > { %3633 = vst.msk [vmem:[%s5872_s21 + $0x110] sm:$0xff] %vm2114_vm7, %v2776_v59  ;;  %v3862_v13 = vpop.f32.mrb[26].mxu0 }
 0x7d3   : > { %v2779_v19 = vmul.f32 %v3862_v13, %v6407_v56  ;;  %v2715_v18 = vpop.f32.mrb[27].mxu0 }
 0x7d4   : > { %v2778_v41 = vmul.f32 %v2715_v18, %v6408_v51 }
 0x7d5   : > { %3636 = vst.msk [vmem:[%s5872_s21 + $0x128] sm:$0xff] %vm2114_vm7, %v2779_v19 }
 0x7d6   : > { %3635 = vst.msk [vmem:[%s5872_s21 + $0x120] sm:$0xff] %vm2114_vm7, %v2778_v41 }
 0x7de   : > { %v3813_v42 = vpop.f32.mrb[0].mxu1 }
 0x7df   : > { %v2105_v22 = vmul.f32 %v3813_v42, %v6409_v15  ;;  %v2049_v50 = vpop.f32.mrb[1].mxu1 }
 0x7e0   : > { %v2104_v52 = vmul.f32 %v2049_v50, %v6410_v61 }
 0x7e1   : > { %2122 = vst.msk [vmem:[%s5872_s21 + $0x38] sm:$0xff] %vm2114_vm7, %v2105_v22 }
 0x7e2   : > { %2121 = vst.msk [vmem:[%s5872_s21 + $0x30] sm:$0xff] %vm2114_vm7, %v2104_v52 }
 0x7e6   : > { %v3865_v0 = vpop.f32.mrb[28].mxu0 }
 0x7e7   : > { %v2781_v49 = vmul.f32 %v3865_v0, %v6409_v15  ;;  %v2725_v37 = vpop.f32.mrb[29].mxu0 }
 0x7e8   : > { %v2780_v3 = vmul.f32 %v2725_v37, %v6410_v61 }
 0x7e9   : > { %3638 = vst.msk [vmem:[%s5872_s21 + $0x138] sm:$0xff] %vm2114_vm7, %v2781_v49 }
 0x7ea   : > { %3637 = vst.msk [vmem:[%s5872_s21 + $0x130] sm:$0xff] %vm2114_vm7, %v2780_v3 }
 0x7f6   : > { %v3816_v30 = vpop.f32.mrb[2].mxu1 }
 0x7f7   : > { %v2107_v58 = vmul.f32 %v3816_v30, %v6411_v40  ;;  %v2059_v38 = vpop.f32.mrb[3].mxu1 }
 0x7f8   : > { %v2106_v31 = vmul.f32 %v2059_v38, %v6412_v1 }
 0x7f9   : > { %2124 = vst.msk [vmem:[%s5872_s21 + $0x48] sm:$0xff] %vm2114_vm7, %v2107_v58 }
 0x7fa   : > { %2123 = vst.msk [vmem:[%s5872_s21 + $0x40] sm:$0xff] %vm2114_vm7, %v2106_v31 }
 0x806   : > { %v3819_v28 = vpop.f32.mrb[4].mxu1 }
 0x807   : > { %v2109_v54 = vmul.f32 %v3819_v28, %v6413_v34  ;;  %v2069_v10 = vpop.f32.mrb[5].mxu1 }
 0x808   : > { %v2108_v8 = vmul.f32 %v2069_v10, %v6414_v14 }
 0x809   : > { %2126 = vst.msk [vmem:[%s5872_s21 + $0x58] sm:$0xff] %vm2114_vm7, %v2109_v54 }
 0x80a   : > { %2125 = vst.msk [vmem:[%s5872_s21 + $0x50] sm:$0xff] %vm2114_vm7, %v2108_v8 }
 0x816   : > { %v3822_v32 = vpop.f32.mrb[6].mxu1 }
 0x817   : > { %v2111_v24 = vmul.f32 %v3822_v32, %v6415_v5  ;;  %v2079_v11 = vpop.f32.mrb[7].mxu1 }
 0x818   : > { %v2110_v9 = vmul.f32 %v2079_v11, %v6416_v12 }
 0x819   : > { %2128 = vst.msk [vmem:[%s5872_s21 + $0x68] sm:$0xff] %vm2114_vm7, %v2111_v24 }
 0x81a   : > { %2127 = vst.msk [vmem:[%s5872_s21 + $0x60] sm:$0xff] %vm2114_vm7, %v2110_v9 }
 0x826   : > { %v3825_v39 = vpop.f32.mrb[8].mxu1 }
 0x827   : > { %v2113_v29 = vmul.f32 %v3825_v39, %v6417_v46  ;;  %v2089_v27 = vpop.f32.mrb[9].mxu1 }
 0x828   : > { %v2112_v23 = vmul.f32 %v2089_v27, %v6418_v7 }
 0x829   : > { %2130 = vst.msk [vmem:[%s5872_s21 + $0x78] sm:$0xff] %vm2114_vm7, %v2113_v29 }
 0x82a   : > { %2129 = vst.msk [vmem:[%s5872_s21 + $0x70] sm:$0xff] %vm2114_vm7, %v2112_v23  ;;  %v3830_v17 = vpop.f32.mrb[10].mxu1 }
 0x82b   : > { %v2437_v48 = vmul.f32 %v3830_v17, %v6403_v20  ;;  %v2357_v25 = vpop.f32.mrb[11].mxu1 }
 0x82c   : > { %v2436_v53 = vmul.f32 %v2357_v25, %v6404_v36 }
 0x82d   : > { %3599 = vst.msk [vmem:[%s5872_s21 + $0x88] sm:$0xff] %vm2114_vm7, %v2437_v48 }
 0x82e   : > { %3598 = vst.msk [vmem:[%s5872_s21 + $0x80] sm:$0xff] %vm2114_vm7, %v2436_v53  ;;  %v3833_v33 = vpop.f32.mrb[12].mxu1 }
 0x82f   : > { %v2439_v62 = vmul.f32 %v3833_v33, %v6405_v21  ;;  %v2367_v4 = vpop.f32.mrb[13].mxu1 }
 0x830   : > { %v2438_v47 = vmul.f32 %v2367_v4, %v6406_v57 }
 0x831   : > { %3601 = vst.msk [vmem:[%s5872_s21 + $0x98] sm:$0xff] %vm2114_vm7, %v2439_v62  ;;  %v3868_v26 = vpop.f32.mrb[30].mxu0 }
 0x832   : > { %3600 = vst.msk [vmem:[%s5872_s21 + $0x90] sm:$0xff] %vm2114_vm7, %v2438_v47  ;;  %v2783_v6 = vmul.f32 %v3868_v26, %v6411_v40  ;;  %v3836_v55 = vpop.f32.mrb[14].mxu1  ;;  %v2735_v43 = vpop.f32.mrb[31].mxu0 }
 0x833   : > { %v2441_v63 = vmul.f32 %v3836_v55, %v6407_v56  ;;  %v2782_v60 = vmul.f32 %v2735_v43, %v6412_v1  ;;  %v2377_v2 = vpop.f32.mrb[15].mxu1 }
 0x834   : > { %3640 = vst.msk [vmem:[%s5872_s21 + $0x148] sm:$0xff] %vm2114_vm7, %v2783_v6  ;;  %v2440_v45 = vmul.f32 %v2377_v2, %v6408_v51 }
 0x835   : > { %3603 = vst.msk [vmem:[%s5872_s21 + $0xa8] sm:$0xff] %vm2114_vm7, %v2441_v63  ;;  %3639 = vst.msk [vmem:[%s5872_s21 + $0x140] sm:$0xff] %vm2114_vm7, %v2782_v60 }
 0x836   : > { %3602 = vst.msk [vmem:[%s5872_s21 + $0xa0] sm:$0xff] %vm2114_vm7, %v2440_v45  ;;  %v3839_v16 = vpop.f32.mrb[16].mxu1 }
 0x837   : > { %v2443_v35 = vmul.f32 %v3839_v16, %v6409_v15  ;;  %v2387_v44 = vpop.f32.mrb[17].mxu1 }
 0x838   : > { %v2442_v59 = vmul.f32 %v2387_v44, %v6410_v61 }
 0x839   : > { %3605 = vst.msk [vmem:[%s5872_s21 + $0xb8] sm:$0xff] %vm2114_vm7, %v2443_v35 }
 0x83a   : > { %3604 = vst.msk [vmem:[%s5872_s21 + $0xb0] sm:$0xff] %vm2114_vm7, %v2442_v59  ;;  %v3842_v13 = vpop.f32.mrb[18].mxu1  ;;  %v3319_v59 = vld [vmem:[%s5872_s21 + $0x18] sm:$0xff] (%p4290_p4) }
 0x83b   : > { %v2445_v19 = vmul.f32 %v3842_v13, %v6411_v40  ;;  %v2397_v18 = vpop.f32.mrb[19].mxu1  ;;  %v3321_v13 = vld [vmem:[%s5872_s21 + $0x20] sm:$0xff] (%p4290_p4)  ;;  %3320 = vst [vmem:[%s6110_s18 + $0x18] sm:$0xff] (%p4290_p4), %v3319_v59 }
 0x83c   : > { %v2444_v41 = vmul.f32 %v2397_v18, %v6412_v1  ;;  %3322 = vst [vmem:[%s6110_s18 + $0x20] sm:$0xff] (%p4290_p4), %v3321_v13  ;;  %v3325_v18 = vld [vmem:[%s5872_s21 + $0x30] sm:$0xff] (%p4290_p4) }
 0x83d   : > { %3607 = vst.msk [vmem:[%s5872_s21 + $0xc8] sm:$0xff] %vm2114_vm7, %v2445_v19  ;;  %v3323_v19 = vld [vmem:[%s5872_s21 + $0x28] sm:$0xff] (%p4290_p4)  ;;  %3326 = vst [vmem:[%s6110_s18 + $0x30] sm:$0xff] (%p4290_p4), %v3325_v18 }
 0x83e   : > { %3606 = vst.msk [vmem:[%s5872_s21 + $0xc0] sm:$0xff] %vm2114_vm7, %v2444_v41  ;;  %v3845_v42 = vpop.f32.mrb[20].mxu1  ;;  %3324 = vst [vmem:[%s6110_s18 + $0x28] sm:$0xff] (%p4290_p4), %v3323_v19  ;;  %v3327_v41 = vld [vmem:[%s5872_s21 + $0x38] sm:$0xff] (%p4290_p4) }
 0x83f   : > { %v2447_v22 = vmul.f32 %v3845_v42, %v6413_v34  ;;  %v2407_v50 = vpop.f32.mrb[21].mxu1  ;;  %v3329_v42 = vld [vmem:[%s5872_s21 + $0x40] sm:$0xff] (%p4290_p4)  ;;  %3328 = vst [vmem:[%s6110_s18 + $0x38] sm:$0xff] (%p4290_p4), %v3327_v41 }
 0x840   : > { %v2446_v52 = vmul.f32 %v2407_v50, %v6414_v14  ;;  %3330 = vst [vmem:[%s6110_s18 + $0x40] sm:$0xff] (%p4290_p4), %v3329_v42  ;;  %v3333_v50 = vld [vmem:[%s5872_s21 + $0x50] sm:$0xff] (%p4290_p4) }
 0x841   : > { %3609 = vst.msk [vmem:[%s5872_s21 + $0xd8] sm:$0xff] %vm2114_vm7, %v2447_v22  ;;  %v3871_v0 = vpop.f32.mrb[32].mxu0  ;;  %v3331_v22 = vld [vmem:[%s5872_s21 + $0x48] sm:$0xff] (%p4290_p4)  ;;  %3334 = vst [vmem:[%s6110_s18 + $0x50] sm:$0xff] (%p4290_p4), %v3333_v50 }
 0x842   : > { %3608 = vst.msk [vmem:[%s5872_s21 + $0xd0] sm:$0xff] %vm2114_vm7, %v2446_v52  ;;  %v2785_v49 = vmul.f32 %v3871_v0, %v6413_v34  ;;  %v3848_v37 = vpop.f32.mrb[22].mxu1  ;;  %v2745_v3 = vpop.f32.mrb[33].mxu0  ;;  %v3335_v52 = vld [vmem:[%s5872_s21 + $0x58] sm:$0xff] (%p4290_p4)  ;;  %3332 = vst [vmem:[%s6110_s18 + $0x48] sm:$0xff] (%p4290_p4), %v3331_v22  ;;  %v3337_v0 = vld [vmem:[%s5872_s21 + $0x60] sm:$0xff] (%p4290_p4) }
 0x843   : > { %v2449_v30 = vmul.f32 %v3848_v37, %v6415_v5  ;;  %v2784_v58 = vmul.f32 %v2745_v3, %v6414_v14  ;;  %v2417_v38 = vpop.f32.mrb[23].mxu1  ;;  %3336 = vst [vmem:[%s6110_s18 + $0x58] sm:$0xff] (%p4290_p4), %v3335_v52  ;;  %v3341_v37 = vld [vmem:[%s5872_s21 + $0x70] sm:$0xff] (%p4290_p4)  ;;  %3338 = vst [vmem:[%s6110_s18 + $0x60] sm:$0xff] (%p4290_p4), %v3337_v0  ;;  %v3343_v3 = vld [vmem:[%s5872_s21 + $0x78] sm:$0xff] (%p4290_p4) }
 0x844   : > { %3642 = vst.msk [vmem:[%s5872_s21 + $0x158] sm:$0xff] %vm2114_vm7, %v2785_v49  ;;  %v2448_v31 = vmul.f32 %v2417_v38, %v6416_v12  ;;  %v3339_v49 = vld [vmem:[%s5872_s21 + $0x68] sm:$0xff] (%p4290_p4)  ;;  %3342 = vst [vmem:[%s6110_s18 + $0x70] sm:$0xff] (%p4290_p4), %v3341_v37  ;;  %v3349_v38 = vld [vmem:[%s5872_s21 + $0x90] sm:$0xff] (%p4290_p4) }
 0x845   : > { %3611 = vst.msk [vmem:[%s5872_s21 + $0xe8] sm:$0xff] %vm2114_vm7, %v2449_v30  ;;  %3641 = vst.msk [vmem:[%s5872_s21 + $0x150] sm:$0xff] %vm2114_vm7, %v2784_v58  ;;  %v3345_v30 = vld [vmem:[%s5872_s21 + $0x80] sm:$0xff] (%p4290_p4)  ;;  %v3347_v58 = vld [vmem:[%s5872_s21 + $0x88] sm:$0xff] (%p4290_p4) }
 0x846   : > { %3610 = vst.msk [vmem:[%s5872_s21 + $0xe0] sm:$0xff] %vm2114_vm7, %v2448_v31  ;;  %v3851_v28 = vpop.f32.mrb[24].mxu1  ;;  %3340 = vst [vmem:[%s6110_s18 + $0x68] sm:$0xff] (%p4290_p4), %v3339_v49  ;;  %v3351_v31 = vld [vmem:[%s5872_s21 + $0x98] sm:$0xff] (%p4290_p4) }
 0x847   : > { %v2451_v54 = vmul.f32 %v3851_v28, %v6417_v46  ;;  %v2427_v10 = vpop.f32.mrb[25].mxu1  ;;  %3344 = vst [vmem:[%s6110_s18 + $0x78] sm:$0xff] (%p4290_p4), %v3343_v3  ;;  %3346 = vst [vmem:[%s6110_s18 + $0x100] sm:$0xff] (%p4290_p4), %v3345_v30  ;;  %v3353_v28 = vld [vmem:[%s5872_s21 + $0xa0] sm:$0xff] (%p4290_p4) }
 0x848   : > { %v2450_v8 = vmul.f32 %v2427_v10, %v6418_v7  ;;  %3348 = vst [vmem:[%s6110_s18 + $0x108] sm:$0xff] (%p4290_p4), %v3347_v58  ;;  %3350 = vst [vmem:[%s6110_s18 + $0x110] sm:$0xff] (%p4290_p4), %v3349_v38  ;;  %v3357_v10 = vld [vmem:[%s5872_s21 + $0xb0] sm:$0xff] (%p4290_p4) }
 0x849   : > { %3613 = vst.msk [vmem:[%s5872_s21 + $0xf8] sm:$0xff] %vm2114_vm7, %v2451_v54  ;;  %3352 = vst [vmem:[%s6110_s18 + $0x118] sm:$0xff] (%p4290_p4), %v3351_v31  ;;  %v3355_v54 = vld [vmem:[%s5872_s21 + $0xa8] sm:$0xff] (%p4290_p4) }
 0x84a   : > { %3612 = vst.msk [vmem:[%s5872_s21 + $0xf0] sm:$0xff] %vm2114_vm7, %v2450_v8  ;;  %v3882_v32 = vpop.f32.mrb[26].mxu1  ;;  %3354 = vst [vmem:[%s6110_s18 + $0x120] sm:$0xff] (%p4290_p4), %v3353_v28  ;;  %v3359_v8 = vld [vmem:[%s5872_s21 + $0xb8] sm:$0xff] (%p4290_p4) }
 0x84b   : > { %v3113_v24 = vmul.f32 %v3882_v32, %v6403_v20  ;;  %v3033_v11 = vpop.f32.mrb[27].mxu1  ;;  %3356 = vst [vmem:[%s6110_s18 + $0x128] sm:$0xff] (%p4290_p4), %v3355_v54  ;;  %3358 = vst [vmem:[%s6110_s18 + $0x130] sm:$0xff] (%p4290_p4), %v3357_v10  ;;  %v3361_v32 = vld [vmem:[%s5872_s21 + $0xc0] sm:$0xff] (%p4290_p4) }
 0x84c   : > { %v3112_v9 = vmul.f32 %v3033_v11, %v6404_v36  ;;  %3360 = vst [vmem:[%s6110_s18 + $0x138] sm:$0xff] (%p4290_p4), %v3359_v8  ;;  %v3365_v11 = vld [vmem:[%s5872_s21 + $0xd0] sm:$0xff] (%p4290_p4)  ;;  %3362 = vst [vmem:[%s6110_s18 + $0x140] sm:$0xff] (%p4290_p4), %v3361_v32 }
 0x84d   : > { %3665 = vst.msk [vmem:[%s5872_s21 + $0x188] sm:$0xff] %vm2114_vm7, %v3113_v24  ;;  %v3363_v24 = vld [vmem:[%s5872_s21 + $0xc8] sm:$0xff] (%p4290_p4)  ;;  %3366 = vst [vmem:[%s6110_s18 + $0x150] sm:$0xff] (%p4290_p4), %v3365_v11 }
 0x84e   : > { %3664 = vst.msk [vmem:[%s5872_s21 + $0x180] sm:$0xff] %vm2114_vm7, %v3112_v9  ;;  %v3885_v39 = vpop.f32.mrb[28].mxu1  ;;  %3364 = vst [vmem:[%s6110_s18 + $0x148] sm:$0xff] (%p4290_p4), %v3363_v24  ;;  %v3367_v9 = vld [vmem:[%s5872_s21 + $0xd8] sm:$0xff] (%p4290_p4) }
 0x84f   : > { %v3115_v29 = vmul.f32 %v3885_v39, %v6405_v21  ;;  %v3043_v27 = vpop.f32.mrb[29].mxu1  ;;  %v3369_v39 = vld [vmem:[%s5872_s21 + $0xe0] sm:$0xff] (%p4290_p4)  ;;  %3368 = vst [vmem:[%s6110_s18 + $0x158] sm:$0xff] (%p4290_p4), %v3367_v9 }
 0x850   : > { %v3114_v23 = vmul.f32 %v3043_v27, %v6406_v57  ;;  %3370 = vst [vmem:[%s6110_s18 + $0x160] sm:$0xff] (%p4290_p4), %v3369_v39 }
 0x851   : > { %3667 = vst.msk [vmem:[%s5872_s21 + $0x198] sm:$0xff] %vm2114_vm7, %v3115_v29  ;;  %v3371_v29 = vld [vmem:[%s5872_s21 + $0xe8] sm:$0xff] (%p4290_p4)  ;;  %v3373_v27 = vld [vmem:[%s5872_s21 + $0xf0] sm:$0xff] (%p4290_p4) }
 0x852   : > { %3666 = vst.msk [vmem:[%s5872_s21 + $0x190] sm:$0xff] %vm2114_vm7, %v3114_v23  ;;  %v3888_v20 = vpop.f32.mrb[30].mxu1  ;;  %3372 = vst [vmem:[%s6110_s18 + $0x168] sm:$0xff] (%p4290_p4), %v3371_v29  ;;  %v3375_v23 = vld [vmem:[%s5872_s21 + $0xf8] sm:$0xff] (%p4290_p4) }
 0x853   : > { %v3117_v36 = vmul.f32 %v3888_v20, %v6407_v56  ;;  %v3053_v17 = vpop.f32.mrb[31].mxu1  ;;  %v3377_v20 = vld [vmem:[%s5872_s21 + $0x100] sm:$0xff] (%p4290_p4)  ;;  %3374 = vst [vmem:[%s6110_s18 + $0x170] sm:$0xff] (%p4290_p4), %v3373_v27  ;;  %3376 = vst [vmem:[%s6110_s18 + $0x178] sm:$0xff] (%p4290_p4), %v3375_v23 }
 0x854   : > { %v3116_v48 = vmul.f32 %v3053_v17, %v6408_v51  ;;  %3378 = vst [vmem:[%s6110_s18 + $0x200] sm:$0xff] (%p4290_p4), %v3377_v20  ;;  %v3381_v17 = vld [vmem:[%s5872_s21 + $0x110] sm:$0xff] (%p4290_p4) }
 0x855   : > { %3669 = vst.msk [vmem:[%s5872_s21 + $0x1a8] sm:$0xff] %vm2114_vm7, %v3117_v36  ;;  %v3874_v21 = vpop.f32.mrb[34].mxu0  ;;  %v3379_v36 = vld [vmem:[%s5872_s21 + $0x108] sm:$0xff] (%p4290_p4)  ;;  %3382 = vst [vmem:[%s6110_s18 + $0x210] sm:$0xff] (%p4290_p4), %v3381_v17 }
 0x856   : > { %3668 = vst.msk [vmem:[%s5872_s21 + $0x1a0] sm:$0xff] %vm2114_vm7, %v3116_v48  ;;  %v2787_v57 = vmul.f32 %v3874_v21, %v6415_v5  ;;  %v2755_v25 = vpop.f32.mrb[35].mxu0  ;;  %v3891_v53 = vpop.f32.mrb[32].mxu1  ;;  %v3383_v48 = vld [vmem:[%s5872_s21 + $0x118] sm:$0xff] (%p4290_p4)  ;;  %3380 = vst [vmem:[%s6110_s18 + $0x208] sm:$0xff] (%p4290_p4), %v3379_v36  ;;  %v3385_v21 = vld [vmem:[%s5872_s21 + $0x120] sm:$0xff] (%p4290_p4) }
 0x857   : > { %v2786_v33 = vmul.f32 %v2755_v25, %v6416_v12  ;;  %v3119_v62 = vmul.f32 %v3891_v53, %v6409_v15  ;;  %v3063_v56 = vpop.f32.mrb[33].mxu1  ;;  %3384 = vst [vmem:[%s6110_s18 + $0x218] sm:$0xff] (%p4290_p4), %v3383_v48  ;;  %v3389_v25 = vld [vmem:[%s5872_s21 + $0x130] sm:$0xff] (%p4290_p4)  ;;  %3386 = vst [vmem:[%s6110_s18 + $0x220] sm:$0xff] (%p4290_p4), %v3385_v21  ;;  %v3391_v53 = vld [vmem:[%s5872_s21 + $0x138] sm:$0xff] (%p4290_p4) }
 0x858   : > { %3644 = vst.msk [vmem:[%s5872_s21 + $0x168] sm:$0xff] %vm2114_vm7, %v2787_v57  ;;  %v3118_v51 = vmul.f32 %v3063_v56, %v6410_v61  ;;  %v3387_v57 = vld [vmem:[%s5872_s21 + $0x128] sm:$0xff] (%p4290_p4)  ;;  %3390 = vst [vmem:[%s6110_s18 + $0x230] sm:$0xff] (%p4290_p4), %v3389_v25  ;;  %v3397_v56 = vld [vmem:[%s5872_s21 + $0x150] sm:$0xff] (%p4290_p4) }
 0x859   : > { %3643 = vst.msk [vmem:[%s5872_s21 + $0x160] sm:$0xff] %vm2114_vm7, %v2786_v33  ;;  %3671 = vst.msk [vmem:[%s5872_s21 + $0x1b8] sm:$0xff] %vm2114_vm7, %v3119_v62  ;;  %v3393_v33 = vld [vmem:[%s5872_s21 + $0x140] sm:$0xff] (%p4290_p4)  ;;  %v3395_v62 = vld [vmem:[%s5872_s21 + $0x148] sm:$0xff] (%p4290_p4) }
 0x85a   : > { %3670 = vst.msk [vmem:[%s5872_s21 + $0x1b0] sm:$0xff] %vm2114_vm7, %v3118_v51  ;;  %v3894_v4 = vpop.f32.mrb[34].mxu1  ;;  %3388 = vst [vmem:[%s6110_s18 + $0x228] sm:$0xff] (%p4290_p4), %v3387_v57  ;;  %v3399_v51 = vld [vmem:[%s5872_s21 + $0x158] sm:$0xff] (%p4290_p4) }
 0x85b   : > { %v3121_v47 = vmul.f32 %v3894_v4, %v6411_v40  ;;  %v3073_v26 = vpop.f32.mrb[35].mxu1  ;;  %3392 = vst [vmem:[%s6110_s18 + $0x238] sm:$0xff] (%p4290_p4), %v3391_v53  ;;  %3394 = vst [vmem:[%s6110_s18 + $0x240] sm:$0xff] (%p4290_p4), %v3393_v33 }
 0x85c   : > { %v3120_v6 = vmul.f32 %v3073_v26, %v6412_v1  ;;  %3396 = vst [vmem:[%s6110_s18 + $0x248] sm:$0xff] (%p4290_p4), %v3395_v62  ;;  %3398 = vst [vmem:[%s6110_s18 + $0x250] sm:$0xff] (%p4290_p4), %v3397_v56 }
 0x85d   : > { %3673 = vst.msk [vmem:[%s5872_s21 + $0x1c8] sm:$0xff] %vm2114_vm7, %v3121_v47  ;;  %3400 = vst [vmem:[%s6110_s18 + $0x258] sm:$0xff] (%p4290_p4), %v3399_v51 }
 0x85e   : > { %3672 = vst.msk [vmem:[%s5872_s21 + $0x1c0] sm:$0xff] %vm2114_vm7, %v3120_v6  ;;  %v3897_v15 = vpop.f32.mrb[36].mxu1 }
 0x85f   : > { %v3123_v61 = vmul.f32 %v3897_v15, %v6413_v34  ;;  %v3083_v55 = vpop.f32.mrb[37].mxu1  ;;  %v3403_v47 = vld [vmem:[%s5872_s21 + $0x168] sm:$0xff] (%p4290_p4)  ;;  %v3409_v15 = vld [vmem:[%s5872_s21 + $0x180] sm:$0xff] (%p4290_p4) }
 0x860   : > { %v3122_v43 = vmul.f32 %v3083_v55, %v6414_v14  ;;  %v3401_v4 = vld [vmem:[%s5872_s21 + $0x160] sm:$0xff] (%p4290_p4)  ;;  %3404 = vst [vmem:[%s6110_s18 + $0x268] sm:$0xff] (%p4290_p4), %v3403_v47  ;;  %v3413_v55 = vld [vmem:[%s5872_s21 + $0x190] sm:$0xff] (%p4290_p4)  ;;  %3410 = vst [vmem:[%s6110_s18 + $0x300] sm:$0xff] (%p4290_p4), %v3409_v15 }
 0x861   : > { %3675 = vst.msk [vmem:[%s5872_s21 + $0x1d8] sm:$0xff] %vm2114_vm7, %v3123_v61  ;;  %3402 = vst [vmem:[%s6110_s18 + $0x260] sm:$0xff] (%p4290_p4), %v3401_v4  ;;  %v3411_v61 = vld [vmem:[%s5872_s21 + $0x188] sm:$0xff] (%p4290_p4) }
 0x862   : > { %3674 = vst.msk [vmem:[%s5872_s21 + $0x1d0] sm:$0xff] %vm2114_vm7, %v3122_v43  ;;  %v3877_v40 = vpop.f32.mrb[36].mxu0  ;;  %v3900_v1 = vpop.f32.mrb[38].mxu1  ;;  %3412 = vst [vmem:[%s6110_s18 + $0x308] sm:$0xff] (%p4290_p4), %v3411_v61  ;;  %v3415_v43 = vld [vmem:[%s5872_s21 + $0x198] sm:$0xff] (%p4290_p4) }
 0x863   : > { %v2789_v63 = vmul.f32 %v3877_v40, %v6417_v46  ;;  %v3125_v60 = vmul.f32 %v3900_v1, %v6415_v5  ;;  %v2765_v2 = vpop.f32.mrb[37].mxu0  ;;  %v3093_v45 = vpop.f32.mrb[39].mxu1  ;;  %3414 = vst [vmem:[%s6110_s18 + $0x310] sm:$0xff] (%p4290_p4), %v3413_v55  ;;  %v3417_v40 = vld [vmem:[%s5872_s21 + $0x1a0] sm:$0xff] (%p4290_p4)  ;;  %v3419_v1 = vld [vmem:[%s5872_s21 + $0x1a8] sm:$0xff] (%p4290_p4)  ;;  %3416 = vst [vmem:[%s6110_s18 + $0x318] sm:$0xff] (%p4290_p4), %v3415_v43 }
 0x864   : > { %v2788_v34 = vmul.f32 %v2765_v2, %v6418_v7  ;;  %v3124_v16 = vmul.f32 %v3093_v45, %v6416_v12  ;;  %v3313_v12 = vld [vmem:[%s5872_s21] sm:$0xff] (%p4290_p4)  ;;  %3418 = vst [vmem:[%s6110_s18 + $0x320] sm:$0xff] (%p4290_p4), %v3417_v40  ;;  %3420 = vst [vmem:[%s6110_s18 + $0x328] sm:$0xff] (%p4290_p4), %v3419_v1  ;;  %v3427_v45 = vld [vmem:[%s5872_s21 + $0x1c8] sm:$0xff] (%p4290_p4) }
 0x865   : > { %3646 = vst.msk [vmem:[%s5872_s21 + $0x178] sm:$0xff] %vm2114_vm7, %v2789_v63  ;;  %3677 = vst.msk [vmem:[%s5872_s21 + $0x1e8] sm:$0xff] %vm2114_vm7, %v3125_v60  ;;  %v3421_v63 = vld [vmem:[%s5872_s21 + $0x1b0] sm:$0xff] (%p4290_p4)  ;;  %v3423_v60 = vld [vmem:[%s5872_s21 + $0x1b8] sm:$0xff] (%p4290_p4) }
 0x866   : > { %3645 = vst.msk [vmem:[%s5872_s21 + $0x170] sm:$0xff] %vm2114_vm7, %v2788_v34  ;;  %3676 = vst.msk [vmem:[%s5872_s21 + $0x1e0] sm:$0xff] %vm2114_vm7, %v3124_v16  ;;  %v3425_v2 = vld [vmem:[%s5872_s21 + $0x1c0] sm:$0xff] (%p4290_p4) }
 0x867   : > { %3156 = sbr.rel (!%p4290_p4) target bundleno = 2166 (0x876), region = 44  ;;  %3314 = vst [vmem:[%s6110_s18] sm:$0xff] (%p4290_p4), %v3313_v12  ;;  %3422 = vst [vmem:[%s6110_s18 + $0x330] sm:$0xff] (%p4290_p4), %v3421_v63 }
 0x868   : > { %3424 = vst [vmem:[%s6110_s18 + $0x338] sm:$0xff] (%p4290_p4), %v3423_v60  ;;  %3426 = vst [vmem:[%s6110_s18 + $0x340] sm:$0xff] (%p4290_p4), %v3425_v2  ;;  %v3431_v16 = vld [vmem:[%s5872_s21 + $0x1d8] sm:$0xff] (%p4290_p4) }
 0x869   : > { %v3903_v14 = vpop.f32.mrb[40].mxu1  ;;  %v3429_v34 = vld [vmem:[%s5872_s21 + $0x1d0] sm:$0xff] (%p4290_p4)  ;;  %3428 = vst [vmem:[%s6110_s18 + $0x348] sm:$0xff] (%p4290_p4), %v3427_v45  ;;  %3432 = vst [vmem:[%s6110_s18 + $0x358] sm:$0xff] (%p4290_p4), %v3431_v16 }
 0x86a   : > { %v3127_v35 = vmul.f32 %v3903_v14, %v6417_v46  ;;  %v3103_v44 = vpop.f32.mrb[41].mxu1  ;;  %v3315_v46 = vld [vmem:[%s5872_s21 + $0x8] sm:$0xff] (%p4290_p4)  ;;  %3430 = vst [vmem:[%s6110_s18 + $0x350] sm:$0xff] (%p4290_p4), %v3429_v34 }
 0x86b   : > { %v3126_v5 = vmul.f32 %v3103_v44, %v6418_v7  ;;  %v3317_v7 = vld [vmem:[%s5872_s21 + $0x10] sm:$0xff] (%p4290_p4)  ;;  %3316 = vst [vmem:[%s6110_s18 + $0x8] sm:$0xff] (%p4290_p4), %v3315_v46 }
 0x86c   : > { %3679 = vst.msk [vmem:[%s5872_s21 + $0x1f8] sm:$0xff] %vm2114_vm7, %v3127_v35  ;;  %3318 = vst [vmem:[%s6110_s18 + $0x10] sm:$0xff] (%p4290_p4), %v3317_v7  ;;  %v3407_v6 = vld [vmem:[%s5872_s21 + $0x178] sm:$0xff] (%p4290_p4)  ;;  %v3435_v35 = vld [vmem:[%s5872_s21 + $0x1e8] sm:$0xff] (%p4290_p4) }
 0x86d   : > { %3678 = vst.msk [vmem:[%s5872_s21 + $0x1f0] sm:$0xff] %vm2114_vm7, %v3126_v5  ;;  %v3405_v26 = vld [vmem:[%s5872_s21 + $0x170] sm:$0xff] (%p4290_p4)  ;;  %3408 = vst [vmem:[%s6110_s18 + $0x278] sm:$0xff] (%p4290_p4), %v3407_v6  ;;  %v3433_v14 = vld [vmem:[%s5872_s21 + $0x1e0] sm:$0xff] (%p4290_p4) }
 0x86e   : > { %3406 = vst [vmem:[%s6110_s18 + $0x270] sm:$0xff] %v3405_v26  ;;  %3434 = vst [vmem:[%s6110_s18 + $0x360] sm:$0xff] %v3433_v14 }
 0x86f   : > { %3436 = vst [vmem:[%s6110_s18 + $0x368] sm:$0xff] %v3435_v35 }
 0x873   : > { %v3439_v5 = vld [vmem:[%s5872_s21 + $0x1f8] sm:$0xff] }
 0x874   : > { %v3437_v44 = vld [vmem:[%s5872_s21 + $0x1f0] sm:$0xff]  ;;  %3440 = vst [vmem:[%s6110_s18 + $0x378] sm:$0xff] %v3439_v5 }
 0x875   : > { %3438 = vst [vmem:[%s6110_s18 + $0x370] sm:$0xff] %v3437_v44 }
 0x876 PF: > { %p14_p8 = scmp.ge.s32.totalorder %s4280_s25, 4   ;;  %s6419_s21 = smov %s4217_s22 }
 0x877   : > { %s6420_s22 = smov %s4288_s28  ;;  %s6421_s23 = smov %s4280_s25 }
 0x878   :  { %16 = sbr.rel (!%p14_p8) target bundleno = 2 (0x2), region = 126 }

</bundles_post_ra>
